<compile_context>
chip_gen: v6e
topology: v6e:2x2x1
jax: 0.10.0
libtpu: 0.0.40
codegen_flags: <defaults>
</compile_context>

<pallas_src>
import jax
import jax.numpy as jnp
from jax.experimental import pallas as pl
from jax.experimental.pallas import tpu as pltpu

# ----------------------------------------------------------------------------
# Static model configuration
# ----------------------------------------------------------------------------
H_IN = W_IN = 16        # input spatial size
C_IN = 4                # input channels (NCHW input: (B, 4, 16, 16))
C1 = 8                  # conv1 output channels
C2 = 16                 # conv2 output channels == bottleneck dim
PROJ = 32               # projector width

EXT_H = 18              # conv1 extended output rows: orig rows -1..16
EXT_W = 24              # conv1 extended output cols: orig cols -1..22 (8-aligned)
PAD_H = EXT_H + 2       # 20 padded input rows (orig -2..17)
PAD_W = EXT_W + 2       # 26 padded input cols (orig -2..23)
M1 = EXT_H * EXT_W      # 432 conv1 matmul rows
OUT_H2 = H_IN // 2      # 8 even conv2 output rows
M2 = OUT_H2 * W_IN      # 128 conv2 matmul rows (even rows x all 16 cols)
GAP_N = (H_IN // 2) * (W_IN // 2)   # 64 true stride-2 positions averaged by GAP


# ----------------------------------------------------------------------------
# Fused Pallas kernel (per batch sample): conv1+ReLU -> conv2(s2)+ReLU -> GAP
#                                         -> Linear+ReLU -> Linear+ReLU -> Linear
# ----------------------------------------------------------------------------
def _fused_forward_kernel(x_ref, w1_ref, b1_ref, w2_ref, b2_ref,
                          pw1_ref, pb1_ref, pw2_ref, pb2_ref, pw3_ref, pb3_ref,
                          o_ref):
    f32 = jnp.float32
    x = x_ref[0]                                            # (20, 26, 4)

    # ---- conv1 (3x3, s1, p1) + ReLU on the 18x24 extended grid --------------
    # 9 accumulated per-tap MXU matmuls; no lane-axis im2col concat.
    acc1 = jnp.zeros((M1, C1), f32)
    for a in range(3):
        for b in range(3):
            tap = x[a:a + EXT_H, b:b + EXT_W, :].reshape(M1, C_IN)
            acc1 = acc1 + jnp.dot(tap, w1_ref[a * 3 + b],
                                  preferred_element_type=f32)
    h1 = jnp.maximum(acc1 + b1_ref[...], 0.0).reshape(EXT_H, EXT_W, C1)

    # zero everything outside the true 16x16 conv1 output (== conv2 zero pad),
    # mask built in-kernel from iota compares (no HBM mask inputs).
    r = jax.lax.broadcasted_iota(jnp.int32, (EXT_H, EXT_W, C1), 0)
    c = jax.lax.broadcasted_iota(jnp.int32, (EXT_H, EXT_W, C1), 1)
    keep1 = (r >= 1) & (r <= H_IN) & (c >= 1) & (c <= W_IN)
    h1 = jnp.where(keep1, h1, 0.0)

    # row-parity split: (pair, parity, col, chan). Splits a MAJOR dim -> free.
    h1r = h1.reshape(EXT_H // 2, 2, EXT_W, C1)

    # ---- conv2 (3x3, s2, p1) + ReLU at the 8 even output rows x 16 cols -----
    # tap i -> needed extended rows {i, i+2, ..., i+14} == (pair offset, parity)
    row_sel = ((0, 0), (0, 1), (1, 0))
    acc2 = jnp.zeros((M2, C2), f32)
    for i in range(3):
        k0, p = row_sel[i]
        for j in range(3):
            tap = h1r[k0:k0 + OUT_H2, p, j:j + W_IN, :].reshape(M2, C1)
            acc2 = acc2 + jnp.dot(tap, w2_ref[i * 3 + j],
                                  preferred_element_type=f32)
    h2 = jnp.maximum(acc2 + b2_ref[...], 0.0)               # (128, 16)

    # keep only even output columns (true stride-2 positions), then GAP
    idx = jax.lax.broadcasted_iota(jnp.int32, (M2, C2), 0)  # row = oy*16 + ox
    h2 = jnp.where((idx & 1) == 0, h2, 0.0)                 # parity(idx)==parity(ox)
    bottleneck = jnp.sum(h2, axis=0, keepdims=True) * (1.0 / GAP_N)   # (1, 16)

    # ---- projector: Linear+ReLU, Linear+ReLU, Linear ------------------------
    z = jnp.maximum(jnp.dot(bottleneck, pw1_ref[...],
                            preferred_element_type=f32) + pb1_ref[...], 0.0)
    z = jnp.maximum(jnp.dot(z, pw2_ref[...],
                            preferred_element_type=f32) + pb2_ref[...], 0.0)
    z = jnp.dot(z, pw3_ref[...], preferred_element_type=f32) + pb3_ref[...]
    o_ref[...] = z.reshape(1, 1, PROJ).astype(o_ref.dtype)


# ----------------------------------------------------------------------------
# Wrapper
# ----------------------------------------------------------------------------
def barlow_twins_forward(params, x_nchw):
    x = jnp.transpose(x_nchw, (0, 2, 3, 1)).astype(jnp.float32)   # (B,16,16,4)
    B = x.shape[0]

    # pad: 2 rows top/bottom, 2 cols left / 8 right  ->  (B, 20, 26, 4)
    x_pad = jnp.pad(x, ((0, 0),
                        (2, PAD_H - 2 - H_IN),
                        (2, PAD_W - 2 - W_IN),
                        (0, 0)))

    # conv weights (HWIO) folded to per-tap matmul form (tap, cin, cout)
    w1 = params["conv1_w"].reshape(9, C_IN, C1)
    w2 = params["conv2_w"].reshape(9, C1, C2)

    args = (x_pad,
            w1, params["conv1_b"].reshape(1, C1),
            w2, params["conv2_b"].reshape(1, C2),
            params["proj1_w"], params["proj1_b"].reshape(1, PROJ),
            params["proj2_w"], params["proj2_b"].reshape(1, PROJ),
            params["proj3_w"], params["proj3_b"].reshape(1, PROJ))

    def const_spec(arr):
        nd = arr.ndim
        return pl.BlockSpec(arr.shape, lambda b: (0,) * nd)   # VMEM-resident

    in_specs = [pl.BlockSpec((1, PAD_H, PAD_W, C_IN), lambda b: (b, 0, 0, 0))]
    in_specs += [const_spec(a) for a in args[1:]]

    out = pl.pallas_call(
        _fused_forward_kernel,
        out_shape=jax.ShapeDtypeStruct((B, 1, PROJ), jnp.float32),
        grid=(B,),
        in_specs=in_specs,
        out_specs=pl.BlockSpec((1, 1, PROJ), lambda b: (b, 0, 0)),
        compiler_params=pltpu.CompilerParams(
            dimension_semantics=("parallel",)),
    )(*args)
    return out.reshape(B, PROJ)


# ----------------------------------------------------------------------------
# Params + pure-JAX reference (for a correctness check)
# ----------------------------------------------------------------------------
def init_params(key):
    ks = jax.random.split(key, 10)
    scale = 0.05
    return {
        "conv1_w": scale * jax.random.normal(ks[0], (3, 3, C_IN, C1), jnp.float32),
        "conv1_b": jnp.zeros((C1,), jnp.float32),
        "conv2_w": scale * jax.random.normal(ks[1], (3, 3, C1, C2), jnp.float32),
        "conv2_b": jnp.zeros((C2,), jnp.float32),
        "proj1_w": scale * jax.random.normal(ks[2], (C2, PROJ), jnp.float32),
        "proj1_b": jnp.zeros((PROJ,), jnp.float32),
        "proj2_w": scale * jax.random.normal(ks[3], (PROJ, PROJ), jnp.float32),
        "proj2_b": jnp.zeros((PROJ,), jnp.float32),
        "proj3_w": scale * jax.random.normal(ks[4], (PROJ, PROJ), jnp.float32),
        "proj3_b": jnp.zeros((PROJ,), jnp.float32),
    }


def _reference_forward(params, x_nchw):
    hp = jax.lax.Precision.HIGHEST
    dn = ("NHWC", "HWIO", "NHWC")
    x = jnp.transpose(x_nchw, (0, 2, 3, 1)).astype(jnp.float32)
    h = jax.lax.conv_general_dilated(x, params["conv1_w"], (1, 1), ((1, 1), (1, 1)),
                                     dimension_numbers=dn, precision=hp)
    h = jnp.maximum(h + params["conv1_b"], 0.0)
    h = jax.lax.conv_general_dilated(h, params["conv2_w"], (2, 2), ((1, 1), (1, 1)),
                                     dimension_numbers=dn, precision=hp)
    h = jnp.maximum(h + params["conv2_b"], 0.0)
    b = jnp.mean(h, axis=(1, 2))
    z = jnp.maximum(jnp.dot(b, params["proj1_w"], precision=hp) + params["proj1_b"], 0.0)
    z = jnp.maximum(jnp.dot(z, params["proj2_w"], precision=hp) + params["proj2_b"], 0.0)
    return jnp.dot(z, params["proj3_w"], precision=hp) + params["proj3_b"]


if __name__ == "__main__":
    key = jax.random.PRNGKey(0)
    k_param, k_x = jax.random.split(key)
    params = init_params(k_param)
    x = jax.random.normal(k_x, (2, C_IN, H_IN, W_IN), jnp.float32)   # NCHW input

    projection = jax.jit(barlow_twins_forward)(params, x)
    jax.block_until_ready(projection)

    assert projection.shape == (2, PROJ)
    assert projection.dtype == jnp.float32

    ref = _reference_forward(params, x)
    assert jnp.allclose(projection, ref, rtol=1e-3, atol=1e-4), (
        "max abs err = %g" % float(jnp.max(jnp.abs(projection - ref))))

    print("KERNEL_OK")
</pallas_src>

<mosaic_0001>
module attributes {stable_mosaic.version = 11 : i64} {
  func.func @_fused_forward_kernel(%arg0: i32, %arg1: memref<1x20x26x4xf32, #tpu.memory_space<vmem>>, %arg2: memref<9x4x8xf32, #tpu.memory_space<vmem>>, %arg3: memref<1x8xf32, #tpu.memory_space<vmem>>, %arg4: memref<9x8x16xf32, #tpu.memory_space<vmem>>, %arg5: memref<1x16xf32, #tpu.memory_space<vmem>>, %arg6: memref<16x32xf32, #tpu.memory_space<vmem>>, %arg7: memref<1x32xf32, #tpu.memory_space<vmem>>, %arg8: memref<32x32xf32, #tpu.memory_space<vmem>>, %arg9: memref<1x32xf32, #tpu.memory_space<vmem>>, %arg10: memref<32x32xf32, #tpu.memory_space<vmem>>, %arg11: memref<1x32xf32, #tpu.memory_space<vmem>>, %arg12: memref<1x1x32xf32, #tpu.memory_space<vmem>>) attributes {dimension_semantics = [#tpu.dimension_semantics<parallel>], iteration_bounds = array<i64: 2>, scalar_prefetch = 0 : i64, scratch_operands = 0 : i64, tpu.core_type = #tpu.core_type<tc>, window_params = [{transform_indices = @transform_0, window_bounds = array<i64: 1, 20, 26, 4>}, {pipeline_mode = #tpu.pipeline_mode<synchronous>, transform_indices = @transform_1, window_bounds = array<i64: 9, 4, 8>}, {pipeline_mode = #tpu.pipeline_mode<synchronous>, transform_indices = @transform_2, window_bounds = array<i64: 1, 8>}, {pipeline_mode = #tpu.pipeline_mode<synchronous>, transform_indices = @transform_3, window_bounds = array<i64: 9, 8, 16>}, {pipeline_mode = #tpu.pipeline_mode<synchronous>, transform_indices = @transform_4, window_bounds = array<i64: 1, 16>}, {pipeline_mode = #tpu.pipeline_mode<synchronous>, transform_indices = @transform_5, window_bounds = array<i64: 16, 32>}, {pipeline_mode = #tpu.pipeline_mode<synchronous>, transform_indices = @transform_6, window_bounds = array<i64: 1, 32>}, {pipeline_mode = #tpu.pipeline_mode<synchronous>, transform_indices = @transform_7, window_bounds = array<i64: 32, 32>}, {pipeline_mode = #tpu.pipeline_mode<synchronous>, transform_indices = @transform_8, window_bounds = array<i64: 1, 32>}, {pipeline_mode = #tpu.pipeline_mode<synchronous>, transform_indices = @transform_9, window_bounds = array<i64: 32, 32>}, {pipeline_mode = #tpu.pipeline_mode<synchronous>, transform_indices = @transform_10, window_bounds = array<i64: 1, 32>}, {transform_indices = @transform_11, window_bounds = array<i64: 1, 1, 32>}]} {
    %c0 = arith.constant 0 : index
    %c0_0 = arith.constant 0 : index
    %c0_1 = arith.constant 0 : index
    %c0_2 = arith.constant 0 : index
    %0 = vector.load %arg1[%c0, %c0_0, %c0_1, %c0_2] : memref<1x20x26x4xf32, #tpu.memory_space<vmem>>, vector<1x20x26x4xf32>
    %1 = vector.shape_cast %0 : vector<1x20x26x4xf32> to vector<20x26x4xf32>
    %cst = arith.constant 0.000000e+00 : f32
    %2 = vector.broadcast %cst : f32 to vector<432x8xf32>
    %3 = vector.extract_strided_slice %1 {offsets = [0, 0, 0], sizes = [18, 24, 4], strides = [1, 1, 1]} : vector<20x26x4xf32> to vector<18x24x4xf32>
    %4 = vector.shape_cast %3 : vector<18x24x4xf32> to vector<432x4xf32>
    %c0_3 = arith.constant 0 : index
    %c0_4 = arith.constant 0 : index
    %c0_5 = arith.constant 0 : index
    %5 = vector.load %arg2[%c0_3, %c0_4, %c0_5] : memref<9x4x8xf32, #tpu.memory_space<vmem>>, vector<1x4x8xf32>
    %6 = vector.shape_cast %5 : vector<1x4x8xf32> to vector<4x8xf32>
    %cst_6 = arith.constant dense<0.000000e+00> : vector<432x8xf32>
    %7 = tpu.matmul %4, %6, %cst_6 {dimension_numbers = #tpu.dot_dimension_numbers<[1], [0], [0], [1], [0, 0, 1, 1], [], []>} : vector<432x4xf32>, vector<4x8xf32>, vector<432x8xf32> -> vector<432x8xf32>
    %8 = arith.addf %2, %7 : vector<432x8xf32>
    %9 = vector.extract_strided_slice %1 {offsets = [0, 1, 0], sizes = [18, 24, 4], strides = [1, 1, 1]} : vector<20x26x4xf32> to vector<18x24x4xf32>
    %10 = vector.shape_cast %9 : vector<18x24x4xf32> to vector<432x4xf32>
    %c1 = arith.constant 1 : index
    %c0_7 = arith.constant 0 : index
    %c0_8 = arith.constant 0 : index
    %11 = vector.load %arg2[%c1, %c0_7, %c0_8] : memref<9x4x8xf32, #tpu.memory_space<vmem>>, vector<1x4x8xf32>
    %12 = vector.shape_cast %11 : vector<1x4x8xf32> to vector<4x8xf32>
    %cst_9 = arith.constant dense<0.000000e+00> : vector<432x8xf32>
    %13 = tpu.matmul %10, %12, %cst_9 {dimension_numbers = #tpu.dot_dimension_numbers<[1], [0], [0], [1], [0, 0, 1, 1], [], []>} : vector<432x4xf32>, vector<4x8xf32>, vector<432x8xf32> -> vector<432x8xf32>
    %14 = arith.addf %8, %13 : vector<432x8xf32>
    %15 = vector.extract_strided_slice %1 {offsets = [0, 2, 0], sizes = [18, 24, 4], strides = [1, 1, 1]} : vector<20x26x4xf32> to vector<18x24x4xf32>
    %16 = vector.shape_cast %15 : vector<18x24x4xf32> to vector<432x4xf32>
    %c2 = arith.constant 2 : index
    %c0_10 = arith.constant 0 : index
    %c0_11 = arith.constant 0 : index
    %17 = vector.load %arg2[%c2, %c0_10, %c0_11] : memref<9x4x8xf32, #tpu.memory_space<vmem>>, vector<1x4x8xf32>
    %18 = vector.shape_cast %17 : vector<1x4x8xf32> to vector<4x8xf32>
    %cst_12 = arith.constant dense<0.000000e+00> : vector<432x8xf32>
    %19 = tpu.matmul %16, %18, %cst_12 {dimension_numbers = #tpu.dot_dimension_numbers<[1], [0], [0], [1], [0, 0, 1, 1], [], []>} : vector<432x4xf32>, vector<4x8xf32>, vector<432x8xf32> -> vector<432x8xf32>
    %20 = arith.addf %14, %19 : vector<432x8xf32>
    %21 = vector.extract_strided_slice %1 {offsets = [1, 0, 0], sizes = [18, 24, 4], strides = [1, 1, 1]} : vector<20x26x4xf32> to vector<18x24x4xf32>
    %22 = vector.shape_cast %21 : vector<18x24x4xf32> to vector<432x4xf32>
    %c3 = arith.constant 3 : index
    %c0_13 = arith.constant 0 : index
    %c0_14 = arith.constant 0 : index
    %23 = vector.load %arg2[%c3, %c0_13, %c0_14] : memref<9x4x8xf32, #tpu.memory_space<vmem>>, vector<1x4x8xf32>
    %24 = vector.shape_cast %23 : vector<1x4x8xf32> to vector<4x8xf32>
    %cst_15 = arith.constant dense<0.000000e+00> : vector<432x8xf32>
    %25 = tpu.matmul %22, %24, %cst_15 {dimension_numbers = #tpu.dot_dimension_numbers<[1], [0], [0], [1], [0, 0, 1, 1], [], []>} : vector<432x4xf32>, vector<4x8xf32>, vector<432x8xf32> -> vector<432x8xf32>
    %26 = arith.addf %20, %25 : vector<432x8xf32>
    %27 = vector.extract_strided_slice %1 {offsets = [1, 1, 0], sizes = [18, 24, 4], strides = [1, 1, 1]} : vector<20x26x4xf32> to vector<18x24x4xf32>
    %28 = vector.shape_cast %27 : vector<18x24x4xf32> to vector<432x4xf32>
    %c4 = arith.constant 4 : index
    %c0_16 = arith.constant 0 : index
    %c0_17 = arith.constant 0 : index
    %29 = vector.load %arg2[%c4, %c0_16, %c0_17] : memref<9x4x8xf32, #tpu.memory_space<vmem>>, vector<1x4x8xf32>
    %30 = vector.shape_cast %29 : vector<1x4x8xf32> to vector<4x8xf32>
    %cst_18 = arith.constant dense<0.000000e+00> : vector<432x8xf32>
    %31 = tpu.matmul %28, %30, %cst_18 {dimension_numbers = #tpu.dot_dimension_numbers<[1], [0], [0], [1], [0, 0, 1, 1], [], []>} : vector<432x4xf32>, vector<4x8xf32>, vector<432x8xf32> -> vector<432x8xf32>
    %32 = arith.addf %26, %31 : vector<432x8xf32>
    %33 = vector.extract_strided_slice %1 {offsets = [1, 2, 0], sizes = [18, 24, 4], strides = [1, 1, 1]} : vector<20x26x4xf32> to vector<18x24x4xf32>
    %34 = vector.shape_cast %33 : vector<18x24x4xf32> to vector<432x4xf32>
    %c5 = arith.constant 5 : index
    %c0_19 = arith.constant 0 : index
    %c0_20 = arith.constant 0 : index
    %35 = vector.load %arg2[%c5, %c0_19, %c0_20] : memref<9x4x8xf32, #tpu.memory_space<vmem>>, vector<1x4x8xf32>
    %36 = vector.shape_cast %35 : vector<1x4x8xf32> to vector<4x8xf32>
    %cst_21 = arith.constant dense<0.000000e+00> : vector<432x8xf32>
    %37 = tpu.matmul %34, %36, %cst_21 {dimension_numbers = #tpu.dot_dimension_numbers<[1], [0], [0], [1], [0, 0, 1, 1], [], []>} : vector<432x4xf32>, vector<4x8xf32>, vector<432x8xf32> -> vector<432x8xf32>
    %38 = arith.addf %32, %37 : vector<432x8xf32>
    %39 = vector.extract_strided_slice %1 {offsets = [2, 0, 0], sizes = [18, 24, 4], strides = [1, 1, 1]} : vector<20x26x4xf32> to vector<18x24x4xf32>
    %40 = vector.shape_cast %39 : vector<18x24x4xf32> to vector<432x4xf32>
    %c6 = arith.constant 6 : index
    %c0_22 = arith.constant 0 : index
    %c0_23 = arith.constant 0 : index
    %41 = vector.load %arg2[%c6, %c0_22, %c0_23] : memref<9x4x8xf32, #tpu.memory_space<vmem>>, vector<1x4x8xf32>
    %42 = vector.shape_cast %41 : vector<1x4x8xf32> to vector<4x8xf32>
    %cst_24 = arith.constant dense<0.000000e+00> : vector<432x8xf32>
    %43 = tpu.matmul %40, %42, %cst_24 {dimension_numbers = #tpu.dot_dimension_numbers<[1], [0], [0], [1], [0, 0, 1, 1], [], []>} : vector<432x4xf32>, vector<4x8xf32>, vector<432x8xf32> -> vector<432x8xf32>
    %44 = arith.addf %38, %43 : vector<432x8xf32>
    %45 = vector.extract_strided_slice %1 {offsets = [2, 1, 0], sizes = [18, 24, 4], strides = [1, 1, 1]} : vector<20x26x4xf32> to vector<18x24x4xf32>
    %46 = vector.shape_cast %45 : vector<18x24x4xf32> to vector<432x4xf32>
    %c7 = arith.constant 7 : index
    %c0_25 = arith.constant 0 : index
    %c0_26 = arith.constant 0 : index
    %47 = vector.load %arg2[%c7, %c0_25, %c0_26] : memref<9x4x8xf32, #tpu.memory_space<vmem>>, vector<1x4x8xf32>
    %48 = vector.shape_cast %47 : vector<1x4x8xf32> to vector<4x8xf32>
    %cst_27 = arith.constant dense<0.000000e+00> : vector<432x8xf32>
    %49 = tpu.matmul %46, %48, %cst_27 {dimension_numbers = #tpu.dot_dimension_numbers<[1], [0], [0], [1], [0, 0, 1, 1], [], []>} : vector<432x4xf32>, vector<4x8xf32>, vector<432x8xf32> -> vector<432x8xf32>
    %50 = arith.addf %44, %49 : vector<432x8xf32>
    %51 = vector.extract_strided_slice %1 {offsets = [2, 2, 0], sizes = [18, 24, 4], strides = [1, 1, 1]} : vector<20x26x4xf32> to vector<18x24x4xf32>
    %52 = vector.shape_cast %51 : vector<18x24x4xf32> to vector<432x4xf32>
    %c8 = arith.constant 8 : index
    %c0_28 = arith.constant 0 : index
    %c0_29 = arith.constant 0 : index
    %53 = vector.load %arg2[%c8, %c0_28, %c0_29] : memref<9x4x8xf32, #tpu.memory_space<vmem>>, vector<1x4x8xf32>
    %54 = vector.shape_cast %53 : vector<1x4x8xf32> to vector<4x8xf32>
    %cst_30 = arith.constant dense<0.000000e+00> : vector<432x8xf32>
    %55 = tpu.matmul %52, %54, %cst_30 {dimension_numbers = #tpu.dot_dimension_numbers<[1], [0], [0], [1], [0, 0, 1, 1], [], []>} : vector<432x4xf32>, vector<4x8xf32>, vector<432x8xf32> -> vector<432x8xf32>
    %56 = arith.addf %50, %55 : vector<432x8xf32>
    %c0_31 = arith.constant 0 : index
    %c0_32 = arith.constant 0 : index
    %57 = vector.load %arg3[%c0_31, %c0_32] : memref<1x8xf32, #tpu.memory_space<vmem>>, vector<1x8xf32>
    %58 = vector.broadcast %57 : vector<1x8xf32> to vector<432x8xf32>
    %59 = arith.addf %56, %58 : vector<432x8xf32>
    %cst_33 = arith.constant 0.000000e+00 : f32
    %60 = vector.broadcast %cst_33 : f32 to vector<432x8xf32>
    %61 = arith.maximumf %59, %60 : vector<432x8xf32>
    %62 = vector.shape_cast %61 : vector<432x8xf32> to vector<18x24x8xf32>
    %63 = tpu.iota {dimensions = array<i32: 0>} : vector<18x24x8xi32>
    %64 = tpu.iota {dimensions = array<i32: 1>} : vector<18x24x8xi32>
    %c1_i32 = arith.constant 1 : i32
    %65 = vector.broadcast %c1_i32 : i32 to vector<18x24x8xi32>
    %66 = arith.cmpi sge, %63, %65 : vector<18x24x8xi32>
    %c16_i32 = arith.constant 16 : i32
    %67 = vector.broadcast %c16_i32 : i32 to vector<18x24x8xi32>
    %68 = arith.cmpi sle, %63, %67 : vector<18x24x8xi32>
    %69 = arith.andi %66, %68 : vector<18x24x8xi1>
    %c1_i32_34 = arith.constant 1 : i32
    %70 = vector.broadcast %c1_i32_34 : i32 to vector<18x24x8xi32>
    %71 = arith.cmpi sge, %64, %70 : vector<18x24x8xi32>
    %72 = arith.andi %69, %71 : vector<18x24x8xi1>
    %c16_i32_35 = arith.constant 16 : i32
    %73 = vector.broadcast %c16_i32_35 : i32 to vector<18x24x8xi32>
    %74 = arith.cmpi sle, %64, %73 : vector<18x24x8xi32>
    %75 = arith.andi %72, %74 : vector<18x24x8xi1>
    %cst_36 = arith.constant 0.000000e+00 : f32
    %76 = vector.broadcast %cst_36 : f32 to vector<18x24x8xf32>
    %77 = arith.select %75, %62, %76 : vector<18x24x8xi1>, vector<18x24x8xf32>
    %78 = vector.shape_cast %77 : vector<18x24x8xf32> to vector<9x2x24x8xf32>
    %cst_37 = arith.constant 0.000000e+00 : f32
    %79 = vector.broadcast %cst_37 : f32 to vector<128x16xf32>
    %80 = vector.extract_strided_slice %78 {offsets = [0, 0, 0, 0], sizes = [8, 1, 16, 8], strides = [1, 1, 1, 1]} : vector<9x2x24x8xf32> to vector<8x1x16x8xf32>
    %81 = vector.shape_cast %80 : vector<8x1x16x8xf32> to vector<8x16x8xf32>
    %82 = vector.shape_cast %81 : vector<8x16x8xf32> to vector<128x8xf32>
    %c0_38 = arith.constant 0 : index
    %c0_39 = arith.constant 0 : index
    %c0_40 = arith.constant 0 : index
    %83 = vector.load %arg4[%c0_38, %c0_39, %c0_40] : memref<9x8x16xf32, #tpu.memory_space<vmem>>, vector<1x8x16xf32>
    %84 = vector.shape_cast %83 : vector<1x8x16xf32> to vector<8x16xf32>
    %cst_41 = arith.constant dense<0.000000e+00> : vector<128x16xf32>
    %85 = tpu.matmul %82, %84, %cst_41 {dimension_numbers = #tpu.dot_dimension_numbers<[1], [0], [0], [1], [0, 0, 1, 1], [], []>} : vector<128x8xf32>, vector<8x16xf32>, vector<128x16xf32> -> vector<128x16xf32>
    %86 = arith.addf %79, %85 : vector<128x16xf32>
    %87 = vector.extract_strided_slice %78 {offsets = [0, 0, 1, 0], sizes = [8, 1, 16, 8], strides = [1, 1, 1, 1]} : vector<9x2x24x8xf32> to vector<8x1x16x8xf32>
    %88 = vector.shape_cast %87 : vector<8x1x16x8xf32> to vector<8x16x8xf32>
    %89 = vector.shape_cast %88 : vector<8x16x8xf32> to vector<128x8xf32>
    %c1_42 = arith.constant 1 : index
    %c0_43 = arith.constant 0 : index
    %c0_44 = arith.constant 0 : index
    %90 = vector.load %arg4[%c1_42, %c0_43, %c0_44] : memref<9x8x16xf32, #tpu.memory_space<vmem>>, vector<1x8x16xf32>
    %91 = vector.shape_cast %90 : vector<1x8x16xf32> to vector<8x16xf32>
    %cst_45 = arith.constant dense<0.000000e+00> : vector<128x16xf32>
    %92 = tpu.matmul %89, %91, %cst_45 {dimension_numbers = #tpu.dot_dimension_numbers<[1], [0], [0], [1], [0, 0, 1, 1], [], []>} : vector<128x8xf32>, vector<8x16xf32>, vector<128x16xf32> -> vector<128x16xf32>
    %93 = arith.addf %86, %92 : vector<128x16xf32>
    %94 = vector.extract_strided_slice %78 {offsets = [0, 0, 2, 0], sizes = [8, 1, 16, 8], strides = [1, 1, 1, 1]} : vector<9x2x24x8xf32> to vector<8x1x16x8xf32>
    %95 = vector.shape_cast %94 : vector<8x1x16x8xf32> to vector<8x16x8xf32>
    %96 = vector.shape_cast %95 : vector<8x16x8xf32> to vector<128x8xf32>
    %c2_46 = arith.constant 2 : index
    %c0_47 = arith.constant 0 : index
    %c0_48 = arith.constant 0 : index
    %97 = vector.load %arg4[%c2_46, %c0_47, %c0_48] : memref<9x8x16xf32, #tpu.memory_space<vmem>>, vector<1x8x16xf32>
    %98 = vector.shape_cast %97 : vector<1x8x16xf32> to vector<8x16xf32>
    %cst_49 = arith.constant dense<0.000000e+00> : vector<128x16xf32>
    %99 = tpu.matmul %96, %98, %cst_49 {dimension_numbers = #tpu.dot_dimension_numbers<[1], [0], [0], [1], [0, 0, 1, 1], [], []>} : vector<128x8xf32>, vector<8x16xf32>, vector<128x16xf32> -> vector<128x16xf32>
    %100 = arith.addf %93, %99 : vector<128x16xf32>
    %101 = vector.extract_strided_slice %78 {offsets = [0, 1, 0, 0], sizes = [8, 1, 16, 8], strides = [1, 1, 1, 1]} : vector<9x2x24x8xf32> to vector<8x1x16x8xf32>
    %102 = vector.shape_cast %101 : vector<8x1x16x8xf32> to vector<8x16x8xf32>
    %103 = vector.shape_cast %102 : vector<8x16x8xf32> to vector<128x8xf32>
    %c3_50 = arith.constant 3 : index
    %c0_51 = arith.constant 0 : index
    %c0_52 = arith.constant 0 : index
    %104 = vector.load %arg4[%c3_50, %c0_51, %c0_52] : memref<9x8x16xf32, #tpu.memory_space<vmem>>, vector<1x8x16xf32>
    %105 = vector.shape_cast %104 : vector<1x8x16xf32> to vector<8x16xf32>
    %cst_53 = arith.constant dense<0.000000e+00> : vector<128x16xf32>
    %106 = tpu.matmul %103, %105, %cst_53 {dimension_numbers = #tpu.dot_dimension_numbers<[1], [0], [0], [1], [0, 0, 1, 1], [], []>} : vector<128x8xf32>, vector<8x16xf32>, vector<128x16xf32> -> vector<128x16xf32>
    %107 = arith.addf %100, %106 : vector<128x16xf32>
    %108 = vector.extract_strided_slice %78 {offsets = [0, 1, 1, 0], sizes = [8, 1, 16, 8], strides = [1, 1, 1, 1]} : vector<9x2x24x8xf32> to vector<8x1x16x8xf32>
    %109 = vector.shape_cast %108 : vector<8x1x16x8xf32> to vector<8x16x8xf32>
    %110 = vector.shape_cast %109 : vector<8x16x8xf32> to vector<128x8xf32>
    %c4_54 = arith.constant 4 : index
    %c0_55 = arith.constant 0 : index
    %c0_56 = arith.constant 0 : index
    %111 = vector.load %arg4[%c4_54, %c0_55, %c0_56] : memref<9x8x16xf32, #tpu.memory_space<vmem>>, vector<1x8x16xf32>
    %112 = vector.shape_cast %111 : vector<1x8x16xf32> to vector<8x16xf32>
    %cst_57 = arith.constant dense<0.000000e+00> : vector<128x16xf32>
    %113 = tpu.matmul %110, %112, %cst_57 {dimension_numbers = #tpu.dot_dimension_numbers<[1], [0], [0], [1], [0, 0, 1, 1], [], []>} : vector<128x8xf32>, vector<8x16xf32>, vector<128x16xf32> -> vector<128x16xf32>
    %114 = arith.addf %107, %113 : vector<128x16xf32>
    %115 = vector.extract_strided_slice %78 {offsets = [0, 1, 2, 0], sizes = [8, 1, 16, 8], strides = [1, 1, 1, 1]} : vector<9x2x24x8xf32> to vector<8x1x16x8xf32>
    %116 = vector.shape_cast %115 : vector<8x1x16x8xf32> to vector<8x16x8xf32>
    %117 = vector.shape_cast %116 : vector<8x16x8xf32> to vector<128x8xf32>
    %c5_58 = arith.constant 5 : index
    %c0_59 = arith.constant 0 : index
    %c0_60 = arith.constant 0 : index
    %118 = vector.load %arg4[%c5_58, %c0_59, %c0_60] : memref<9x8x16xf32, #tpu.memory_space<vmem>>, vector<1x8x16xf32>
    %119 = vector.shape_cast %118 : vector<1x8x16xf32> to vector<8x16xf32>
    %cst_61 = arith.constant dense<0.000000e+00> : vector<128x16xf32>
    %120 = tpu.matmul %117, %119, %cst_61 {dimension_numbers = #tpu.dot_dimension_numbers<[1], [0], [0], [1], [0, 0, 1, 1], [], []>} : vector<128x8xf32>, vector<8x16xf32>, vector<128x16xf32> -> vector<128x16xf32>
    %121 = arith.addf %114, %120 : vector<128x16xf32>
    %122 = vector.extract_strided_slice %78 {offsets = [1, 0, 0, 0], sizes = [8, 1, 16, 8], strides = [1, 1, 1, 1]} : vector<9x2x24x8xf32> to vector<8x1x16x8xf32>
    %123 = vector.shape_cast %122 : vector<8x1x16x8xf32> to vector<8x16x8xf32>
    %124 = vector.shape_cast %123 : vector<8x16x8xf32> to vector<128x8xf32>
    %c6_62 = arith.constant 6 : index
    %c0_63 = arith.constant 0 : index
    %c0_64 = arith.constant 0 : index
    %125 = vector.load %arg4[%c6_62, %c0_63, %c0_64] : memref<9x8x16xf32, #tpu.memory_space<vmem>>, vector<1x8x16xf32>
    %126 = vector.shape_cast %125 : vector<1x8x16xf32> to vector<8x16xf32>
    %cst_65 = arith.constant dense<0.000000e+00> : vector<128x16xf32>
    %127 = tpu.matmul %124, %126, %cst_65 {dimension_numbers = #tpu.dot_dimension_numbers<[1], [0], [0], [1], [0, 0, 1, 1], [], []>} : vector<128x8xf32>, vector<8x16xf32>, vector<128x16xf32> -> vector<128x16xf32>
    %128 = arith.addf %121, %127 : vector<128x16xf32>
    %129 = vector.extract_strided_slice %78 {offsets = [1, 0, 1, 0], sizes = [8, 1, 16, 8], strides = [1, 1, 1, 1]} : vector<9x2x24x8xf32> to vector<8x1x16x8xf32>
    %130 = vector.shape_cast %129 : vector<8x1x16x8xf32> to vector<8x16x8xf32>
    %131 = vector.shape_cast %130 : vector<8x16x8xf32> to vector<128x8xf32>
    %c7_66 = arith.constant 7 : index
    %c0_67 = arith.constant 0 : index
    %c0_68 = arith.constant 0 : index
    %132 = vector.load %arg4[%c7_66, %c0_67, %c0_68] : memref<9x8x16xf32, #tpu.memory_space<vmem>>, vector<1x8x16xf32>
    %133 = vector.shape_cast %132 : vector<1x8x16xf32> to vector<8x16xf32>
    %cst_69 = arith.constant dense<0.000000e+00> : vector<128x16xf32>
    %134 = tpu.matmul %131, %133, %cst_69 {dimension_numbers = #tpu.dot_dimension_numbers<[1], [0], [0], [1], [0, 0, 1, 1], [], []>} : vector<128x8xf32>, vector<8x16xf32>, vector<128x16xf32> -> vector<128x16xf32>
    %135 = arith.addf %128, %134 : vector<128x16xf32>
    %136 = vector.extract_strided_slice %78 {offsets = [1, 0, 2, 0], sizes = [8, 1, 16, 8], strides = [1, 1, 1, 1]} : vector<9x2x24x8xf32> to vector<8x1x16x8xf32>
    %137 = vector.shape_cast %136 : vector<8x1x16x8xf32> to vector<8x16x8xf32>
    %138 = vector.shape_cast %137 : vector<8x16x8xf32> to vector<128x8xf32>
    %c8_70 = arith.constant 8 : index
    %c0_71 = arith.constant 0 : index
    %c0_72 = arith.constant 0 : index
    %139 = vector.load %arg4[%c8_70, %c0_71, %c0_72] : memref<9x8x16xf32, #tpu.memory_space<vmem>>, vector<1x8x16xf32>
    %140 = vector.shape_cast %139 : vector<1x8x16xf32> to vector<8x16xf32>
    %cst_73 = arith.constant dense<0.000000e+00> : vector<128x16xf32>
    %141 = tpu.matmul %138, %140, %cst_73 {dimension_numbers = #tpu.dot_dimension_numbers<[1], [0], [0], [1], [0, 0, 1, 1], [], []>} : vector<128x8xf32>, vector<8x16xf32>, vector<128x16xf32> -> vector<128x16xf32>
    %142 = arith.addf %135, %141 : vector<128x16xf32>
    %c0_74 = arith.constant 0 : index
    %c0_75 = arith.constant 0 : index
    %143 = vector.load %arg5[%c0_74, %c0_75] : memref<1x16xf32, #tpu.memory_space<vmem>>, vector<1x16xf32>
    %144 = vector.broadcast %143 : vector<1x16xf32> to vector<128x16xf32>
    %145 = arith.addf %142, %144 : vector<128x16xf32>
    %cst_76 = arith.constant 0.000000e+00 : f32
    %146 = vector.broadcast %cst_76 : f32 to vector<128x16xf32>
    %147 = arith.maximumf %145, %146 : vector<128x16xf32>
    %148 = tpu.iota {dimensions = array<i32: 0>} : vector<128x16xi32>
    %c1_i32_77 = arith.constant 1 : i32
    %149 = vector.broadcast %c1_i32_77 : i32 to vector<128x16xi32>
    %150 = arith.andi %148, %149 : vector<128x16xi32>
    %c0_i32 = arith.constant 0 : i32
    %151 = vector.broadcast %c0_i32 : i32 to vector<128x16xi32>
    %152 = arith.cmpi eq, %150, %151 : vector<128x16xi32>
    %cst_78 = arith.constant 0.000000e+00 : f32
    %153 = vector.broadcast %cst_78 : f32 to vector<128x16xf32>
    %154 = arith.select %152, %147, %153 : vector<128x16xi1>, vector<128x16xf32>
    %cst_79 = arith.constant dense<0.000000e+00> : vector<16xf32>
    %155 = vector.multi_reduction <add>, %154, %cst_79 [0] : vector<128x16xf32> to vector<16xf32>
    %156 = vector.shape_cast %155 : vector<16xf32> to vector<1x16xf32>
    %cst_80 = arith.constant 1.562500e-02 : f32
    %157 = vector.broadcast %cst_80 : f32 to vector<1x16xf32>
    %158 = arith.mulf %156, %157 : vector<1x16xf32>
    %c0_81 = arith.constant 0 : index
    %c0_82 = arith.constant 0 : index
    %159 = vector.load %arg6[%c0_81, %c0_82] : memref<16x32xf32, #tpu.memory_space<vmem>>, vector<16x32xf32>
    %cst_83 = arith.constant dense<0.000000e+00> : vector<1x32xf32>
    %160 = tpu.matmul %158, %159, %cst_83 {dimension_numbers = #tpu.dot_dimension_numbers<[1], [0], [0], [1], [0, 0, 1, 1], [], []>} : vector<1x16xf32>, vector<16x32xf32>, vector<1x32xf32> -> vector<1x32xf32>
    %c0_84 = arith.constant 0 : index
    %c0_85 = arith.constant 0 : index
    %161 = vector.load %arg7[%c0_84, %c0_85] : memref<1x32xf32, #tpu.memory_space<vmem>>, vector<1x32xf32>
    %162 = arith.addf %160, %161 : vector<1x32xf32>
    %cst_86 = arith.constant 0.000000e+00 : f32
    %163 = vector.broadcast %cst_86 : f32 to vector<1x32xf32>
    %164 = arith.maximumf %162, %163 : vector<1x32xf32>
    %c0_87 = arith.constant 0 : index
    %c0_88 = arith.constant 0 : index
    %165 = vector.load %arg8[%c0_87, %c0_88] : memref<32x32xf32, #tpu.memory_space<vmem>>, vector<32x32xf32>
    %cst_89 = arith.constant dense<0.000000e+00> : vector<1x32xf32>
    %166 = tpu.matmul %164, %165, %cst_89 {dimension_numbers = #tpu.dot_dimension_numbers<[1], [0], [0], [1], [0, 0, 1, 1], [], []>} : vector<1x32xf32>, vector<32x32xf32>, vector<1x32xf32> -> vector<1x32xf32>
    %c0_90 = arith.constant 0 : index
    %c0_91 = arith.constant 0 : index
    %167 = vector.load %arg9[%c0_90, %c0_91] : memref<1x32xf32, #tpu.memory_space<vmem>>, vector<1x32xf32>
    %168 = arith.addf %166, %167 : vector<1x32xf32>
    %cst_92 = arith.constant 0.000000e+00 : f32
    %169 = vector.broadcast %cst_92 : f32 to vector<1x32xf32>
    %170 = arith.maximumf %168, %169 : vector<1x32xf32>
    %c0_93 = arith.constant 0 : index
    %c0_94 = arith.constant 0 : index
    %171 = vector.load %arg10[%c0_93, %c0_94] : memref<32x32xf32, #tpu.memory_space<vmem>>, vector<32x32xf32>
    %cst_95 = arith.constant dense<0.000000e+00> : vector<1x32xf32>
    %172 = tpu.matmul %170, %171, %cst_95 {dimension_numbers = #tpu.dot_dimension_numbers<[1], [0], [0], [1], [0, 0, 1, 1], [], []>} : vector<1x32xf32>, vector<32x32xf32>, vector<1x32xf32> -> vector<1x32xf32>
    %c0_96 = arith.constant 0 : index
    %c0_97 = arith.constant 0 : index
    %173 = vector.load %arg11[%c0_96, %c0_97] : memref<1x32xf32, #tpu.memory_space<vmem>>, vector<1x32xf32>
    %174 = arith.addf %172, %173 : vector<1x32xf32>
    %175 = vector.shape_cast %174 : vector<1x32xf32> to vector<1x1x32xf32>
    %c0_98 = arith.constant 0 : index
    %c0_99 = arith.constant 0 : index
    %c0_100 = arith.constant 0 : index
    %176 = vector.load %arg12[%c0_98, %c0_99, %c0_100] : memref<1x1x32xf32, #tpu.memory_space<vmem>>, vector<1x1x32xf32>
    tpu.vector_store %arg12[%c0_98, %c0_99, %c0_100], %175 {strides = array<i32>} : memref<1x1x32xf32, #tpu.memory_space<vmem>>, vector<1x1x32xf32>,
    return
  }
  func.func @transform_0(%arg0: i32) -> (i32, i32, i32, i32) {
    %c0_i32 = arith.constant 0 : i32
    %c0_i32_0 = arith.constant 0 : i32
    %c0_i32_1 = arith.constant 0 : i32
    %c0_i32_2 = arith.constant 0 : i32
    return %arg0, %c0_i32, %c0_i32_0, %c0_i32_1 : i32, i32, i32, i32
  }
  func.func @transform_1(%arg0: i32) -> (i32, i32, i32) {
    %c0_i32 = arith.constant 0 : i32
    %c0_i32_0 = arith.constant 0 : i32
    %c0_i32_1 = arith.constant 0 : i32
    %c0_i32_2 = arith.constant 0 : i32
    return %c0_i32, %c0_i32_0, %c0_i32_1 : i32, i32, i32
  }
  func.func @transform_2(%arg0: i32) -> (i32, i32) {
    %c0_i32 = arith.constant 0 : i32
    %c0_i32_0 = arith.constant 0 : i32
    %c0_i32_1 = arith.constant 0 : i32
    return %c0_i32, %c0_i32_0 : i32, i32
  }
  func.func @transform_3(%arg0: i32) -> (i32, i32, i32) {
    %c0_i32 = arith.constant 0 : i32
    %c0_i32_0 = arith.constant 0 : i32
    %c0_i32_1 = arith.constant 0 : i32
    %c0_i32_2 = arith.constant 0 : i32
    return %c0_i32, %c0_i32_0, %c0_i32_1 : i32, i32, i32
  }
  func.func @transform_4(%arg0: i32) -> (i32, i32) {
    %c0_i32 = arith.constant 0 : i32
    %c0_i32_0 = arith.constant 0 : i32
    %c0_i32_1 = arith.constant 0 : i32
    return %c0_i32, %c0_i32_0 : i32, i32
  }
  func.func @transform_5(%arg0: i32) -> (i32, i32) {
    %c0_i32 = arith.constant 0 : i32
    %c0_i32_0 = arith.constant 0 : i32
    %c0_i32_1 = arith.constant 0 : i32
    return %c0_i32, %c0_i32_0 : i32, i32
  }
  func.func @transform_6(%arg0: i32) -> (i32, i32) {
    %c0_i32 = arith.constant 0 : i32
    %c0_i32_0 = arith.constant 0 : i32
    %c0_i32_1 = arith.constant 0 : i32
    return %c0_i32, %c0_i32_0 : i32, i32
  }
  func.func @transform_7(%arg0: i32) -> (i32, i32) {
    %c0_i32 = arith.constant 0 : i32
    %c0_i32_0 = arith.constant 0 : i32
    %c0_i32_1 = arith.constant 0 : i32
    return %c0_i32, %c0_i32_0 : i32, i32
  }
  func.func @transform_8(%arg0: i32) -> (i32, i32) {
    %c0_i32 = arith.constant 0 : i32
    %c0_i32_0 = arith.constant 0 : i32
    %c0_i32_1 = arith.constant 0 : i32
    return %c0_i32, %c0_i32_0 : i32, i32
  }
  func.func @transform_9(%arg0: i32) -> (i32, i32) {
    %c0_i32 = arith.constant 0 : i32
    %c0_i32_0 = arith.constant 0 : i32
    %c0_i32_1 = arith.constant 0 : i32
    return %c0_i32, %c0_i32_0 : i32, i32
  }
  func.func @transform_10(%arg0: i32) -> (i32, i32) {
    %c0_i32 = arith.constant 0 : i32
    %c0_i32_0 = arith.constant 0 : i32
    %c0_i32_1 = arith.constant 0 : i32
    return %c0_i32, %c0_i32_0 : i32, i32
  }
  func.func @transform_11(%arg0: i32) -> (i32, i32, i32) {
    %c0_i32 = arith.constant 0 : i32
    %c0_i32_0 = arith.constant 0 : i32
    %c0_i32_1 = arith.constant 0 : i32
    return %arg0, %c0_i32, %c0_i32_0 : i32, i32, i32
  }
}

</mosaic_0001>

<bundles_post_ra>
// kernel: barlow_twins_forward.1
= control target key start
LH: loop header
LB: loop body
LE: loop exit
PB: predicated region body
PF: predicated region fallthrough
CT: control target
= control target key end

     0   :  { %s13406_s0 = inlined_call_operand.vmem [shape: f32[2,20,26,4], index: 0, kind: input, shape index: {}]   ;;  %s13407_s1 = inlined_call_operand.vmem [shape: f32[9,4,8], index: 1, kind: input, shape index: {}]   ;;  %s13408_s2 = inlined_call_operand.vmem [shape: f32[1,8], index: 2, kind: input, shape index: {}]   ;;  %s13409_s3 = inlined_call_operand.vmem [shape: f32[9,8,16], index: 3, kind: input, shape index: {}]   ;;  %s13410_s4 = inlined_call_operand.vmem [shape: f32[1,16], index: 4, kind: input, shape index: {}]   ;;  %s13411_s5 = inlined_call_operand.vmem [shape: f32[16,32], index: 5, kind: input, shape index: {}]   ;;  %s13412_s6 = inlined_call_operand.vmem [shape: f32[1,32], index: 6, kind: input, shape index: {}]   ;;  %s13413_s7 = inlined_call_operand.vmem [shape: f32[32,32], index: 7, kind: input, shape index: {}]   ;;  %s13414_s8 = inlined_call_operand.vmem [shape: f32[1,32], index: 8, kind: input, shape index: {}]   ;;  %s13415_s9 = inlined_call_operand.vmem [shape: f32[32,32], index: 9, kind: input, shape index: {}]   ;;  %s13416_s10 = inlined_call_operand.vmem [shape: f32[1,32], index: 10, kind: input, shape index: {}]   ;;  %s13417_s11 = inlined_call_operand.hbm [shape: f32[2,1,32], index: 11, kind: output, shape index: {}]  }
   0x1   :  { %13625 = sst [smem:[#allocation110_spill]] %s13406_s0 }
   0x2   :  { %16 = vsyncpa [#allocation3], 0 }
   0x3   :  { %18 = vsyncpa [#allocation3 + $0x1], 0  ;;  %s9618_s17 = smov 0   ;;  %s9620_s18 = smov 0  }
   0x4   :  { %s9622_s19 = smov 0   ;;  %s9624_s20 = smov 0  }
   0x5 LB: > { %s9639_s21 = sadd.s32 4294967295, %s9553_s20   ;;  %s7063_s22 = sadd.s32 4294967294, %s9553_s20   ;;  %s9553_s20 = sphi %s9624_s20, %s14269_s20   ;;  %s9549_s19 = sphi %s9622_s19, %s14268_s19   ;;  %s9545_s18 = sphi %s9620_s18, %s14267_s18   ;;  %s9541_s17 = sphi %s9618_s17, %s14266_s17  }
   0x6   : > { %s9643_s23 = sadd.s32 1, %s9553_s20   ;;  %s267_s24 = sadd.s32 1, %s9549_s19 }
   0x7   : > { %s264_s25 = ssub.s32 %s9553_s20, %s9643_s23  ;;  %p277_p0 = scmp.ne.s32.totalorder %s9549_s19, %s9545_s18 }
   0x8   : > { %p265_p1 = scmp.eq.s32.totalorder %s264_s25, 0  ;;  %p278_p2 = scmp.eq.s32.totalorder %s9639_s21, 1 }
   0x9   : > { %p283_p3 = scmp.ne.s32.totalorder %s9545_s18, %s9541_s17  ;;  %p284_p4 = scmp.eq.s32.totalorder %s7063_s22, 1 }
   0xa   : > { %s9654_s26 = scalar_select %p265_p1, %s9549_s19, %s267_s24  }
   0xb   : > { %p9656_p5 = por %p278_p2, %p277_p0  ;;  %p9660_p6 = por %p284_p4, %p283_p3 }
   0xc   : > { %p7066_p7 = scmp.ge.s32.totalorder %s9553_s20, 1  ;;  %p340_p8 = scmp.lt.s32.totalorder %s9553_s20, 3 }
   0xe   : > { %p341_p9 = pnand %p7066_p7, %p340_p8 }
  0x10   : > { %344 = sbr.rel (%p341_p9) target bundleno = 1747 (0x6d3), region = 64 }
  0x15   : > { %v7068_v0 = vld [vmem:[%s13407_s1 + $0x4] sm:$0xf]  ;;  %vm775_vm0 = vcmask 1043456   ;;  %v464_v1 = vld [vmem:[%s13407_s1] sm:$0xf]  ;;  %p379_p10 = scmp.lt.s32.totalorder %s9639_s21, 1 }
  0x16   : > { %8390 = vmatprep.subr.msk.mxu0 %vm775_vm0, %v7068_v0  ;;  %8473 = vmatprep.subr.msk.mxu1 %vm775_vm0, %v464_v1  ;;  %v7179_v2 = vld [vmem:[%s13407_s1 + $0x8] sm:$0xf]  ;;  %v7235_v3 = vld [vmem:[%s13407_s1 + $0xc] sm:$0xf]  ;;  %vm666_vm1 = vcmask 31744   ;;  %s13628_s0 = sld [smem:[#allocation110_spill]] }
  0x17   : > { %8391 = vmatpush3.msk.msra.mxu0 %vm775_vm0, %v7068_v0  ;;  %s380_s24 = scalar_select %p379_p10, %s9639_s21, 1  ;;  %8474 = vmatpush3.msk.msra.mxu1 %vm775_vm0, %v464_v1  ;;  %vm537_vm2 = vcmask 1046528   ;;  %v9742_v24 = vld [vmem:[%s13407_s1 + $0x10] sm:$0xf]  ;;  %vm1554_vm3 = vcmask 1045504   ;;  %vm4826_vm4 = vcmask 64512  }
  0x18   : > { %8556 = vmatprep.subr.msk.mxu0 %vm775_vm0, %v7179_v2  ;;  %8639 = vmatprep.subr.msk.mxu1 %vm775_vm0, %v7235_v3  ;;  %vm9556_vm7 = vmmov 0   ;;  %vm6719_vm10 = vcmask 130048   ;;  %s7726_s13 = sshll.u32 %s9639_s21, 4  ;;  %s9557_s21 = smov [#allocation2]  }
  0x19   : > { %s9400_s25 = smul.u32 640, %s380_s24  ;;  %s9497_s29 = sshll.u32 %s9557_s21, 4  ;;  %s9498_s29 = int_to_ptr.vmem [resolvable:$false] %s9497_s29 }
  0x1a   : > { %s9499_s30 = scalar_lea.vmem %s9498_s29, 32 }
  0x1c   : > { %s9689_s12 = scalar_lea.vmem %s13628_s0, %s9400_s25  ;;  %s377_s25 = sand.u32 1, %s9545_s18  }
  0x1d   : > { %v9692_v4 = vld [vmem:[%s9689_s12] sm:$0xff]  ;;  %v9695_v5 = vld [vmem:[%s9689_s12 + $0x8] sm:$0xff]  ;;  %v9698_v6 = vld [vmem:[%s9689_s12 + $0x10] sm:$0xff]  ;;  %s378_s14 = scalar_lea.vmem [#allocation2], %s377_s25  ;;  %s6996_s24 = scalar_lea.sflag [#allocation3], %s377_s25 }
  0x1e   : > { %v538_v7 = vrot.slane %v9692_v4, 1  ;;  %v539_v8 = vrot.slane %v9695_v5, 1  ;;  %8475 = vmatprep.mubr.msk.f32.mxu1 %vm666_vm1, %v9692_v4  ;;  %v541_v9 = vrot.slane %v9698_v6, 1  ;;  %v9706_v10 = vld [vmem:[%s9689_s12 + $0x18] sm:$0x3]  ;;  %v9712_v12 = vld [vmem:[%s9689_s12 + $0x20] sm:$0xff] }
  0x1f   : > { %8476 = vmatmul.mubr.msk.f32.vlgmr.msra.gmra.mxu1 %vm666_vm1, %v9695_v5  ;;  %v543_v11 = vrot.slane %v9706_v10, 1  ;;  %v9715_v13 = vld [vmem:[%s9689_s12 + $0x28] sm:$0xff]  ;;  %v9718_v14 = vld [vmem:[%s9689_s12 + $0x30] sm:$0xff]  ;;  %v545_v17 = vrot.slane %v9712_v12, 1  ;;  %v9727_v19 = vld [vmem:[%s9689_s12 + $0x38] sm:$0x3] }
  0x20   : > { %v540_v15 = vsel %vm537_vm2, %v538_v7, %v539_v8  ;;  %v542_v16 = vsel %vm537_vm2, %v539_v8, %v541_v9  ;;  %8478 = vmatprep.mubr.msk.f32.mxu1 %vm666_vm1, %v9698_v6  ;;  %v546_v18 = vrot.slane %v9715_v13, 1  ;;  %8640 = vmatpush3.msk.msra.mxu1 %vm775_vm0, %v7235_v3  ;;  %v548_v21 = vrot.slane %v9718_v14, 1  ;;  %v9734_v22 = vld [vmem:[%s9689_s12 + $0x40] sm:$0xff]  ;;  %v9737_v23 = vld [vmem:[%s9689_s12 + $0x48] sm:$0xff]  ;;  %v9759_v30 = vld [vmem:[%s9689_s12 + $0x50] sm:$0xff]  ;;  %s7008_s15 = sshll.u32 %s378_s14, 4  ;;  %s7009_s15 = int_to_ptr.vmem [resolvable:$true] %s7008_s15 }
  0x21   : > { %8392 = vmatprep.mubr.msk.f32.mxu0 %vm666_vm1, %v540_v15  ;;  %v544_v20 = vsel %vm537_vm2, %v541_v9, %v543_v11  ;;  %v550_v26 = vrot.slane %v9727_v19, 1  ;;  %v552_v28 = vrot.slane %v9734_v22, 1  ;;  %v553_v29 = vrot.slane %v9737_v23, 1  ;;  %v9766_v31 = vld [vmem:[%s9689_s12 + $0x58] sm:$0x3]  ;;  %v9783_v36 = vld [vmem:[%s9689_s12 + $0x60] sm:$0xff]  ;;  %p9500_p0 = scmp.lt.s32.totalorder %s7009_s15, %s9498_s29 }
  0x22   : > { %8393 = vmatmul.mubr.msk.f32.vlgmr.msra.gmra.mxu0 %vm666_vm1, %v542_v16  ;;  %v9748_v25 = vsel %vm537_vm2, %v545_v17, %v546_v18  ;;  %v9754_v27 = vsel %vm537_vm2, %v546_v18, %v548_v21  ;;  %v555_v33 = vrot.slane %v9759_v30, 1  ;;  %v557_v35 = vrot.slane %v9766_v31, 1  ;;  %v9786_v37 = vld [vmem:[%s9689_s12 + $0x68] sm:$0xff]  ;;  %v9791_v38 = vld [vmem:[%s9689_s12 + $0x70] sm:$0xff]  ;;  %v9809_v44 = vld [vmem:[%s9689_s12 + $0x78] sm:$0x3] }
  0x23   : > { %8557 = vmatpush3.msk.msra.mxu0 %vm775_vm0, %v7179_v2  ;;  %8395 = vmatprep.mubr.msk.f32.mxu0 %vm666_vm1, %v544_v20  ;;  %13629 = vst [vmem:[#allocation5_spill] sm:$0xff] %v9748_v25  ;;  %13630 = vst [vmem:[#allocation6_spill] sm:$0xff] %v9754_v27  ;;  %v9773_v32 = vsel %vm537_vm2, %v548_v21, %v550_v26  ;;  %v9779_v34 = vsel %vm537_vm2, %v552_v28, %v553_v29  ;;  %v559_v40 = vrot.slane %v9783_v36, 1  ;;  %v9814_v45 = vld [vmem:[%s9689_s12 + $0x80] sm:$0xff]  ;;  %v9817_v46 = vld [vmem:[%s9689_s12 + $0x88] sm:$0xff]  ;;  %s9493_s0 = scalar_lea.vmem %s7009_s15, 16 }
  0x24   : > { %8479 = vmatmul.mubr.msk.f32.gmra.mxu1 %vm666_vm1, %v9712_v12  ;;  %8722 = vmatprep.subr.msk.mxu0 %vm775_vm0, %v9742_v24  ;;  %13631 = vst [vmem:[#allocation7_spill] sm:$0xff] %v9773_v32  ;;  %13632 = vst [vmem:[#allocation8_spill] sm:$0xff] %v9779_v34  ;;  %v9798_v39 = vsel %vm537_vm2, %v553_v29, %v555_v33  ;;  %v560_v41 = vrot.slane %v9786_v37, 1  ;;  %v9805_v42 = vsel %vm537_vm2, %v555_v33, %v557_v35  ;;  %v9835_v52 = vld [vmem:[%s9689_s12 + $0x90] sm:$0xff]  ;;  %v9840_v53 = vld [vmem:[%s9689_s12 + $0x98] sm:$0x3]  ;;  %p9494_p11 = scmp.ne.s32.totalorder %s7009_s15, %s9493_s0  ;;  %p9501_p1 = scmp.lt.s32.totalorder %s9499_s30, %s9493_s0 }
  0x25   : > { %8481 = vmatprep.mubr.msk.f32.mxu1 %vm666_vm1, %v9715_v13  ;;  %13633 = vst [vmem:[#allocation9_spill] sm:$0xff] %v9798_v39  ;;  %13634 = vst [vmem:[#allocation10_spill] sm:$0xff] %v9805_v42  ;;  %v562_v43 = vrot.slane %v9791_v38, 1  ;;  %v564_v48 = vrot.slane %v9809_v44, 1  ;;  %v566_v50 = vrot.slane %v9814_v45, 1  ;;  %v567_v51 = vrot.slane %v9817_v46, 1 }
  0x26   : > { %8396 = vmatmul.mubr.msk.f32.gmra.mxu0 %vm666_vm1, %v9748_v25  ;;  %v9824_v47 = vsel %vm537_vm2, %v559_v40, %v560_v41  ;;  %v569_v55 = vrot.slane %v9835_v52, 1  ;;  %v571_v57 = vrot.slane %v9840_v53, 1  ;;  %v9857_v58 = vld [vmem:[%s9689_s12 + $0xa0] sm:$0xff]  ;;  %v9860_v59 = vld [vmem:[%s9689_s12 + $0xa8] sm:$0xff]  ;;  %v9865_v60 = vld [vmem:[%s9689_s12 + $0xb0] sm:$0xff]  ;;  %v1555_v8 = vrot.slane %v9692_v4, 2  ;;  %p9495_p12 = pnand %p9494_p11, %p9656_p5  ;;  %p9502_p2 = por %p9501_p1, %p9500_p0 }
  0x27   : > { %8398 = vmatprep.mubr.msk.f32.mxu0 %vm666_vm1, %v9754_v27  ;;  %13635 = vst [vmem:[#allocation11_spill] sm:$0xff] %v9824_v47  ;;  %v9830_v49 = vsel %vm537_vm2, %v560_v41, %v562_v43  ;;  %v9847_v54 = vsel %vm537_vm2, %v562_v43, %v564_v48  ;;  %v9853_v56 = vsel %vm537_vm2, %v566_v50, %v567_v51  ;;  %v573_v62 = vrot.slane %v9857_v58, 1  ;;  %v9883_v2 = vld [vmem:[%s9689_s12 + $0xb8] sm:$0x3]  ;;  %v9888_v3 = vld [vmem:[%s9689_s12 + $0xc0] sm:$0xff]  ;;  %v9891_v7 = vld [vmem:[%s9689_s12 + $0xc8] sm:$0xff] }
  0x28   : > { %8482 = vmatmul.mubr.msk.f32.gmra.mxu1 %vm666_vm1, %v9718_v14  ;;  %13636 = vst [vmem:[#allocation12_spill] sm:$0xff] %v9830_v49  ;;  %13637 = vst [vmem:[#allocation13_spill] sm:$0xff] %v9847_v54  ;;  %v9872_v61 = vsel %vm537_vm2, %v567_v51, %v569_v55  ;;  %v574_v63 = vrot.slane %v9860_v59, 1  ;;  %v9879_v0 = vsel %vm537_vm2, %v569_v55, %v571_v57  ;;  %v576_v1 = vrot.slane %v9865_v60, 1  ;;  %v9912_v17 = vld [vmem:[%s9689_s12 + $0xd0] sm:$0xff]  ;;  %v9941_v40 = vld [vmem:[%s9689_s12 + $0xe0] sm:$0xff]  ;;  %p9496_p13 = pneg %p9495_p12 }
  0x29   : > { %8484 = vmatprep.mubr.msk.f32.mxu1 %vm666_vm1, %v9734_v22  ;;  %13638 = vst [vmem:[#allocation14_spill] sm:$0xff] %v9853_v56  ;;  %13639 = vst [vmem:[#allocation15_spill] sm:$0xff] %v9872_v61  ;;  %v1556_v9 = vrot.slane %v9695_v5, 2  ;;  %v1558_v11 = vrot.slane %v9698_v6, 2  ;;  %v578_v16 = vrot.slane %v9883_v2, 1  ;;  %v580_v5 = vrot.slane %v9888_v3, 1 }
  0x2a   : > { %8399 = vmatmul.mubr.msk.f32.gmra.mxu0 %vm666_vm1, %v9773_v32  ;;  %13640 = vst [vmem:[#allocation16_spill] sm:$0xff] %v9879_v0  ;;  %v9901_v15 = vsel %vm537_vm2, %v573_v62, %v574_v63  ;;  %v9907_v4 = vsel %vm537_vm2, %v574_v63, %v576_v1  ;;  %v581_v6 = vrot.slane %v9891_v7, 1  ;;  %v9917_v18 = vld [vmem:[%s9689_s12 + $0xd8] sm:$0x3]  ;;  %v1560_v26 = vrot.slane %v9706_v10, 2  ;;  %v9944_v10 = vld [vmem:[%s9689_s12 + $0xe8] sm:$0xff]  ;;  %p9503_p3 = pnand %p9502_p2, %p9496_p13 }
  0x2b   : > { %8401 = vmatprep.mubr.msk.f32.mxu0 %vm666_vm1, %v9779_v34  ;;  %13641 = vst [vmem:[#allocation17_spill] sm:$0xff] %v9901_v15  ;;  %13642 = vst [vmem:[#allocation18_spill] sm:$0xff] %v9907_v4  ;;  %v9920_v20 = vsel %vm1554_vm3, %v1555_v8, %v1556_v9  ;;  %v9925_v21 = vsel %vm1554_vm3, %v1556_v9, %v1558_v11  ;;  %v9931_v28 = vsel %vm537_vm2, %v576_v1, %v578_v16  ;;  %v9952_v43 = vld [vmem:[%s9689_s12 + $0xf0] sm:$0xff]  ;;  %v9970_v62 = vld [vmem:[%s9689_s12 + $0xf8] sm:$0x3] }
  0x2c   : > { %8485 = vmatmul.mubr.msk.f32.gmra.mxu1 %vm666_vm1, %v9737_v23  ;;  %13643 = vst [vmem:[#allocation19_spill] sm:$0xff] %v9931_v28  ;;  %v583_v29 = vrot.slane %v9912_v17, 1  ;;  %v9937_v33 = vsel %vm537_vm2, %v580_v5, %v581_v6  ;;  %v585_v35 = vrot.slane %v9917_v18, 1  ;;  %v9947_v41 = vsel %vm1554_vm3, %v1558_v11, %v1560_v26  ;;  %v9975_v63 = vld [vmem:[%s9689_s12 + $0x100] sm:$0xff]  ;;  %v9978_v1 = vld [vmem:[%s9689_s12 + $0x108] sm:$0xff] }
  0x2d   : > { %8487 = vmatprep.mubr.msk.f32.mxu1 %vm666_vm1, %v9759_v30  ;;  %13644 = vst [vmem:[#allocation20_spill] sm:$0xff] %v9937_v33  ;;  %v587_v50 = vrot.slane %v9941_v40, 1  ;;  %v588_v51 = vrot.slane %v9944_v10, 1  ;;  %v590_v57 = vrot.slane %v9952_v43, 1  ;;  %v592_v9 = vrot.slane %v9970_v62, 1  ;;  %v10169_v27 = vld [vmem:[%s9689_s12 + $0x1a8] sm:$0xff] }
  0x2e   : > { %8402 = vmatmul.mubr.msk.f32.gmra.mxu0 %vm666_vm1, %v9798_v39  ;;  %v9959_v48 = vsel %vm537_vm2, %v581_v6, %v583_v29  ;;  %v9966_v55 = vsel %vm537_vm2, %v583_v29, %v585_v35  ;;  %v594_v16 = vrot.slane %v9975_v63, 1  ;;  %v595_v5 = vrot.slane %v9978_v1, 1  ;;  %v9996_v6 = vld [vmem:[%s9689_s12 + $0x110] sm:$0xff]  ;;  %v10001_v26 = vld [vmem:[%s9689_s12 + $0x118] sm:$0x3]  ;;  %13669 = vst [vmem:[#allocation45_spill] sm:$0xff] %v10169_v27 }
  0x2f   : > { %8404 = vmatprep.mubr.msk.f32.mxu0 %vm666_vm1, %v9805_v42  ;;  %13645 = vst [vmem:[#allocation21_spill] sm:$0xff] %v9959_v48  ;;  %13646 = vst [vmem:[#allocation22_spill] sm:$0xff] %v9966_v55  ;;  %v9985_v8 = vsel %vm537_vm2, %v587_v50, %v588_v51  ;;  %v9991_v11 = vsel %vm537_vm2, %v588_v51, %v590_v57  ;;  %v10008_v29 = vsel %vm537_vm2, %v590_v57, %v592_v9  ;;  %v10026_v57 = vld [vmem:[%s9689_s12 + $0x130] sm:$0xff] }
  0x30   : > { %8488 = vmatmul.mubr.msk.f32.gmra.mxu1 %vm666_vm1, %v9783_v36  ;;  %13647 = vst [vmem:[#allocation23_spill] sm:$0xff] %v9985_v8  ;;  %13648 = vst [vmem:[#allocation24_spill] sm:$0xff] %v9991_v11  ;;  %v597_v35 = vrot.slane %v9996_v6, 1  ;;  %v10014_v50 = vsel %vm537_vm2, %v594_v16, %v595_v5  ;;  %v599_v51 = vrot.slane %v10001_v26, 1  ;;  %v10144_v39 = vld [vmem:[%s9689_s12 + $0x190] sm:$0xff] }
  0x31   : > { %8490 = vmatprep.mubr.msk.f32.mxu1 %vm666_vm1, %v9786_v37  ;;  %13649 = vst [vmem:[#allocation25_spill] sm:$0xff] %v10008_v29  ;;  %13650 = vst [vmem:[#allocation26_spill] sm:$0xff] %v10014_v50 }
  0x32   : > { %8405 = vmatmul.mubr.msk.f32.gmra.mxu0 %vm666_vm1, %v9824_v47  ;;  %v10033_v9 = vsel %vm537_vm2, %v595_v5, %v597_v35  ;;  %v10049_v5 = vld [vmem:[%s9689_s12 + $0x140] sm:$0xff]  ;;  %13664 = vst [vmem:[#allocation40_spill] sm:$0xff] %v10144_v39 }
  0x33   : > { %8407 = vmatprep.mubr.msk.f32.mxu0 %vm666_vm1, %v9830_v49  ;;  %13651 = vst [vmem:[#allocation27_spill] sm:$0xff] %v10033_v9  ;;  %v10118_v49 = vld [vmem:[%s9689_s12 + $0x178] sm:$0x3] }
  0x34   : > { %8491 = vmatmul.mubr.msk.f32.gmra.mxu1 %vm666_vm1, %v9791_v38  ;;  %13659 = vst [vmem:[#allocation35_spill] sm:$0xff] %v10118_v49 }
  0x35   : > { %8493 = vmatprep.mubr.msk.f32.mxu1 %vm666_vm1, %v9814_v45 }
  0x36   : > { %8408 = vmatmul.mubr.msk.f32.gmra.mxu0 %vm666_vm1, %v9847_v54 }
  0x37   : > { %8410 = vmatprep.mubr.msk.f32.mxu0 %vm666_vm1, %v9853_v56  ;;  %v10095_v56 = vld [vmem:[%s9689_s12 + $0x168] sm:$0xff] }
  0x38   : > { %8494 = vmatmul.mubr.msk.f32.gmra.mxu1 %vm666_vm1, %v9817_v46 }
  0x39   : > { %8496 = vmatprep.mubr.msk.f32.mxu1 %vm666_vm1, %v9835_v52 }
  0x3a   : > { %8411 = vmatmul.mubr.msk.f32.gmra.mxu0 %vm666_vm1, %v9872_v61 }
  0x3b   : > { %8413 = vmatprep.mubr.msk.f32.mxu0 %vm666_vm1, %v9879_v0 }
  0x3c   : > { %8497 = vmatmul.mubr.msk.f32.gmra.mxu1 %vm666_vm1, %v9857_v58 }
  0x3d   : > { %8499 = vmatprep.mubr.msk.f32.mxu1 %vm666_vm1, %v9860_v59 }
  0x3e   : > { %8414 = vmatmul.mubr.msk.f32.gmra.mxu0 %vm666_vm1, %v9901_v15  ;;  %v10070_v15 = vld [vmem:[%s9689_s12 + $0x150] sm:$0xff] }
  0x3f   : > { %8416 = vmatprep.mubr.msk.f32.mxu0 %vm666_vm1, %v9907_v4  ;;  %v608_v4 = vrot.slane %v10049_v5, 1 }
  0x40   : > { %8500 = vmatmul.mubr.msk.f32.gmra.mxu1 %vm666_vm1, %v9865_v60 }
  0x41   : > { %8502 = vmatprep.mubr.msk.f32.mxu1 %vm666_vm1, %v9888_v3 }
  0x42   : > { %8417 = vmatmul.mubr.msk.f32.gmra.mxu0 %vm666_vm1, %v9931_v28 }
  0x43   : > { %8419 = vmatprep.mubr.msk.f32.mxu0 %vm666_vm1, %v9937_v33  ;;  %v10044_v33 = vld [vmem:[%s9689_s12 + $0x138] sm:$0x3] }
  0x44   : > { %8503 = vmatmul.mubr.msk.f32.gmra.mxu1 %vm666_vm1, %v9891_v7 }
  0x45   : > { %8505 = vmatprep.mubr.msk.f32.mxu1 %vm666_vm1, %v9912_v17 }
  0x46   : > { %8420 = vmatmul.mubr.msk.f32.gmra.mxu0 %vm666_vm1, %v9959_v48  ;;  %v10040_v48 = vsel %vm537_vm2, %v597_v35, %v599_v51  ;;  %v606_v51 = vrot.slane %v10044_v33, 1 }
  0x47   : > { %8422 = vmatprep.mubr.msk.f32.mxu0 %vm666_vm1, %v9966_v55  ;;  %v10021_v55 = vld [vmem:[%s9689_s12 + $0x128] sm:$0xff]  ;;  %13652 = vst [vmem:[#allocation28_spill] sm:$0xff] %v10040_v48 }
  0x48   : > { %8506 = vmatmul.mubr.msk.f32.gmra.mxu1 %vm666_vm1, %v9941_v40 }
  0x49   : > { %8508 = vmatprep.mubr.msk.f32.mxu1 %vm666_vm1, %v9944_v10 }
  0x4a   : > { %8423 = vmatmul.mubr.msk.f32.gmra.mxu0 %vm666_vm1, %v9985_v8  ;;  %v10018_v8 = vld [vmem:[%s9689_s12 + $0x120] sm:$0xff] }
  0x4b   : > { %8425 = vmatprep.mubr.msk.f32.mxu0 %vm666_vm1, %v9991_v11  ;;  %v601_v16 = vrot.slane %v10018_v8, 1  ;;  %v602_v11 = vrot.slane %v10021_v55, 1 }
  0x4c   : > { %8509 = vmatmul.mubr.msk.f32.gmra.mxu1 %vm666_vm1, %v9952_v43 }
  0x4d   : > { %8511 = vmatprep.mubr.msk.f32.mxu1 %vm666_vm1, %v9975_v63  ;;  %v10059_v35 = vsel %vm537_vm2, %v601_v16, %v602_v11  ;;  %v10075_v16 = vld [vmem:[%s9689_s12 + $0x158] sm:$0x3] }
  0x4e   : > { %8426 = vmatmul.mubr.msk.f32.gmra.mxu0 %vm666_vm1, %v10008_v29  ;;  %v604_v29 = vrot.slane %v10026_v57, 1  ;;  %13653 = vst [vmem:[#allocation29_spill] sm:$0xff] %v10059_v35  ;;  %v613_v61 = vrot.slane %v10075_v16, 1 }
  0x4f   : > { %8428 = vmatprep.mubr.msk.f32.mxu0 %vm666_vm1, %v10014_v50  ;;  %v10052_v50 = vld [vmem:[%s9689_s12 + $0x148] sm:$0xff] }
  0x50   : > { %8512 = vmatmul.mubr.msk.f32.gmra.mxu1 %vm666_vm1, %v9978_v1  ;;  %v10065_v28 = vsel %vm537_vm2, %v602_v11, %v604_v29  ;;  %v10082_v11 = vsel %vm537_vm2, %v604_v29, %v606_v51  ;;  %v10100_v29 = vld [vmem:[%s9689_s12 + $0x170] sm:$0xff] }
  0x51   : > { %8514 = vmatprep.mubr.msk.f32.mxu1 %vm666_vm1, %v9996_v6  ;;  %13654 = vst [vmem:[#allocation30_spill] sm:$0xff] %v10065_v28  ;;  %13655 = vst [vmem:[#allocation31_spill] sm:$0xff] %v10082_v11 }
  0x52   : > { %8429 = vmatmul.mubr.msk.f32.gmra.mxu0 %vm666_vm1, %v10033_v9  ;;  %v609_v9 = vrot.slane %v10052_v50, 1 }
  0x53   : > { %8431 = vmatprep.mubr.msk.f32.mxu0 %vm666_vm1, %v10040_v48  ;;  %v611_v48 = vrot.slane %v10070_v15, 1 }
  0x54   : > { %8515 = vmatmul.mubr.msk.f32.gmra.mxu1 %vm666_vm1, %v10018_v8  ;;  %v10088_v0 = vsel %vm537_vm2, %v608_v4, %v609_v9 }
  0x55   : > { %8517 = vmatprep.mubr.msk.f32.mxu1 %vm666_vm1, %v10021_v55  ;;  %13656 = vst [vmem:[#allocation32_spill] sm:$0xff] %v10088_v0  ;;  %v10107_v4 = vsel %vm537_vm2, %v609_v9, %v611_v48  ;;  %v10114_v54 = vsel %vm537_vm2, %v611_v48, %v613_v61  ;;  %v10123_v9 = vld [vmem:[%s9689_s12 + $0x180] sm:$0xff]  ;;  %v620_v48 = vrot.slane %v10118_v49, 1 }
  0x56   : > { %8432 = vmatmul.mubr.msk.f32.gmra.mxu0 %vm666_vm1, %v10059_v35  ;;  %v10092_v35 = vld [vmem:[%s9689_s12 + $0x160] sm:$0xff]  ;;  %13657 = vst [vmem:[#allocation33_spill] sm:$0xff] %v10107_v4  ;;  %13658 = vst [vmem:[#allocation34_spill] sm:$0xff] %v10114_v54  ;;  %v622_v42 = vrot.slane %v10123_v9, 1 }
  0x57   : > { %8434 = vmatprep.mubr.msk.f32.mxu0 %vm666_vm1, %v10065_v28  ;;  %v615_v51 = vrot.slane %v10092_v35, 1  ;;  %v616_v28 = vrot.slane %v10095_v56, 1  ;;  %13660 = vst [vmem:[#allocation36_spill] sm:$0xff] %v10123_v9  ;;  %v10318_v49 = vld [vmem:[%s9689_s12 + $0x220] sm:$0xff] }
  0x58   : > { %8518 = vmatmul.mubr.msk.f32.gmra.mxu1 %vm666_vm1, %v10026_v57 }
  0x59   : > { %8520 = vmatprep.mubr.msk.f32.mxu1 %vm666_vm1, %v10049_v5  ;;  %v10133_v61 = vsel %vm537_vm2, %v615_v51, %v616_v28  ;;  %v10149_v51 = vld [vmem:[%s9689_s12 + $0x198] sm:$0x3] }
  0x5a   : > { %8435 = vmatmul.mubr.msk.f32.gmra.mxu0 %vm666_vm1, %v10082_v11  ;;  %v618_v11 = vrot.slane %v10100_v29, 1  ;;  %13662 = vst [vmem:[#allocation38_spill] sm:$0xff] %v10133_v61  ;;  %13665 = vst [vmem:[#allocation41_spill] sm:$0xff] %v10149_v51  ;;  %v627_v32 = vrot.slane %v10149_v51, 1  ;;  %v10192_v51 = vld [vmem:[%s9689_s12 + $0x1b8] sm:$0x3] }
  0x5b   : > { %8437 = vmatprep.mubr.msk.f32.mxu0 %vm666_vm1, %v10088_v0  ;;  %v10126_v0 = vld [vmem:[%s9689_s12 + $0x188] sm:$0xff]  ;;  %13673 = vst [vmem:[#allocation49_spill] sm:$0xff] %v10192_v51 }
  0x5c   : > { %8521 = vmatmul.mubr.msk.f32.gmra.mxu1 %vm666_vm1, %v10052_v50  ;;  %13661 = vst [vmem:[#allocation37_spill] sm:$0xff] %v10126_v0  ;;  %v10139_v47 = vsel %vm537_vm2, %v616_v28, %v618_v11  ;;  %v10156_v28 = vsel %vm537_vm2, %v618_v11, %v620_v48  ;;  %v10174_v11 = vld [vmem:[%s9689_s12 + $0x1b0] sm:$0xff] }
  0x5d   : > { %8523 = vmatprep.mubr.msk.f32.mxu1 %vm666_vm1, %v10070_v15  ;;  %13663 = vst [vmem:[#allocation39_spill] sm:$0xff] %v10139_v47  ;;  %13666 = vst [vmem:[#allocation42_spill] sm:$0xff] %v10156_v28 }
  0x5e   : > { %8438 = vmatmul.mubr.msk.f32.gmra.mxu0 %vm666_vm1, %v10107_v4  ;;  %v623_v4 = vrot.slane %v10126_v0, 1  ;;  %13670 = vst [vmem:[#allocation46_spill] sm:$0xff] %v10174_v11 }
  0x5f   : > { %8440 = vmatprep.mubr.msk.f32.mxu0 %vm666_vm1, %v10114_v54  ;;  %v625_v54 = vrot.slane %v10144_v39, 1 }
  0x60   : > { %8524 = vmatmul.mubr.msk.f32.gmra.mxu1 %vm666_vm1, %v10092_v35  ;;  %v10162_v34 = vsel %vm537_vm2, %v622_v42, %v623_v4 }
  0x61   : > { %8526 = vmatprep.mubr.msk.f32.mxu1 %vm666_vm1, %v10095_v56  ;;  %13667 = vst [vmem:[#allocation43_spill] sm:$0xff] %v10162_v34  ;;  %v10181_v42 = vsel %vm537_vm2, %v623_v4, %v625_v54  ;;  %v10188_v25 = vsel %vm537_vm2, %v625_v54, %v627_v32  ;;  %v10197_v4 = vld [vmem:[%s9689_s12 + $0x1c0] sm:$0xff]  ;;  %v634_v54 = vrot.slane %v10192_v51, 1 }
  0x62   : > { %8441 = vmatmul.mubr.msk.f32.gmra.mxu0 %vm666_vm1, %v10133_v61  ;;  %v10166_v61 = vld [vmem:[%s9689_s12 + $0x1a0] sm:$0xff]  ;;  %13671 = vst [vmem:[#allocation47_spill] sm:$0xff] %v10181_v42  ;;  %13672 = vst [vmem:[#allocation48_spill] sm:$0xff] %v10188_v25 }
  0x63   : > { %8443 = vmatprep.mubr.msk.f32.mxu0 %vm666_vm1, %v10139_v47  ;;  %13668 = vst [vmem:[#allocation44_spill] sm:$0xff] %v10166_v61  ;;  %v629_v48 = vrot.slane %v10166_v61, 1  ;;  %v630_v47 = vrot.slane %v10169_v27, 1  ;;  %13674 = vst [vmem:[#allocation50_spill] sm:$0xff] %v10197_v4 }
  0x64   : > { %8527 = vmatmul.mubr.msk.f32.gmra.mxu1 %vm666_vm1, %v10100_v29 }
  0x65   : > { %8529 = vmatprep.mubr.msk.f32.mxu1 %vm666_vm1, %v10123_v9  ;;  %v10207_v32 = vsel %vm537_vm2, %v629_v48, %v630_v47  ;;  %v10218_v9 = vld [vmem:[%s9689_s12 + $0x1d0] sm:$0xff]  ;;  %v10223_v48 = vld [vmem:[%s9689_s12 + $0x1d8] sm:$0x3] }
  0x66   : > { %8444 = vmatmul.mubr.msk.f32.gmra.mxu0 %vm666_vm1, %v10156_v28  ;;  %v632_v28 = vrot.slane %v10174_v11, 1  ;;  %13676 = vst [vmem:[#allocation52_spill] sm:$0xff] %v10207_v32  ;;  %13678 = vst [vmem:[#allocation54_spill] sm:$0xff] %v10218_v9 }
  0x67   : > { %8446 = vmatprep.mubr.msk.f32.mxu0 %vm666_vm1, %v10162_v34  ;;  %v10200_v34 = vld [vmem:[%s9689_s12 + $0x1c8] sm:$0xff]  ;;  %13679 = vst [vmem:[#allocation55_spill] sm:$0xff] %v10223_v48 }
  0x68   : > { %8530 = vmatmul.mubr.msk.f32.gmra.mxu1 %vm666_vm1, %v10126_v0  ;;  %13675 = vst [vmem:[#allocation51_spill] sm:$0xff] %v10200_v34  ;;  %v636_v0 = vrot.slane %v10197_v4, 1 }
  0x69   : > { %8532 = vmatprep.mubr.msk.f32.mxu1 %vm666_vm1, %v10144_v39  ;;  %v10213_v39 = vsel %vm537_vm2, %v630_v47, %v632_v28  ;;  %v10230_v47 = vsel %vm537_vm2, %v632_v28, %v634_v54  ;;  %v10248_v28 = vld [vmem:[%s9689_s12 + $0x1f0] sm:$0xff] }
  0x6a   : > { %8447 = vmatmul.mubr.msk.f32.gmra.mxu0 %vm666_vm1, %v10181_v42  ;;  %13677 = vst [vmem:[#allocation53_spill] sm:$0xff] %v10213_v39  ;;  %v637_v42 = vrot.slane %v10200_v34, 1  ;;  %13680 = vst [vmem:[#allocation56_spill] sm:$0xff] %v10230_v47 }
  0x6b   : > { %8449 = vmatprep.mubr.msk.f32.mxu0 %vm666_vm1, %v10188_v25  ;;  %v639_v25 = vrot.slane %v10218_v9, 1  ;;  %13684 = vst [vmem:[#allocation60_spill] sm:$0xff] %v10248_v28 }
  0x6c   : > { %8533 = vmatmul.mubr.msk.f32.gmra.mxu1 %vm666_vm1, %v10166_v61  ;;  %v10236_v51 = vsel %vm537_vm2, %v636_v0, %v637_v42  ;;  %v10243_v61 = vld [vmem:[%s9689_s12 + $0x1e8] sm:$0xff] }
  0x6d   : > { %8535 = vmatprep.mubr.msk.f32.mxu1 %vm666_vm1, %v10169_v27  ;;  %13681 = vst [vmem:[#allocation57_spill] sm:$0xff] %v10236_v51  ;;  %v641_v27 = vrot.slane %v10223_v48, 1  ;;  %13683 = vst [vmem:[#allocation59_spill] sm:$0xff] %v10243_v61  ;;  %v10255_v0 = vsel %vm537_vm2, %v637_v42, %v639_v25  ;;  %v10271_v42 = vld [vmem:[%s9689_s12 + $0x200] sm:$0xff] }
  0x6e   : > { %8450 = vmatmul.mubr.msk.f32.gmra.mxu0 %vm666_vm1, %v10207_v32  ;;  %v10240_v32 = vld [vmem:[%s9689_s12 + $0x1e0] sm:$0xff]  ;;  %13685 = vst [vmem:[#allocation61_spill] sm:$0xff] %v10255_v0  ;;  %13688 = vst [vmem:[#allocation64_spill] sm:$0xff] %v10271_v42 }
  0x6f   : > { %8452 = vmatprep.mubr.msk.f32.mxu0 %vm666_vm1, %v10213_v39  ;;  %13682 = vst [vmem:[#allocation58_spill] sm:$0xff] %v10240_v32  ;;  %v643_v54 = vrot.slane %v10240_v32, 1  ;;  %v644_v39 = vrot.slane %v10243_v61, 1  ;;  %v10262_v48 = vsel %vm537_vm2, %v639_v25, %v641_v27 }
  0x70   : > { %8536 = vmatmul.mubr.msk.f32.gmra.mxu1 %vm666_vm1, %v10174_v11  ;;  %13686 = vst [vmem:[#allocation62_spill] sm:$0xff] %v10262_v48 }
  0x71   : > { %8538 = vmatprep.mubr.msk.f32.mxu1 %vm666_vm1, %v10197_v4  ;;  %v646_v4 = vrot.slane %v10248_v28, 1  ;;  %v10281_v25 = vsel %vm537_vm2, %v643_v54, %v644_v39 }
  0x72   : > { %8453 = vmatmul.mubr.msk.f32.gmra.mxu0 %vm666_vm1, %v10230_v47  ;;  %v10266_v47 = vld [vmem:[%s9689_s12 + $0x1f8] sm:$0x3]  ;;  %13689 = vst [vmem:[#allocation65_spill] sm:$0xff] %v10281_v25 }
  0x73   : > { %8455 = vmatprep.mubr.msk.f32.mxu0 %vm666_vm1, %v10236_v51  ;;  %13687 = vst [vmem:[#allocation63_spill] sm:$0xff] %v10266_v47  ;;  %v10274_v51 = vld [vmem:[%s9689_s12 + $0x208] sm:$0xff]  ;;  %v648_v27 = vrot.slane %v10266_v47, 1  ;;  %v10301_v47 = vld [vmem:[%s9689_s12 + $0x218] sm:$0x3] }
  0x74   : > { %8539 = vmatmul.mubr.msk.f32.gmra.mxu1 %vm666_vm1, %v10200_v34  ;;  %v7347_v34 = vld [vmem:[%s13407_s1 + $0x14] sm:$0xf]  ;;  %v651_v54 = vrot.slane %v10274_v51, 1  ;;  %13691 = vst [vmem:[#allocation67_spill] sm:$0xff] %v10301_v47 }
  0x75   : > { %8541 = vmatprep.mubr.msk.f32.mxu1 %vm666_vm1, %v10218_v9  ;;  %v10290_v9 = vsel %vm537_vm2, %v644_v39, %v646_v4  ;;  %8805 = vmatprep.subr.msk.mxu1 %vm775_vm0, %v7347_v34  ;;  %v10308_v39 = vsel %vm537_vm2, %v646_v4, %v648_v27  ;;  %v10326_v4 = vld [vmem:[%s9689_s12 + $0x230] sm:$0xff]  ;;  %v657_v27 = vrot.slane %v10318_v49, 1 }
  0x76   : > { %8456 = vmatmul.mubr.msk.f32.gmra.mxu0 %vm666_vm1, %v10255_v0  ;;  %13690 = vst [vmem:[#allocation66_spill] sm:$0xff] %v10290_v9  ;;  %v650_v0 = vrot.slane %v10271_v42, 1  ;;  %13692 = vst [vmem:[#allocation68_spill] sm:$0xff] %v10308_v39 }
  0x77   : > { %8458 = vmatprep.mubr.msk.f32.mxu0 %vm666_vm1, %v10262_v48  ;;  %v10295_v48 = vld [vmem:[%s9689_s12 + $0x210] sm:$0xff] }
  0x78   : > { %8542 = vmatmul.mubr.msk.f32.gmra.mxu1 %vm666_vm1, %v10240_v32  ;;  %v653_v32 = vrot.slane %v10295_v48, 1  ;;  %v10314_v11 = vsel %vm537_vm2, %v650_v0, %v651_v54 }
  0x79   : > { %8544 = vmatprep.mubr.msk.f32.mxu1 %vm666_vm1, %v10243_v61  ;;  %13693 = vst [vmem:[#allocation69_spill] sm:$0xff] %v10314_v11  ;;  %v655_v61 = vrot.slane %v10301_v47, 1 }
  0x7a   : > { %8459 = vmatmul.mubr.msk.f32.gmra.mxu0 %vm666_vm1, %v10281_v25  ;;  %v10321_v25 = vld [vmem:[%s9689_s12 + $0x228] sm:$0xff]  ;;  %v10333_v0 = vsel %vm537_vm2, %v651_v54, %v653_v32 }
  0x7b   : > { %8461 = vmatprep.mubr.msk.f32.mxu0 %vm666_vm1, %v10290_v9  ;;  %13694 = vst [vmem:[#allocation70_spill] sm:$0xff] %v10333_v0  ;;  %v658_v9 = vrot.slane %v10321_v25, 1  ;;  %v10340_v47 = vsel %vm537_vm2, %v653_v32, %v655_v61 }
  0x7c   : > { %8545 = vmatmul.mubr.msk.f32.gmra.mxu1 %vm666_vm1, %v10248_v28  ;;  %13695 = vst [vmem:[#allocation71_spill] sm:$0xff] %v10340_v47  ;;  %v10344_v28 = vld [vmem:[%s9689_s12 + $0x238] sm:$0x3] }
  0x7d   : > { %8547 = vmatprep.mubr.msk.f32.mxu1 %vm666_vm1, %v10271_v42  ;;  %v660_v42 = vrot.slane %v10326_v4, 1  ;;  %v10353_v54 = vsel %vm537_vm2, %v657_v27, %v658_v9  ;;  %v1563_v27 = vrot.slane %v9715_v13, 2 }
  0x7e   : > { %8462 = vmatmul.mubr.msk.f32.gmra.mxu0 %vm666_vm1, %v10308_v39  ;;  %13696 = vst [vmem:[#allocation72_spill] sm:$0xff] %v10353_v54 }
  0x7f   : > { %8464 = vmatprep.mubr.msk.f32.mxu0 %vm666_vm1, %v10314_v11  ;;  %v662_v11 = vrot.slane %v10344_v28, 1  ;;  %v10359_v61 = vsel %vm537_vm2, %v658_v9, %v660_v42  ;;  %v1562_v9 = vrot.slane %v9712_v12, 2 }
  0x80   : > { %8548 = vmatmul.mubr.msk.f32.gmra.mxu1 %vm666_vm1, %v10274_v51  ;;  %13697 = vst [vmem:[#allocation73_spill] sm:$0xff] %v10359_v61 }
  0x81   : > { %8550 = vmatprep.mubr.msk.f32.mxu1 %vm666_vm1, %v10295_v48  ;;  %v10368_v32 = vsel %vm537_vm2, %v660_v42, %v662_v11  ;;  %v1565_v11 = vrot.slane %v9718_v14, 2  ;;  %v10389_v42 = vld [vmem:[%s13407_s1 + $0x18] sm:$0xf] }
  0x82   : > { %8465 = vmatmul.mubr.msk.f32.gmra.mxu0 %vm666_vm1, %v10333_v0  ;;  %13698 = vst [vmem:[#allocation74_spill] sm:$0xff] %v10368_v32 }
  0x83   : > { %8467 = vmatprep.mubr.msk.f32.mxu0 %vm666_vm1, %v10340_v47 }
  0x84   : > { %8551 = vmatmul.mubr.msk.f32.gmra.mxu1 %vm666_vm1, %v10318_v49 }
  0x85   : > { %8553 = vmatprep.mubr.msk.f32.mxu1 %vm666_vm1, %v10321_v25 }
  0x86   : > { %8468 = vmatmul.mubr.msk.f32.gmra.mxu0 %vm666_vm1, %v10353_v54 }
  0x87   : > { %8470 = vmatprep.mubr.msk.f32.mxu0 %vm666_vm1, %v10359_v61 }
  0x88   : > { %8554 = vmatmul.mubr.msk.f32.gmra.mxu1 %vm666_vm1, %v10326_v4 }
  0x89   : > { %8641 = vmatprep.mubr.msk.f32.mxu1 %vm666_vm1, %v9712_v12  ;;  %v10398_v12 = vsel %vm1554_vm3, %v1562_v9, %v1563_v27  ;;  %v1579_v9 = vrot.slane %v9791_v38, 2 }
  0x8a   : > { %8471 = vmatmul.mubr.msk.f32.gmra.mxu0 %vm666_vm1, %v10368_v32 }
  0x8b   : > { %8558 = vmatprep.mubr.msk.f32.mxu0 %vm666_vm1, %v9920_v20  ;;  %v1570_v20 = vrot.slane %v9737_v23, 2 }
  0x8c   : > { %8642 = vmatmul.mubr.msk.f32.vlgmr.msra.gmra.mxu1 %vm666_vm1, %v9715_v13  ;;  %v1567_v13 = vrot.slane %v9727_v19, 2 }
  0x8d   : > { %8644 = vmatprep.mubr.msk.f32.mxu1 %vm666_vm1, %v9718_v14  ;;  %8806 = vmatpush3.msk.msra.mxu1 %vm775_vm0, %v7347_v34  ;;  %v10404_v14 = vsel %vm1554_vm3, %v1563_v27, %v1565_v11  ;;  %v1569_v34 = vrot.slane %v9734_v22, 2  ;;  %v1581_v27 = vrot.slane %v9809_v44, 2 }
  0x8e   : > { %8559 = vmatmul.mubr.msk.f32.vlgmr.msra.gmra.mxu0 %vm666_vm1, %v9925_v21  ;;  %v10417_v19 = vsel %vm1554_vm3, %v1565_v11, %v1567_v13  ;;  %v1574_v21 = vrot.slane %v9766_v31, 2  ;;  %v1583_v11 = vrot.slane %v9814_v45, 2  ;;  %v1586_v13 = vrot.slane %v9835_v52, 2 }
  0x8f   : > { %8723 = vmatpush3.msk.msra.mxu0 %vm775_vm0, %v9742_v24  ;;  %8561 = vmatprep.mubr.msk.f32.mxu0 %vm666_vm1, %v9947_v41  ;;  %v1572_v24 = vrot.slane %v9759_v30, 2  ;;  %v1576_v41 = vrot.slane %v9783_v36, 2  ;;  %v10467_v44 = vsel %vm1554_vm3, %v1579_v9, %v1581_v27  ;;  %v1604_v27 = vrot.slane %v9941_v40, 2 }
  0x90   : > { %8645 = vmatmul.mubr.msk.f32.gmra.mxu1 %vm666_vm1, %v9734_v22  ;;  %8888 = vmatprep.subr.msk.mxu0 %vm775_vm0, %v10389_v42  ;;  %v10423_v22 = vsel %vm1554_vm3, %v1569_v34, %v1570_v20  ;;  %13704 = vst [vmem:[#allocation80_spill] sm:$0xff] %v10467_v44  ;;  %v1588_v34 = vrot.slane %v9840_v53, 2 }
  0x91   : > { %8647 = vmatprep.mubr.msk.f32.mxu1 %vm666_vm1, %v9737_v23  ;;  %13699 = vst [vmem:[#allocation75_spill] sm:$0xff] %v10423_v22  ;;  %v10433_v23 = vsel %vm1554_vm3, %v1570_v20, %v1572_v24  ;;  %v10440_v31 = vsel %vm1554_vm3, %v1572_v24, %v1574_v21  ;;  %v1590_v20 = vrot.slane %v9857_v58, 2  ;;  %v1593_v24 = vrot.slane %v9865_v60, 2 }
  0x92   : > { %8562 = vmatmul.mubr.msk.f32.gmra.mxu0 %vm666_vm1, %v10398_v12  ;;  %13700 = vst [vmem:[#allocation76_spill] sm:$0xff] %v10433_v23  ;;  %13701 = vst [vmem:[#allocation77_spill] sm:$0xff] %v10440_v31  ;;  %v10490_v53 = vsel %vm1554_vm3, %v1586_v13, %v1588_v34  ;;  %v1595_v21 = vrot.slane %v9883_v2, 2  ;;  %v1614_v34 = vrot.slane %v9996_v6, 2 }
  0x93   : > { %8564 = vmatprep.mubr.msk.f32.mxu0 %vm666_vm1, %v10404_v14  ;;  %13707 = vst [vmem:[#allocation83_spill] sm:$0xff] %v10490_v53 }
  0x94   : > { %8648 = vmatmul.mubr.msk.f32.gmra.mxu1 %vm666_vm1, %v9759_v30  ;;  %v1577_v30 = vrot.slane %v9786_v37, 2  ;;  %v10517_v2 = vsel %vm1554_vm3, %v1593_v24, %v1595_v21  ;;  %v1623_v21 = vrot.slane %v10044_v33, 2 }
  0x95   : > { %8650 = vmatprep.mubr.msk.f32.mxu1 %vm666_vm1, %v9783_v36  ;;  %13710 = vst [vmem:[#allocation86_spill] sm:$0xff] %v10517_v2 }
  0x96   : > { %8565 = vmatmul.mubr.msk.f32.gmra.mxu0 %vm666_vm1, %v10417_v19  ;;  %v10450_v36 = vsel %vm1554_vm3, %v1576_v41, %v1577_v30  ;;  %v1597_v41 = vrot.slane %v9888_v3, 2 }
  0x97   : > { %8567 = vmatprep.mubr.msk.f32.mxu0 %vm666_vm1, %v10423_v22  ;;  %13702 = vst [vmem:[#allocation78_spill] sm:$0xff] %v10450_v36 }
  0x98   : > { %8651 = vmatmul.mubr.msk.f32.gmra.mxu1 %vm666_vm1, %v9786_v37  ;;  %v10456_v37 = vsel %vm1554_vm3, %v1577_v30, %v1579_v9  ;;  %v1600_v30 = vrot.slane %v9912_v17, 2  ;;  %v1602_v9 = vrot.slane %v9917_v18, 2 }
  0x99   : > { %8653 = vmatprep.mubr.msk.f32.mxu1 %vm666_vm1, %v9791_v38  ;;  %13703 = vst [vmem:[#allocation79_spill] sm:$0xff] %v10456_v37  ;;  %v1584_v38 = vrot.slane %v9817_v46, 2 }
  0x9a   : > { %8568 = vmatmul.mubr.msk.f32.gmra.mxu0 %vm666_vm1, %v10433_v23  ;;  %v10540_v18 = vsel %vm1554_vm3, %v1600_v30, %v1602_v9  ;;  %v1632_v9 = vrot.slane %v10092_v35, 2 }
  0x9b   : > { %8570 = vmatprep.mubr.msk.f32.mxu0 %vm666_vm1, %v10440_v31  ;;  %13713 = vst [vmem:[#allocation89_spill] sm:$0xff] %v10540_v18 }
  0x9c   : > { %8654 = vmatmul.mubr.msk.f32.gmra.mxu1 %vm666_vm1, %v9814_v45  ;;  %v10473_v45 = vsel %vm1554_vm3, %v1583_v11, %v1584_v38  ;;  %v1607_v11 = vrot.slane %v9952_v43, 2 }
  0x9d   : > { %8656 = vmatprep.mubr.msk.f32.mxu1 %vm666_vm1, %v9817_v46  ;;  %13705 = vst [vmem:[#allocation81_spill] sm:$0xff] %v10473_v45  ;;  %v10483_v46 = vsel %vm1554_vm3, %v1584_v38, %v1586_v13  ;;  %v1609_v38 = vrot.slane %v9970_v62, 2  ;;  %v1611_v13 = vrot.slane %v9975_v63, 2 }
  0x9e   : > { %8571 = vmatmul.mubr.msk.f32.gmra.mxu0 %vm666_vm1, %v10450_v36  ;;  %13706 = vst [vmem:[#allocation82_spill] sm:$0xff] %v10483_v46 }
  0x9f   : > { %8573 = vmatprep.mubr.msk.f32.mxu0 %vm666_vm1, %v10456_v37  ;;  %v10567_v62 = vsel %vm1554_vm3, %v1607_v11, %v1609_v38 }
  0xa0   : > { %8657 = vmatmul.mubr.msk.f32.gmra.mxu1 %vm666_vm1, %v9835_v52  ;;  %v1591_v52 = vrot.slane %v9860_v59, 2  ;;  %13716 = vst [vmem:[#allocation92_spill] sm:$0xff] %v10567_v62 }
  0xa1   : > { %8659 = vmatprep.mubr.msk.f32.mxu1 %vm666_vm1, %v9857_v58 }
  0xa2   : > { %8574 = vmatmul.mubr.msk.f32.gmra.mxu0 %vm666_vm1, %v10467_v44  ;;  %v10500_v58 = vsel %vm1554_vm3, %v1590_v20, %v1591_v52  ;;  %v1616_v20 = vrot.slane %v10001_v26, 2 }
  0xa3   : > { %8576 = vmatprep.mubr.msk.f32.mxu0 %vm666_vm1, %v10473_v45  ;;  %13708 = vst [vmem:[#allocation84_spill] sm:$0xff] %v10500_v58 }
  0xa4   : > { %8660 = vmatmul.mubr.msk.f32.gmra.mxu1 %vm666_vm1, %v9860_v59  ;;  %v10506_v59 = vsel %vm1554_vm3, %v1591_v52, %v1593_v24  ;;  %v1618_v52 = vrot.slane %v10018_v8, 2  ;;  %v10590_v26 = vsel %vm1554_vm3, %v1614_v34, %v1616_v20  ;;  %v1621_v24 = vrot.slane %v10026_v57, 2  ;;  %v13732_v20 = vld [vmem:[#allocation40_spill] sm:$0xff] }
  0xa5   : > { %8662 = vmatprep.mubr.msk.f32.mxu1 %vm666_vm1, %v9865_v60  ;;  %13709 = vst [vmem:[#allocation85_spill] sm:$0xff] %v10506_v59  ;;  %v1598_v60 = vrot.slane %v9891_v7, 2  ;;  %13719 = vst [vmem:[#allocation95_spill] sm:$0xff] %v10590_v26 }
  0xa6   : > { %8577 = vmatmul.mubr.msk.f32.gmra.mxu0 %vm666_vm1, %v10483_v46  ;;  %v10617_v33 = vsel %vm1554_vm3, %v1621_v24, %v1623_v21 }
  0xa7   : > { %8579 = vmatprep.mubr.msk.f32.mxu0 %vm666_vm1, %v10490_v53  ;;  %13722 = vst [vmem:[#allocation98_spill] sm:$0xff] %v10617_v33 }
  0xa8   : > { %8663 = vmatmul.mubr.msk.f32.gmra.mxu1 %vm666_vm1, %v9888_v3  ;;  %v10523_v3 = vsel %vm1554_vm3, %v1597_v41, %v1598_v60  ;;  %v1625_v41 = vrot.slane %v10049_v5, 2 }
  0xa9   : > { %8665 = vmatprep.mubr.msk.f32.mxu1 %vm666_vm1, %v9891_v7  ;;  %13711 = vst [vmem:[#allocation87_spill] sm:$0xff] %v10523_v3  ;;  %v10533_v7 = vsel %vm1554_vm3, %v1598_v60, %v1600_v30  ;;  %v1628_v60 = vrot.slane %v10070_v15, 2  ;;  %v1630_v30 = vrot.slane %v10075_v16, 2 }
  0xaa   : > { %8580 = vmatmul.mubr.msk.f32.gmra.mxu0 %vm666_vm1, %v10500_v58  ;;  %13712 = vst [vmem:[#allocation88_spill] sm:$0xff] %v10533_v7 }
  0xab   : > { %8582 = vmatprep.mubr.msk.f32.mxu0 %vm666_vm1, %v10506_v59  ;;  %v10640_v16 = vsel %vm1554_vm3, %v1628_v60, %v1630_v30  ;;  %v13737_v30 = vld [vmem:[#allocation45_spill] sm:$0xff] }
  0xac   : > { %8666 = vmatmul.mubr.msk.f32.gmra.mxu1 %vm666_vm1, %v9912_v17  ;;  %v1605_v17 = vrot.slane %v9944_v10, 2  ;;  %13725 = vst [vmem:[#allocation101_spill] sm:$0xff] %v10640_v16 }
  0xad   : > { %8668 = vmatprep.mubr.msk.f32.mxu1 %vm666_vm1, %v9941_v40 }
  0xae   : > { %8583 = vmatmul.mubr.msk.f32.gmra.mxu0 %vm666_vm1, %v10517_v2  ;;  %v10550_v40 = vsel %vm1554_vm3, %v1604_v27, %v1605_v17  ;;  %v1635_v27 = vrot.slane %v10100_v29, 2 }
  0xaf   : > { %8585 = vmatprep.mubr.msk.f32.mxu0 %vm666_vm1, %v10523_v3  ;;  %13714 = vst [vmem:[#allocation90_spill] sm:$0xff] %v10550_v40 }
  0xb0   : > { %8669 = vmatmul.mubr.msk.f32.gmra.mxu1 %vm666_vm1, %v9944_v10  ;;  %v10556_v10 = vsel %vm1554_vm3, %v1605_v17, %v1607_v11  ;;  %v13727_v17 = vld [vmem:[#allocation35_spill] sm:$0xff] }
  0xb1   : > { %8671 = vmatprep.mubr.msk.f32.mxu1 %vm666_vm1, %v9952_v43  ;;  %13715 = vst [vmem:[#allocation91_spill] sm:$0xff] %v10556_v10  ;;  %v1612_v43 = vrot.slane %v9978_v1, 2  ;;  %v1637_v11 = vrot.slane %v13727_v17, 2 }
  0xb2   : > { %8586 = vmatmul.mubr.msk.f32.gmra.mxu0 %vm666_vm1, %v10533_v7 }
  0xb3   : > { %8588 = vmatprep.mubr.msk.f32.mxu0 %vm666_vm1, %v10540_v18 }
  0xb4   : > { %8672 = vmatmul.mubr.msk.f32.gmra.mxu1 %vm666_vm1, %v9975_v63  ;;  %v10573_v63 = vsel %vm1554_vm3, %v1611_v13, %v1612_v43 }
  0xb5   : > { %8674 = vmatprep.mubr.msk.f32.mxu1 %vm666_vm1, %v9978_v1  ;;  %13717 = vst [vmem:[#allocation93_spill] sm:$0xff] %v10573_v63  ;;  %v10583_v1 = vsel %vm1554_vm3, %v1612_v43, %v1614_v34  ;;  %v10667_v34 = vsel %vm1554_vm3, %v1635_v27, %v1637_v11 }
  0xb6   : > { %8589 = vmatmul.mubr.msk.f32.gmra.mxu0 %vm666_vm1, %v10550_v40  ;;  %13718 = vst [vmem:[#allocation94_spill] sm:$0xff] %v10583_v1 }
  0xb7   : > { %8591 = vmatprep.mubr.msk.f32.mxu0 %vm666_vm1, %v10556_v10 }
  0xb8   : > { %8675 = vmatmul.mubr.msk.f32.gmra.mxu1 %vm666_vm1, %v9996_v6  ;;  %v1619_v6 = vrot.slane %v10021_v55, 2 }
  0xb9   : > { %8677 = vmatprep.mubr.msk.f32.mxu1 %vm666_vm1, %v10018_v8 }
  0xba   : > { %8592 = vmatmul.mubr.msk.f32.gmra.mxu0 %vm666_vm1, %v10567_v62  ;;  %v10600_v8 = vsel %vm1554_vm3, %v1618_v52, %v1619_v6  ;;  %v1642_v52 = vrot.slane %v13732_v20, 2 }
  0xbb   : > { %8594 = vmatprep.mubr.msk.f32.mxu0 %vm666_vm1, %v10573_v63  ;;  %13720 = vst [vmem:[#allocation96_spill] sm:$0xff] %v10600_v8 }
  0xbc   : > { %8678 = vmatmul.mubr.msk.f32.gmra.mxu1 %vm666_vm1, %v10021_v55  ;;  %v10606_v55 = vsel %vm1554_vm3, %v1619_v6, %v1621_v24  ;;  %v13734_v24 = vld [vmem:[#allocation41_spill] sm:$0xff] }
  0xbd   : > { %8680 = vmatprep.mubr.msk.f32.mxu1 %vm666_vm1, %v10026_v57  ;;  %13721 = vst [vmem:[#allocation97_spill] sm:$0xff] %v10606_v55  ;;  %v1626_v57 = vrot.slane %v10052_v50, 2  ;;  %v1644_v21 = vrot.slane %v13734_v24, 2 }
  0xbe   : > { %8595 = vmatmul.mubr.msk.f32.gmra.mxu0 %vm666_vm1, %v10583_v1 }
  0xbf   : > { %8597 = vmatprep.mubr.msk.f32.mxu0 %vm666_vm1, %v10590_v26 }
  0xc0   : > { %8681 = vmatmul.mubr.msk.f32.gmra.mxu1 %vm666_vm1, %v10049_v5  ;;  %v10623_v5 = vsel %vm1554_vm3, %v1625_v41, %v1626_v57  ;;  %v13735_v41 = vld [vmem:[#allocation44_spill] sm:$0xff] }
  0xc1   : > { %8683 = vmatprep.mubr.msk.f32.mxu1 %vm666_vm1, %v10052_v50  ;;  %13723 = vst [vmem:[#allocation99_spill] sm:$0xff] %v10623_v5  ;;  %v10633_v50 = vsel %vm1554_vm3, %v1626_v57, %v1628_v60  ;;  %v1646_v60 = vrot.slane %v13735_v41, 2 }
  0xc2   : > { %8598 = vmatmul.mubr.msk.f32.gmra.mxu0 %vm666_vm1, %v10600_v8  ;;  %13724 = vst [vmem:[#allocation100_spill] sm:$0xff] %v10633_v50 }
  0xc3   : > { %8600 = vmatprep.mubr.msk.f32.mxu0 %vm666_vm1, %v10606_v55 }
  0xc4   : > { %8684 = vmatmul.mubr.msk.f32.gmra.mxu1 %vm666_vm1, %v10070_v15  ;;  %v1633_v15 = vrot.slane %v10095_v56, 2 }
  0xc5   : > { %8686 = vmatprep.mubr.msk.f32.mxu1 %vm666_vm1, %v10092_v35 }
  0xc6   : > { %8601 = vmatmul.mubr.msk.f32.gmra.mxu0 %vm666_vm1, %v10617_v33  ;;  %v10650_v35 = vsel %vm1554_vm3, %v1632_v9, %v1633_v15  ;;  %v10656_v38 = vsel %vm1554_vm3, %v1633_v15, %v1635_v27  ;;  %v1647_v9 = vrot.slane %v13737_v30, 2  ;;  %v10690_v15 = vsel %vm1554_vm3, %v1642_v52, %v1644_v21  ;;  %v13739_v27 = vld [vmem:[#allocation46_spill] sm:$0xff] }
  0xc7   : > { %8603 = vmatprep.mubr.msk.f32.mxu0 %vm666_vm1, %v10623_v5  ;;  %13726 = vst [vmem:[#allocation102_spill] sm:$0xff] %v10650_v35  ;;  %13729 = vst [vmem:[#allocation35_spill] sm:$0xff] %v10656_v38  ;;  %v1649_v17 = vrot.slane %v13739_v27, 2 }
  0xc8   : > { %8687 = vmatmul.mubr.msk.f32.gmra.mxu1 %vm666_vm1, %v10095_v56  ;;  %v13728_v56 = vld [vmem:[#allocation36_spill] sm:$0xff]  ;;  %13738 = vst [vmem:[#allocation41_spill] sm:$0xff] %v10690_v15  ;;  %v10700_v11 = vsel %vm1554_vm3, %v1646_v60, %v1647_v9 }
  0xc9   : > { %8689 = vmatprep.mubr.msk.f32.mxu1 %vm666_vm1, %v10100_v29  ;;  %v1639_v13 = vrot.slane %v13728_v56, 2  ;;  %v13730_v29 = vld [vmem:[#allocation37_spill] sm:$0xff]  ;;  %13731 = vst [vmem:[#allocation36_spill] sm:$0xff] %v10667_v34  ;;  %13740 = vst [vmem:[#allocation44_spill] sm:$0xff] %v10700_v11 }
  0xca   : > { %8604 = vmatmul.mubr.msk.f32.gmra.mxu0 %vm666_vm1, %v10633_v50  ;;  %v1640_v43 = vrot.slane %v13730_v29, 2 }
  0xcb   : > { %8606 = vmatprep.mubr.msk.f32.mxu0 %vm666_vm1, %v10640_v16 }
  0xcc   : > { %8690 = vmatmul.mubr.msk.f32.gmra.mxu1 %vm666_vm1, %v13728_v56  ;;  %v10673_v6 = vsel %vm1554_vm3, %v1639_v13, %v1640_v43  ;;  %v10683_v57 = vsel %vm1554_vm3, %v1640_v43, %v1642_v52  ;;  %v13741_v56 = vld [vmem:[#allocation49_spill] sm:$0xff]  ;;  %v10706_v43 = vsel %vm1554_vm3, %v1647_v9, %v1649_v17  ;;  %v13744_v52 = vld [vmem:[#allocation51_spill] sm:$0xff] }
  0xcd   : > { %8692 = vmatprep.mubr.msk.f32.mxu1 %vm666_vm1, %v13730_v29  ;;  %13733 = vst [vmem:[#allocation37_spill] sm:$0xff] %v10673_v6  ;;  %13736 = vst [vmem:[#allocation40_spill] sm:$0xff] %v10683_v57  ;;  %v1651_v13 = vrot.slane %v13741_v56, 2  ;;  %v13742_v29 = vld [vmem:[#allocation50_spill] sm:$0xff]  ;;  %v1654_v24 = vrot.slane %v13744_v52, 2  ;;  %v13748_v9 = vld [vmem:[#allocation55_spill] sm:$0xff] }
  0xce   : > { %8607 = vmatmul.mubr.msk.f32.gmra.mxu0 %vm666_vm1, %v10650_v35  ;;  %13743 = vst [vmem:[#allocation45_spill] sm:$0xff] %v10706_v43  ;;  %v13749_v56 = vld [vmem:[#allocation58_spill] sm:$0xff] }
  0xcf   : > { %8609 = vmatprep.mubr.msk.f32.mxu0 %vm666_vm1, %v10656_v38  ;;  %v10717_v21 = vsel %vm1554_vm3, %v1649_v17, %v1651_v13 }
  0xd0   : > { %8693 = vmatmul.mubr.msk.f32.gmra.mxu1 %vm666_vm1, %v13732_v20  ;;  %v1653_v20 = vrot.slane %v13742_v29, 2  ;;  %13745 = vst [vmem:[#allocation46_spill] sm:$0xff] %v10717_v21 }
  0xd1   : > { %8695 = vmatprep.mubr.msk.f32.mxu1 %vm666_vm1, %v13735_v41  ;;  %v13746_v41 = vld [vmem:[#allocation54_spill] sm:$0xff] }
  0xd2   : > { %8610 = vmatmul.mubr.msk.f32.gmra.mxu0 %vm666_vm1, %v10667_v34  ;;  %v1656_v60 = vrot.slane %v13746_v41, 2 }
  0xd3   : > { %8612 = vmatprep.mubr.msk.f32.mxu0 %vm666_vm1, %v10673_v6 }
  0xd4   : > { %8696 = vmatmul.mubr.msk.f32.gmra.mxu1 %vm666_vm1, %v13737_v30  ;;  %v10723_v30 = vsel %vm1554_vm3, %v1653_v20, %v1654_v24  ;;  %v10733_v13 = vsel %vm1554_vm3, %v1654_v24, %v1656_v60 }
  0xd5   : > { %8698 = vmatprep.mubr.msk.f32.mxu1 %vm666_vm1, %v13739_v27  ;;  %13747 = vst [vmem:[#allocation49_spill] sm:$0xff] %v10723_v30  ;;  %v1658_v27 = vrot.slane %v13748_v9, 2  ;;  %13750 = vst [vmem:[#allocation50_spill] sm:$0xff] %v10733_v13  ;;  %v13753_v9 = vld [vmem:[#allocation60_spill] sm:$0xff] }
  0xd6   : > { %8613 = vmatmul.mubr.msk.f32.gmra.mxu0 %vm666_vm1, %v10683_v57  ;;  %v1663_v32 = vrot.slane %v13753_v9, 2 }
  0xd7   : > { %8615 = vmatprep.mubr.msk.f32.mxu0 %vm666_vm1, %v10690_v15 }
  0xd8   : > { %8699 = vmatmul.mubr.msk.f32.gmra.mxu1 %vm666_vm1, %v13742_v29  ;;  %v1660_v29 = vrot.slane %v13749_v56, 2 }
  0xd9   : > { %8701 = vmatprep.mubr.msk.f32.mxu1 %vm666_vm1, %v13744_v52  ;;  %v13751_v52 = vld [vmem:[#allocation59_spill] sm:$0xff] }
  0xda   : > { %8616 = vmatmul.mubr.msk.f32.gmra.mxu0 %vm666_vm1, %v10700_v11  ;;  %v1661_v20 = vrot.slane %v13751_v52, 2 }
  0xdb   : > { %8618 = vmatprep.mubr.msk.f32.mxu0 %vm666_vm1, %v10706_v43 }
  0xdc   : > { %8702 = vmatmul.mubr.msk.f32.gmra.mxu1 %vm666_vm1, %v13746_v41  ;;  %v10740_v41 = vsel %vm1554_vm3, %v1656_v60, %v1658_v27  ;;  %v10750_v24 = vsel %vm1554_vm3, %v1660_v29, %v1661_v20  ;;  %v10756_v60 = vld [vmem:[%s13407_s1 + $0x1c] sm:$0xf]  ;;  %v1668_v29 = vrot.slane %v10274_v51, 2 }
  0xdd   : > { %8704 = vmatprep.mubr.msk.f32.mxu1 %vm666_vm1, %v13749_v56  ;;  %13752 = vst [vmem:[#allocation51_spill] sm:$0xff] %v10740_v41  ;;  %13754 = vst [vmem:[#allocation54_spill] sm:$0xff] %v10750_v24  ;;  %v13755_v56 = vld [vmem:[#allocation63_spill] sm:$0xff]  ;;  %8971 = vmatprep.subr.msk.mxu1 %vm775_vm0, %v10756_v60 }
  0xde   : > { %8619 = vmatmul.mubr.msk.f32.gmra.mxu0 %vm666_vm1, %v10717_v21 }
  0xdf   : > { %8621 = vmatprep.mubr.msk.f32.mxu0 %vm666_vm1, %v10723_v30  ;;  %v8477_v17 = vpop.f32.mrf.mxu1 }
  0xe0   : > { %8705 = vmatmul.mubr.msk.f32.gmra.mxu1 %vm666_vm1, %v13751_v52  ;;  %v1665_v52 = vrot.slane %v13755_v56, 2 }
  0xe1   : > { %v1288_v61 = vpop.f32.mrf.mxu1  ;;  %8707 = vmatprep.mubr.msk.f32.mxu1 %vm666_vm1, %v13753_v9  ;;  %v13756_v9 = vld [vmem:[#allocation64_spill] sm:$0xff] }
  0xe2   : > { %v8394_v17 = vpop.f32.mrf.mxu0  ;;  %8622 = vmatmul.mubr.msk.f32.gmra.mxu0 %vm666_vm1, %v10733_v13  ;;  %v1667_v54 = vrot.slane %v13756_v9, 2 }
  0xe3   : > { %8624 = vmatprep.mubr.msk.f32.mxu0 %vm666_vm1, %v10740_v41  ;;  %v10761_v17 = vsel %vm1554_vm3, %v1661_v20, %v1663_v32  ;;  %v10776_v20 = vsel %vm1554_vm3, %v1663_v32, %v1665_v52 }
  0xe4   : > { %v845_v61 = vpop.f32.mrf.mxu0  ;;  %v8480_v27 = vpop.f32.mrf.mxu1  ;;  %8708 = vmatmul.mubr.msk.f32.gmra.mxu1 %vm666_vm1, %v13756_v9  ;;  %13757 = vst [vmem:[#allocation55_spill] sm:$0xff] %v10761_v17  ;;  %13759 = vst [vmem:[#allocation59_spill] sm:$0xff] %v10776_v20  ;;  %v1670_v9 = vrot.slane %v10295_v48, 2 }
  0xe5   : > { %8710 = vmatprep.mubr.msk.f32.mxu1 %vm666_vm1, %v10274_v51  ;;  %v10782_v51 = vsel %vm1554_vm3, %v1667_v54, %v1668_v29  ;;  %v1675_v54 = vrot.slane %v10321_v25, 2 }
  0xe6   : > { %v8397_v56 = vpop.f32.mrf.mxu0  ;;  %8625 = vmatmul.mubr.msk.f32.gmra.mxu0 %vm666_vm1, %v10750_v24  ;;  %v1298_v61 = vpop.f32.mrf.mxu1  ;;  %13760 = vst [vmem:[#allocation60_spill] sm:$0xff] %v10782_v51  ;;  %v13761_v24 = vld [vmem:[#allocation67_spill] sm:$0xff] }
  0xe7   : > { %v10771_v47 = vadd.f32 %v8480_v27, %v8397_v56  ;;  %8627 = vmatprep.mubr.msk.f32.mxu0 %vm666_vm1, %v10761_v17  ;;  %v1672_v61 = vrot.slane %v13761_v24, 2 }
  0xe8   : > { %v855_v0 = vpop.f32.mrf.mxu0  ;;  %v8483_v39 = vpop.f32.mrf.mxu1  ;;  %8711 = vmatmul.mubr.msk.f32.gmra.mxu1 %vm666_vm1, %v10295_v48  ;;  %v10794_v48 = vsel %vm1554_vm3, %v1668_v29, %v1670_v9  ;;  %v10809_v29 = vld [vmem:[%s9689_s12 + $0x240] sm:$0xff] }
  0xe9   : > { %13758 = vst [vmem:[#allocation58_spill] sm:$0xff] %v10771_v47  ;;  %8713 = vmatprep.mubr.msk.f32.mxu1 %vm666_vm1, %v10318_v49  ;;  %13763 = vst [vmem:[#allocation64_spill] sm:$0xff] %v10794_v48  ;;  %v1674_v0 = vrot.slane %v10318_v49, 2  ;;  %v10801_v47 = vsel %vm1554_vm3, %v1670_v9, %v1672_v61 }
  0xea   : > { %v8400_v27 = vpop.f32.mrf.mxu0  ;;  %8628 = vmatmul.mubr.msk.f32.gmra.mxu0 %vm666_vm1, %v10776_v20  ;;  %v1308_v32 = vpop.f32.mrf.mxu1  ;;  %13764 = vst [vmem:[#allocation67_spill] sm:$0xff] %v10801_v47 }
  0xeb   : > { %v10789_v52 = vadd.f32 %v8483_v39, %v8400_v27  ;;  %8630 = vmatprep.mubr.msk.f32.mxu0 %vm666_vm1, %v10782_v51  ;;  %v1677_v39 = vrot.slane %v10326_v4, 2  ;;  %v10814_v51 = vld [vmem:[%s9689_s12 + $0x248] sm:$0xff]  ;;  %v10821_v9 = vsel %vm1554_vm3, %v1674_v0, %v1675_v54 }
  0xec   : > { %v865_v24 = vpop.f32.mrf.mxu0  ;;  %v8486_v56 = vpop.f32.mrf.mxu1  ;;  %8714 = vmatmul.mubr.msk.f32.gmra.mxu1 %vm666_vm1, %v10321_v25  ;;  %13767 = vst [vmem:[#allocation105_spill] sm:$0xff] %v10821_v9 }
  0xed   : > { %13762 = vst [vmem:[#allocation63_spill] sm:$0xff] %v10789_v52  ;;  %v10804_v27 = vadd.f32 %v1308_v32, %v865_v24  ;;  %8716 = vmatprep.mubr.msk.f32.mxu1 %vm666_vm1, %v10326_v4  ;;  %v1679_v4 = vrot.slane %v10344_v28, 2  ;;  %v10827_v24 = vsel %vm1554_vm3, %v1675_v54, %v1677_v39 }
  0xee   : > { %v8403_v49 = vpop.f32.mrf.mxu0  ;;  %8631 = vmatmul.mubr.msk.f32.gmra.mxu0 %vm666_vm1, %v10794_v48  ;;  %v1318_v52 = vpop.f32.mrf.mxu1  ;;  %13768 = vst [vmem:[#allocation106_spill] sm:$0xff] %v10827_v24 }
  0xef   : > { %13765 = vst [vmem:[#allocation103_spill] sm:$0xff] %v10804_v27  ;;  %v10816_v25 = vadd.f32 %v8486_v56, %v8403_v49  ;;  %8633 = vmatprep.mubr.msk.f32.mxu0 %vm666_vm1, %v10801_v47  ;;  %v10834_v56 = vld [vmem:[%s9689_s12 + $0x250] sm:$0xff]  ;;  %v10843_v54 = vsel %vm1554_vm3, %v1677_v39, %v1679_v4 }
  0xf0   : > { %v875_v61 = vpop.f32.mrf.mxu0  ;;  %v8489_v32 = vpop.f32.mrf.mxu1  ;;  %8717 = vmatmul.mubr.msk.f32.gmra.mxu1 %vm666_vm1, %v10809_v29  ;;  %13771 = vst [vmem:[#allocation109_spill] sm:$0xff] %v10843_v54 }
  0xf1   : > { %13766 = vst [vmem:[#allocation104_spill] sm:$0xff] %v10816_v25  ;;  %v10829_v27 = vadd.f32 %v1318_v52, %v875_v61  ;;  %8719 = vmatprep.mubr.msk.f32.mxu1 %vm666_vm1, %v10814_v51 }
  0xf2   : > { %v8406_v49 = vpop.f32.mrf.mxu0  ;;  %8634 = vmatmul.mubr.msk.f32.gmra.mxu0 %vm666_vm1, %v10821_v9  ;;  %v1328_v28 = vpop.f32.mrf.mxu1 }
  0xf3   : > { %13769 = vst [vmem:[#allocation107_spill] sm:$0xff] %v10829_v27  ;;  %v10838_v0 = vadd.f32 %v8489_v32, %v8406_v49  ;;  %8636 = vmatprep.mubr.msk.f32.mxu0 %vm666_vm1, %v10827_v24 }
  0xf4   : > { %v885_v52 = vpop.f32.mrf.mxu0  ;;  %v8492_v61 = vpop.f32.mrf.mxu1  ;;  %8720 = vmatmul.mubr.msk.f32.gmra.mxu1 %vm666_vm1, %v10834_v56 }
  0xf5   : > { %13770 = vst [vmem:[#allocation108_spill] sm:$0xff] %v10838_v0  ;;  %v10847_v27 = vadd.f32 %v1328_v28, %v885_v52  ;;  %8807 = vmatprep.mubr.msk.f32.mxu1 %vm666_vm1, %v10398_v12  ;;  %v13772_v0 = vld [vmem:[#allocation5_spill] sm:$0xff] }
  0xf6   : > { %v8409_v25 = vpop.f32.mrf.mxu0  ;;  %8637 = vmatmul.mubr.msk.f32.gmra.mxu0 %vm666_vm1, %v10843_v54  ;;  %v1338_v32 = vpop.f32.mrf.mxu1  ;;  %v10868_v12 = vld [vmem:[%s13407_s1 + $0x20] sm:$0xf] }
  0xf7   : > { %v10853_v49 = vadd.f32 %v8492_v61, %v8409_v25  ;;  %8724 = vmatprep.mubr.msk.f32.mxu0 %vm666_vm1, %v13772_v0  ;;  %13773 = vst [vmem:[#allocation5_spill] sm:$0xff] %v10868_v12  ;;  %v13774_v0 = vld [vmem:[#allocation6_spill] sm:$0xff] }
  0xf8   : > { %v895_v39 = vpop.f32.mrf.mxu0  ;;  %v8495_v4 = vpop.f32.mrf.mxu1  ;;  %8808 = vmatmul.mubr.msk.f32.vlgmr.msra.gmra.mxu1 %vm666_vm1, %v10404_v14  ;;  %v13775_v14 = vld [vmem:[#allocation7_spill] sm:$0xff] }
  0xf9   : > { %v10859_v28 = vadd.f32 %v1338_v32, %v895_v39  ;;  %8810 = vmatprep.mubr.msk.f32.mxu1 %vm666_vm1, %v10417_v19  ;;  %8972 = vmatpush3.msk.msra.mxu1 %vm775_vm0, %v10756_v60 }
  0xfa   : > { %v8412_v25 = vpop.f32.mrf.mxu0  ;;  %8725 = vmatmul.mubr.msk.f32.vlgmr.msra.gmra.mxu0 %vm666_vm1, %v13774_v0  ;;  %v1348_v52 = vpop.f32.mrf.mxu1  ;;  %v13779_v0 = vld [vmem:[#allocation9_spill] sm:$0xff] }
  0xfb   : > { %v10872_v61 = vadd.f32 %v8495_v4, %v8412_v25  ;;  %8889 = vmatpush3.msk.msra.mxu0 %vm775_vm0, %v10389_v42  ;;  %8727 = vmatprep.mubr.msk.f32.mxu0 %vm666_vm1, %v13775_v14  ;;  %v13777_v4 = vld [vmem:[#allocation8_spill] sm:$0xff] }
  0xfc   : > { %v905_v19 = vpop.f32.mrf.mxu0  ;;  %v8498_v60 = vpop.f32.mrf.mxu1  ;;  %8811 = vmatmul.mubr.msk.f32.gmra.mxu1 %vm666_vm1, %v10423_v22  ;;  %9054 = vmatprep.subr.msk.mxu0 %vm775_vm0, %v10868_v12 }
  0xfd   : > { %v10882_v32 = vadd.f32 %v1348_v52, %v905_v19  ;;  %8813 = vmatprep.mubr.msk.f32.mxu1 %vm666_vm1, %v10433_v23  ;;  %v13781_v23 = vld [vmem:[#allocation10_spill] sm:$0xff] }
  0xfe   : > { %v8415_v39 = vpop.f32.mrf.mxu0  ;;  %8728 = vmatmul.mubr.msk.f32.gmra.mxu0 %vm666_vm1, %v13777_v4  ;;  %v1358_v42 = vpop.f32.mrf.mxu1 }
  0xff   : > { %13776 = vst [vmem:[#allocation6_spill] sm:$0xff] %v10882_v32  ;;  %v10888_v25 = vadd.f32 %v8498_v60, %v8415_v39  ;;  %8730 = vmatprep.mubr.msk.f32.mxu0 %vm666_vm1, %v13779_v0  ;;  %v13783_v39 = vld [vmem:[#allocation11_spill] sm:$0xff] }
 0x100   : > { %v915_v14 = vpop.f32.mrf.mxu0  ;;  %v8501_v22 = vpop.f32.mrf.mxu1  ;;  %8814 = vmatmul.mubr.msk.f32.gmra.mxu1 %vm666_vm1, %v10440_v31 }
 0x101   : > { %13778 = vst [vmem:[#allocation7_spill] sm:$0xff] %v10888_v25  ;;  %v10894_v52 = vadd.f32 %v1358_v42, %v915_v14  ;;  %8816 = vmatprep.mubr.msk.f32.mxu1 %vm666_vm1, %v10450_v36  ;;  %v13785_v36 = vld [vmem:[#allocation12_spill] sm:$0xff] }
 0x102   : > { %v8418_v19 = vpop.f32.mrf.mxu0  ;;  %8731 = vmatmul.mubr.msk.f32.gmra.mxu0 %vm666_vm1, %v13781_v23  ;;  %v1368_v32 = vpop.f32.mrf.mxu1 }
 0x103   : > { %13780 = vst [vmem:[#allocation8_spill] sm:$0xff] %v10894_v52  ;;  %v10900_v60 = vadd.f32 %v8501_v22, %v8418_v19  ;;  %8733 = vmatprep.mubr.msk.f32.mxu0 %vm666_vm1, %v13783_v39  ;;  %v13787_v19 = vld [vmem:[#allocation13_spill] sm:$0xff] }
 0x104   : > { %v925_v25 = vpop.f32.mrf.mxu0  ;;  %v8504_v12 = vpop.f32.mrf.mxu1  ;;  %8817 = vmatmul.mubr.msk.f32.gmra.mxu1 %vm666_vm1, %v10456_v37 }
 0x105   : > { %13782 = vst [vmem:[#allocation9_spill] sm:$0xff] %v10900_v60  ;;  %v10906_v42 = vadd.f32 %v1368_v32, %v925_v25  ;;  %8819 = vmatprep.mubr.msk.f32.mxu1 %vm666_vm1, %v10467_v44  ;;  %v13789_v44 = vld [vmem:[#allocation14_spill] sm:$0xff] }
 0x106   : > { %v8421_v14 = vpop.f32.mrf.mxu0  ;;  %8734 = vmatmul.mubr.msk.f32.gmra.mxu0 %vm666_vm1, %v13785_v36  ;;  %v1378_v31 = vpop.f32.mrf.mxu1 }
 0x107   : > { %13784 = vst [vmem:[#allocation10_spill] sm:$0xff] %v10906_v42  ;;  %v10912_v22 = vadd.f32 %v8504_v12, %v8421_v14  ;;  %8736 = vmatprep.mubr.msk.f32.mxu0 %vm666_vm1, %v13787_v19  ;;  %v13791_v14 = vld [vmem:[#allocation15_spill] sm:$0xff] }
 0x108   : > { %v935_v60 = vpop.f32.mrf.mxu0  ;;  %v8507_v52 = vpop.f32.mrf.mxu1  ;;  %8820 = vmatmul.mubr.msk.f32.gmra.mxu1 %vm666_vm1, %v10473_v45 }
 0x109   : > { %13786 = vst [vmem:[#allocation11_spill] sm:$0xff] %v10912_v22  ;;  %v10918_v32 = vadd.f32 %v1378_v31, %v935_v60  ;;  %8822 = vmatprep.mubr.msk.f32.mxu1 %vm666_vm1, %v10483_v46  ;;  %v13793_v46 = vld [vmem:[#allocation16_spill] sm:$0xff] }
 0x10a   : > { %v8424_v25 = vpop.f32.mrf.mxu0  ;;  %8737 = vmatmul.mubr.msk.f32.gmra.mxu0 %vm666_vm1, %v13789_v44  ;;  %v1388_v37 = vpop.f32.mrf.mxu1 }
 0x10b   : > { %13788 = vst [vmem:[#allocation12_spill] sm:$0xff] %v10918_v32  ;;  %v10924_v12 = vadd.f32 %v8507_v52, %v8424_v25  ;;  %8739 = vmatprep.mubr.msk.f32.mxu0 %vm666_vm1, %v13791_v14  ;;  %v13795_v25 = vld [vmem:[#allocation17_spill] sm:$0xff] }
 0x10c   : > { %v945_v22 = vpop.f32.mrf.mxu0  ;;  %v8510_v42 = vpop.f32.mrf.mxu1  ;;  %8823 = vmatmul.mubr.msk.f32.gmra.mxu1 %vm666_vm1, %v10490_v53 }
 0x10d   : > { %13790 = vst [vmem:[#allocation13_spill] sm:$0xff] %v10924_v12  ;;  %v10930_v31 = vadd.f32 %v1388_v37, %v945_v22  ;;  %8825 = vmatprep.mubr.msk.f32.mxu1 %vm666_vm1, %v10500_v58  ;;  %v13797_v58 = vld [vmem:[#allocation18_spill] sm:$0xff] }
 0x10e   : > { %v8427_v60 = vpop.f32.mrf.mxu0  ;;  %8740 = vmatmul.mubr.msk.f32.gmra.mxu0 %vm666_vm1, %v13793_v46  ;;  %v1398_v45 = vpop.f32.mrf.mxu1 }
 0x10f   : > { %13792 = vst [vmem:[#allocation14_spill] sm:$0xff] %v10930_v31  ;;  %v10936_v52 = vadd.f32 %v8510_v42, %v8427_v60  ;;  %8742 = vmatprep.mubr.msk.f32.mxu0 %vm666_vm1, %v13795_v25  ;;  %v13799_v60 = vld [vmem:[#allocation19_spill] sm:$0xff] }
 0x110   : > { %v955_v12 = vpop.f32.mrf.mxu0  ;;  %v8513_v32 = vpop.f32.mrf.mxu1  ;;  %8826 = vmatmul.mubr.msk.f32.gmra.mxu1 %vm666_vm1, %v10506_v59 }
 0x111   : > { %13794 = vst [vmem:[#allocation15_spill] sm:$0xff] %v10936_v52  ;;  %v10942_v37 = vadd.f32 %v1398_v45, %v955_v12  ;;  %8828 = vmatprep.mubr.msk.f32.mxu1 %vm666_vm1, %v10517_v2  ;;  %v13801_v2 = vld [vmem:[#allocation20_spill] sm:$0xff] }
 0x112   : > { %v8430_v22 = vpop.f32.mrf.mxu0  ;;  %8743 = vmatmul.mubr.msk.f32.gmra.mxu0 %vm666_vm1, %v13797_v58  ;;  %v1408_v53 = vpop.f32.mrf.mxu1 }
 0x113   : > { %13796 = vst [vmem:[#allocation16_spill] sm:$0xff] %v10942_v37  ;;  %v10948_v42 = vadd.f32 %v8513_v32, %v8430_v22  ;;  %8745 = vmatprep.mubr.msk.f32.mxu0 %vm666_vm1, %v13799_v60  ;;  %v13803_v22 = vld [vmem:[#allocation21_spill] sm:$0xff] }
 0x114   : > { %v965_v52 = vpop.f32.mrf.mxu0  ;;  %v8516_v31 = vpop.f32.mrf.mxu1  ;;  %8829 = vmatmul.mubr.msk.f32.gmra.mxu1 %vm666_vm1, %v10523_v3 }
 0x115   : > { %13798 = vst [vmem:[#allocation17_spill] sm:$0xff] %v10948_v42  ;;  %v10954_v45 = vadd.f32 %v1408_v53, %v965_v52  ;;  %8831 = vmatprep.mubr.msk.f32.mxu1 %vm666_vm1, %v10533_v7  ;;  %v13805_v7 = vld [vmem:[#allocation22_spill] sm:$0xff] }
 0x116   : > { %v8433_v12 = vpop.f32.mrf.mxu0  ;;  %8746 = vmatmul.mubr.msk.f32.gmra.mxu0 %vm666_vm1, %v13801_v2  ;;  %v1418_v59 = vpop.f32.mrf.mxu1 }
 0x117   : > { %13800 = vst [vmem:[#allocation18_spill] sm:$0xff] %v10954_v45  ;;  %v10960_v32 = vadd.f32 %v8516_v31, %v8433_v12  ;;  %8748 = vmatprep.mubr.msk.f32.mxu0 %vm666_vm1, %v13803_v22  ;;  %v13807_v12 = vld [vmem:[#allocation23_spill] sm:$0xff] }
 0x118   : > { %v975_v42 = vpop.f32.mrf.mxu0  ;;  %v8519_v37 = vpop.f32.mrf.mxu1  ;;  %8832 = vmatmul.mubr.msk.f32.gmra.mxu1 %vm666_vm1, %v10540_v18 }
 0x119   : > { %13802 = vst [vmem:[#allocation19_spill] sm:$0xff] %v10960_v32  ;;  %v10966_v53 = vadd.f32 %v1418_v59, %v975_v42  ;;  %8834 = vmatprep.mubr.msk.f32.mxu1 %vm666_vm1, %v10550_v40  ;;  %v13809_v40 = vld [vmem:[#allocation24_spill] sm:$0xff] }
 0x11a   : > { %v8436_v52 = vpop.f32.mrf.mxu0  ;;  %8749 = vmatmul.mubr.msk.f32.gmra.mxu0 %vm666_vm1, %v13805_v7  ;;  %v1428_v3 = vpop.f32.mrf.mxu1 }
 0x11b   : > { %13804 = vst [vmem:[#allocation20_spill] sm:$0xff] %v10966_v53  ;;  %v10972_v31 = vadd.f32 %v8519_v37, %v8436_v52  ;;  %8751 = vmatprep.mubr.msk.f32.mxu0 %vm666_vm1, %v13807_v12  ;;  %v13811_v52 = vld [vmem:[#allocation25_spill] sm:$0xff] }
 0x11c   : > { %v985_v32 = vpop.f32.mrf.mxu0  ;;  %v8522_v45 = vpop.f32.mrf.mxu1  ;;  %8835 = vmatmul.mubr.msk.f32.gmra.mxu1 %vm666_vm1, %v10556_v10 }
 0x11d   : > { %13806 = vst [vmem:[#allocation21_spill] sm:$0xff] %v10972_v31  ;;  %v10978_v59 = vadd.f32 %v1428_v3, %v985_v32  ;;  %8837 = vmatprep.mubr.msk.f32.mxu1 %vm666_vm1, %v10567_v62  ;;  %v13813_v62 = vld [vmem:[#allocation26_spill] sm:$0xff] }
 0x11e   : > { %v8439_v42 = vpop.f32.mrf.mxu0  ;;  %8752 = vmatmul.mubr.msk.f32.gmra.mxu0 %vm666_vm1, %v13809_v40  ;;  %v1438_v18 = vpop.f32.mrf.mxu1 }
 0x11f   : > { %13808 = vst [vmem:[#allocation22_spill] sm:$0xff] %v10978_v59  ;;  %v10984_v37 = vadd.f32 %v8522_v45, %v8439_v42  ;;  %8754 = vmatprep.mubr.msk.f32.mxu0 %vm666_vm1, %v13811_v52  ;;  %v13815_v42 = vld [vmem:[#allocation27_spill] sm:$0xff] }
 0x120   : > { %v995_v31 = vpop.f32.mrf.mxu0  ;;  %v8525_v53 = vpop.f32.mrf.mxu1  ;;  %8838 = vmatmul.mubr.msk.f32.gmra.mxu1 %vm666_vm1, %v10573_v63 }
 0x121   : > { %13810 = vst [vmem:[#allocation23_spill] sm:$0xff] %v10984_v37  ;;  %v10990_v3 = vadd.f32 %v1438_v18, %v995_v31  ;;  %8840 = vmatprep.mubr.msk.f32.mxu1 %vm666_vm1, %v10583_v1  ;;  %v13817_v1 = vld [vmem:[#allocation28_spill] sm:$0xff] }
 0x122   : > { %v8442_v32 = vpop.f32.mrf.mxu0  ;;  %8755 = vmatmul.mubr.msk.f32.gmra.mxu0 %vm666_vm1, %v13813_v62  ;;  %v1448_v10 = vpop.f32.mrf.mxu1 }
 0x123   : > { %13812 = vst [vmem:[#allocation24_spill] sm:$0xff] %v10990_v3  ;;  %v10996_v45 = vadd.f32 %v8525_v53, %v8442_v32  ;;  %8757 = vmatprep.mubr.msk.f32.mxu0 %vm666_vm1, %v13815_v42  ;;  %v13819_v32 = vld [vmem:[#allocation29_spill] sm:$0xff] }
 0x124   : > { %v1005_v37 = vpop.f32.mrf.mxu0  ;;  %v8528_v59 = vpop.f32.mrf.mxu1  ;;  %8841 = vmatmul.mubr.msk.f32.gmra.mxu1 %vm666_vm1, %v10590_v26 }
 0x125   : > { %13814 = vst [vmem:[#allocation25_spill] sm:$0xff] %v10996_v45  ;;  %v11002_v18 = vadd.f32 %v1448_v10, %v1005_v37  ;;  %8843 = vmatprep.mubr.msk.f32.mxu1 %vm666_vm1, %v10600_v8  ;;  %v13821_v8 = vld [vmem:[#allocation30_spill] sm:$0xff] }
 0x126   : > { %v8445_v31 = vpop.f32.mrf.mxu0  ;;  %8758 = vmatmul.mubr.msk.f32.gmra.mxu0 %vm666_vm1, %v13817_v1  ;;  %v1458_v63 = vpop.f32.mrf.mxu1 }
 0x127   : > { %13816 = vst [vmem:[#allocation26_spill] sm:$0xff] %v11002_v18  ;;  %v11008_v53 = vadd.f32 %v8528_v59, %v8445_v31  ;;  %8760 = vmatprep.mubr.msk.f32.mxu0 %vm666_vm1, %v13819_v32  ;;  %v13823_v31 = vld [vmem:[#allocation31_spill] sm:$0xff] }
 0x128   : > { %v1015_v45 = vpop.f32.mrf.mxu0  ;;  %v8531_v3 = vpop.f32.mrf.mxu1  ;;  %8844 = vmatmul.mubr.msk.f32.gmra.mxu1 %vm666_vm1, %v10606_v55 }
 0x129   : > { %13818 = vst [vmem:[#allocation27_spill] sm:$0xff] %v11008_v53  ;;  %v11014_v10 = vadd.f32 %v1458_v63, %v1015_v45  ;;  %8846 = vmatprep.mubr.msk.f32.mxu1 %vm666_vm1, %v10617_v33  ;;  %v13825_v33 = vld [vmem:[#allocation32_spill] sm:$0xff] }
 0x12a   : > { %v8448_v37 = vpop.f32.mrf.mxu0  ;;  %8761 = vmatmul.mubr.msk.f32.gmra.mxu0 %vm666_vm1, %v13821_v8  ;;  %v1468_v26 = vpop.f32.mrf.mxu1 }
 0x12b   : > { %13820 = vst [vmem:[#allocation28_spill] sm:$0xff] %v11014_v10  ;;  %v11020_v59 = vadd.f32 %v8531_v3, %v8448_v37  ;;  %8763 = vmatprep.mubr.msk.f32.mxu0 %vm666_vm1, %v13823_v31  ;;  %v13827_v37 = vld [vmem:[#allocation33_spill] sm:$0xff] }
 0x12c   : > { %v1025_v53 = vpop.f32.mrf.mxu0  ;;  %v8534_v18 = vpop.f32.mrf.mxu1  ;;  %8847 = vmatmul.mubr.msk.f32.gmra.mxu1 %vm666_vm1, %v10623_v5 }
 0x12d   : > { %13822 = vst [vmem:[#allocation29_spill] sm:$0xff] %v11020_v59  ;;  %v11026_v63 = vadd.f32 %v1468_v26, %v1025_v53  ;;  %8849 = vmatprep.mubr.msk.f32.mxu1 %vm666_vm1, %v10633_v50  ;;  %v13829_v50 = vld [vmem:[#allocation34_spill] sm:$0xff] }
 0x12e   : > { %v8451_v45 = vpop.f32.mrf.mxu0  ;;  %8764 = vmatmul.mubr.msk.f32.gmra.mxu0 %vm666_vm1, %v13825_v33  ;;  %v1478_v55 = vpop.f32.mrf.mxu1 }
 0x12f   : > { %13824 = vst [vmem:[#allocation30_spill] sm:$0xff] %v11026_v63  ;;  %v11032_v3 = vadd.f32 %v8534_v18, %v8451_v45  ;;  %8766 = vmatprep.mubr.msk.f32.mxu0 %vm666_vm1, %v13827_v37  ;;  %v13831_v45 = vld [vmem:[#allocation38_spill] sm:$0xff] }
 0x130   : > { %v1035_v59 = vpop.f32.mrf.mxu0  ;;  %v8537_v10 = vpop.f32.mrf.mxu1  ;;  %8850 = vmatmul.mubr.msk.f32.gmra.mxu1 %vm666_vm1, %v10640_v16 }
 0x131   : > { %13826 = vst [vmem:[#allocation31_spill] sm:$0xff] %v11032_v3  ;;  %v11038_v26 = vadd.f32 %v1478_v55, %v1035_v59  ;;  %8852 = vmatprep.mubr.msk.f32.mxu1 %vm666_vm1, %v10650_v35  ;;  %v13833_v35 = vld [vmem:[#allocation39_spill] sm:$0xff] }
 0x132   : > { %v8454_v53 = vpop.f32.mrf.mxu0  ;;  %8767 = vmatmul.mubr.msk.f32.gmra.mxu0 %vm666_vm1, %v13829_v50  ;;  %v1488_v5 = vpop.f32.mrf.mxu1 }
 0x133   : > { %13828 = vst [vmem:[#allocation32_spill] sm:$0xff] %v11038_v26  ;;  %v11044_v18 = vadd.f32 %v8537_v10, %v8454_v53  ;;  %8769 = vmatprep.mubr.msk.f32.mxu0 %vm666_vm1, %v13831_v45  ;;  %v13835_v53 = vld [vmem:[#allocation42_spill] sm:$0xff] }
 0x134   : > { %v1045_v3 = vpop.f32.mrf.mxu0  ;;  %v8540_v63 = vpop.f32.mrf.mxu1  ;;  %8853 = vmatmul.mubr.msk.f32.gmra.mxu1 %vm666_vm1, %v10656_v38 }
 0x135   : > { %13830 = vst [vmem:[#allocation33_spill] sm:$0xff] %v11044_v18  ;;  %v11050_v55 = vadd.f32 %v1488_v5, %v1045_v3  ;;  %8855 = vmatprep.mubr.msk.f32.mxu1 %vm666_vm1, %v10667_v34  ;;  %v13837_v34 = vld [vmem:[#allocation43_spill] sm:$0xff] }
 0x136   : > { %v8457_v59 = vpop.f32.mrf.mxu0  ;;  %8770 = vmatmul.mubr.msk.f32.gmra.mxu0 %vm666_vm1, %v13833_v35  ;;  %v1498_v16 = vpop.f32.mrf.mxu1 }
 0x137   : > { %13832 = vst [vmem:[#allocation34_spill] sm:$0xff] %v11050_v55  ;;  %v11056_v10 = vadd.f32 %v8540_v63, %v8457_v59  ;;  %8772 = vmatprep.mubr.msk.f32.mxu0 %vm666_vm1, %v13835_v53  ;;  %v13839_v59 = vld [vmem:[#allocation47_spill] sm:$0xff] }
 0x138   : > { %v1055_v18 = vpop.f32.mrf.mxu0  ;;  %v8543_v26 = vpop.f32.mrf.mxu1  ;;  %8856 = vmatmul.mubr.msk.f32.gmra.mxu1 %vm666_vm1, %v10673_v6 }
 0x139   : > { %13834 = vst [vmem:[#allocation38_spill] sm:$0xff] %v11056_v10  ;;  %v11062_v5 = vadd.f32 %v1498_v16, %v1055_v18  ;;  %8858 = vmatprep.mubr.msk.f32.mxu1 %vm666_vm1, %v10683_v57  ;;  %v13841_v57 = vld [vmem:[#allocation48_spill] sm:$0xff] }
 0x13a   : > { %v8460_v3 = vpop.f32.mrf.mxu0  ;;  %8773 = vmatmul.mubr.msk.f32.gmra.mxu0 %vm666_vm1, %v13837_v34  ;;  %v1508_v38 = vpop.f32.mrf.mxu1 }
 0x13b   : > { %13836 = vst [vmem:[#allocation39_spill] sm:$0xff] %v11062_v5  ;;  %v11068_v63 = vadd.f32 %v8543_v26, %v8460_v3  ;;  %8775 = vmatprep.mubr.msk.f32.mxu0 %vm666_vm1, %v13839_v59  ;;  %v13843_v3 = vld [vmem:[#allocation52_spill] sm:$0xff] }
 0x13c   : > { %v1065_v10 = vpop.f32.mrf.mxu0  ;;  %v8546_v55 = vpop.f32.mrf.mxu1  ;;  %8859 = vmatmul.mubr.msk.f32.gmra.mxu1 %vm666_vm1, %v10690_v15 }
 0x13d   : > { %13838 = vst [vmem:[#allocation42_spill] sm:$0xff] %v11068_v63  ;;  %v11074_v16 = vadd.f32 %v1508_v38, %v1065_v10  ;;  %8861 = vmatprep.mubr.msk.f32.mxu1 %vm666_vm1, %v10700_v11  ;;  %v13845_v11 = vld [vmem:[#allocation53_spill] sm:$0xff] }
 0x13e   : > { %v8463_v18 = vpop.f32.mrf.mxu0  ;;  %8776 = vmatmul.mubr.msk.f32.gmra.mxu0 %vm666_vm1, %v13841_v57  ;;  %v1518_v6 = vpop.f32.mrf.mxu1 }
 0x13f   : > { %13840 = vst [vmem:[#allocation43_spill] sm:$0xff] %v11074_v16  ;;  %v11080_v26 = vadd.f32 %v8546_v55, %v8463_v18  ;;  %8778 = vmatprep.mubr.msk.f32.mxu0 %vm666_vm1, %v13843_v3  ;;  %v13847_v18 = vld [vmem:[#allocation56_spill] sm:$0xff] }
 0x140   : > { %v1075_v63 = vpop.f32.mrf.mxu0  ;;  %v8549_v5 = vpop.f32.mrf.mxu1  ;;  %8862 = vmatmul.mubr.msk.f32.gmra.mxu1 %vm666_vm1, %v10706_v43 }
 0x141   : > { %13842 = vst [vmem:[#allocation47_spill] sm:$0xff] %v11080_v26  ;;  %v11086_v38 = vadd.f32 %v1518_v6, %v1075_v63  ;;  %8864 = vmatprep.mubr.msk.f32.mxu1 %vm666_vm1, %v10717_v21  ;;  %v13849_v21 = vld [vmem:[#allocation57_spill] sm:$0xff] }
 0x142   : > { %v8466_v10 = vpop.f32.mrf.mxu0  ;;  %8779 = vmatmul.mubr.msk.f32.gmra.mxu0 %vm666_vm1, %v13845_v11  ;;  %v1528_v15 = vpop.f32.mrf.mxu1 }
 0x143   : > { %13844 = vst [vmem:[#allocation48_spill] sm:$0xff] %v11086_v38  ;;  %v11092_v55 = vadd.f32 %v8549_v5, %v8466_v10  ;;  %8781 = vmatprep.mubr.msk.f32.mxu0 %vm666_vm1, %v13847_v18  ;;  %v13850_v5 = vld [vmem:[#allocation61_spill] sm:$0xff] }
 0x144   : > { %v1085_v26 = vpop.f32.mrf.mxu0  ;;  %v8552_v16 = vpop.f32.mrf.mxu1  ;;  %8865 = vmatmul.mubr.msk.f32.gmra.mxu1 %vm666_vm1, %v10723_v30  ;;  %v13854_v30 = vld [vmem:[#allocation65_spill] sm:$0xff] }
 0x145   : > { %13846 = vst [vmem:[#allocation52_spill] sm:$0xff] %v11092_v55  ;;  %v11098_v6 = vadd.f32 %v1528_v15, %v1085_v26  ;;  %8867 = vmatprep.mubr.msk.f32.mxu1 %vm666_vm1, %v10733_v13  ;;  %v13852_v15 = vld [vmem:[#allocation54_spill] sm:$0xff] }
 0x146   : > { %v8469_v63 = vpop.f32.mrf.mxu0  ;;  %8782 = vmatmul.mubr.msk.f32.gmra.mxu0 %vm666_vm1, %v13849_v21  ;;  %v1538_v43 = vpop.f32.mrf.mxu1  ;;  %v13853_v13 = vld [vmem:[#allocation62_spill] sm:$0xff] }
 0x147   : > { %13848 = vst [vmem:[#allocation53_spill] sm:$0xff] %v11098_v6  ;;  %8784 = vmatprep.mubr.msk.f32.mxu0 %vm666_vm1, %v13850_v5 }
 0x148   : > { %v1095_v10 = vpop.f32.mrf.mxu0  ;;  %v8555_v55 = vpop.f32.mrf.mxu1  ;;  %8868 = vmatmul.mubr.msk.f32.gmra.mxu1 %vm666_vm1, %v10740_v41  ;;  %v13857_v41 = vld [vmem:[#allocation60_spill] sm:$0xff] }
 0x149   : > { %v11108_v16 = vadd.f32 %v1538_v43, %v1095_v10  ;;  %8870 = vmatprep.mubr.msk.f32.mxu1 %vm666_vm1, %v13852_v15  ;;  %v13855_v55 = vld [vmem:[#allocation66_spill] sm:$0xff] }
 0x14a   : > { %v8472_v26 = vpop.f32.mrf.mxu0  ;;  %8785 = vmatmul.mubr.msk.f32.gmra.mxu0 %vm666_vm1, %v13853_v13  ;;  %v1547_v63 = vpop.f32.mrf.mxu1  ;;  %v13865_v13 = vld [vmem:[#allocation103_spill] sm:$0xff] }
 0x14b   : > { %13851 = vst [vmem:[#allocation56_spill] sm:$0xff] %v11108_v16  ;;  %8787 = vmatprep.mubr.msk.f32.mxu0 %vm666_vm1, %v13854_v30  ;;  %v13856_v26 = vld [vmem:[#allocation68_spill] sm:$0xff]  ;;  %v13860_v16 = vld [vmem:[#allocation70_spill] sm:$0xff] }
 0x14c   : > { %v1104_v6 = vpop.f32.mrf.mxu0  ;;  %v8643_v38 = vpop.f32.mrf.mxu1  ;;  %8871 = vmatmul.mubr.msk.f32.gmra.mxu1 %vm666_vm1, %v10761_v17  ;;  %v13864_v30 = vld [vmem:[#allocation72_spill] sm:$0xff] }
 0x14d   : > { %8873 = vmatprep.mubr.msk.f32.mxu1 %vm666_vm1, %v10776_v20  ;;  %v13858_v6 = vld [vmem:[#allocation69_spill] sm:$0xff]  ;;  %v13859_v20 = vld [vmem:[#allocation58_spill] sm:$0xff] }
 0x14e   : > { %v8560_v43 = vpop.f32.mrf.mxu0  ;;  %8788 = vmatmul.mubr.msk.f32.gmra.mxu0 %vm666_vm1, %v13855_v55  ;;  %v2257_v10 = vpop.f32.mrf.mxu1 }
 0x14f   : > { %8790 = vmatprep.mubr.msk.f32.mxu0 %vm666_vm1, %v13856_v26 }
 0x150   : > { %v1860_v63 = vpop.f32.mrf.mxu0  ;;  %v8646_v15 = vpop.f32.mrf.mxu1  ;;  %8874 = vmatmul.mubr.msk.f32.gmra.mxu1 %vm666_vm1, %v13857_v41 }
 0x151   : > { %8876 = vmatprep.mubr.msk.f32.mxu1 %vm666_vm1, %v10794_v48  ;;  %v2976_v63 = vrot.slane %v10809_v29, 2  ;;  %v2977_v48 = vrot.slane %v10814_v51, 2 }
 0x152   : > { %v8563_v38 = vpop.f32.mrf.mxu0  ;;  %8791 = vmatmul.mubr.msk.f32.gmra.mxu0 %vm666_vm1, %v13858_v6  ;;  %v2267_v43 = vpop.f32.mrf.mxu1  ;;  %v13863_v6 = vld [vmem:[#allocation63_spill] sm:$0xff] }
 0x153   : > { %v2129_v17 = vadd.f32 %v8563_v38, %v13859_v20  ;;  %8793 = vmatprep.mubr.msk.f32.mxu0 %vm666_vm1, %v13860_v16  ;;  %v2979_v20 = vrot.slane %v10834_v56, 2  ;;  %v13862_v43 = vld [vmem:[#allocation71_spill] sm:$0xff]  ;;  %v2575_v16 = vrot.slane %v10809_v29, 1 }
 0x154   : > { %v1870_v10 = vpop.f32.mrf.mxu0  ;;  %v8649_v26 = vpop.f32.mrf.mxu1  ;;  %8877 = vmatmul.mubr.msk.f32.gmra.mxu1 %vm666_vm1, %v10801_v47  ;;  %v2576_v47 = vrot.slane %v10814_v51, 1  ;;  %v11159_v51 = vsel %vm1554_vm3, %v2976_v63, %v2977_v48 }
 0x155   : > { %v11137_v41 = vadd.f32 %v8646_v15, %v2129_v17  ;;  %8879 = vmatprep.mubr.msk.f32.mxu1 %vm666_vm1, %v10821_v9  ;;  %v2578_v17 = vrot.slane %v10834_v56, 1 }
 0x156   : > { %v8566_v38 = vpop.f32.mrf.mxu0  ;;  %8794 = vmatmul.mubr.msk.f32.gmra.mxu0 %vm666_vm1, %v13862_v43  ;;  %v2277_v10 = vpop.f32.mrf.mxu1 }
 0x157   : > { %13861 = vst [vmem:[#allocation58_spill] sm:$0xff] %v11137_v41  ;;  %v2131_v55 = vadd.f32 %v8566_v38, %v13863_v6  ;;  %8796 = vmatprep.mubr.msk.f32.mxu0 %vm666_vm1, %v13864_v30  ;;  %v459_v41 = vld [vmem:[%s9689_s12 + $0x258] sm:$0x3]  ;;  %v13867_v38 = vld [vmem:[#allocation73_spill] sm:$0xff]  ;;  %v11164_v30 = vsel %vm1554_vm3, %v2977_v48, %v2979_v20 }
 0x158   : > { %v1880_v15 = vpop.f32.mrf.mxu0  ;;  %v8652_v9 = vpop.f32.mrf.mxu1  ;;  %8880 = vmatmul.mubr.msk.f32.gmra.mxu1 %vm666_vm1, %v10827_v24  ;;  %v2981_v29 = vrot.slane %v459_v41, 2  ;;  %13868 = vst [vmem:[#allocation103_spill] sm:$0xff] %v11164_v30  ;;  %v13869_v24 = vld [vmem:[#allocation104_spill] sm:$0xff]  ;;  %v2580_v63 = vrot.slane %v459_v41, 1  ;;  %v13871_v48 = vld [vmem:[#allocation107_spill] sm:$0xff] }
 0x159   : > { %v2130_v43 = vadd.f32 %v1880_v15, %v13865_v13  ;;  %v11154_v5 = vadd.f32 %v8649_v26, %v2131_v55  ;;  %8882 = vmatprep.mubr.msk.f32.mxu1 %vm666_vm1, %v10843_v54  ;;  %v13870_v55 = vld [vmem:[#allocation74_spill] sm:$0xff]  ;;  %v11172_v26 = vsel %vm537_vm2, %v2575_v16, %v2576_v47 }
 0x15a   : > { %v8569_v6 = vpop.f32.mrf.mxu0  ;;  %8797 = vmatmul.mubr.msk.f32.gmra.mxu0 %vm666_vm1, %v13867_v38  ;;  %v2287_v56 = vpop.f32.mrf.mxu1 }
 0x15b   : > { %13866 = vst [vmem:[#allocation63_spill] sm:$0xff] %v11154_v5  ;;  %v2133_v21 = vadd.f32 %v8569_v6, %v13869_v24  ;;  %v11167_v13 = vadd.f32 %v2277_v10, %v2130_v43  ;;  %8799 = vmatprep.mubr.msk.f32.mxu0 %vm666_vm1, %v13870_v55  ;;  %v11177_v5 = vsel %vm537_vm2, %v2576_v47, %v2578_v17  ;;  %v13873_v10 = vld [vmem:[#allocation108_spill] sm:$0xff] }
 0x15c   : > { %v1890_v15 = vpop.f32.mrf.mxu0  ;;  %v8655_v54 = vpop.f32.mrf.mxu1  ;;  %8883 = vmatmul.mubr.msk.f32.gmra.mxu1 %vm666_vm1, %v11159_v51  ;;  %v11185_v43 = vsel %vm1554_vm3, %v2979_v20, %v2981_v29 }
 0x15d   : > { %v2132_v38 = vadd.f32 %v1890_v15, %v13871_v48  ;;  %v11180_v24 = vadd.f32 %v8652_v9, %v2133_v21  ;;  %8885 = vmatprep.mubr.msk.f32.mxu1 %vm666_vm1, %v11164_v30  ;;  %13872 = vst [vmem:[#allocation104_spill] sm:$0xff] %v11185_v43  ;;  %v11195_v21 = vsel %vm537_vm2, %v2578_v17, %v2580_v63  ;;  %v9442_v48 = vld [vmem:[%s9689_s12 + $0x40] sm:$0xff] }
 0x15e   : > { %v8572_v16 = vpop.f32.mrf.mxu0  ;;  %8800 = vmatmul.mubr.msk.f32.gmra.mxu0 %vm666_vm1, %v11172_v26  ;;  %v2297_v41 = vpop.f32.mrf.mxu1 }
 0x15f   : > { %v2135_v6 = vadd.f32 %v8572_v16, %v13873_v10  ;;  %v11190_v47 = vadd.f32 %v2287_v56, %v2132_v38  ;;  %8802 = vmatprep.mubr.msk.f32.mxu0 %vm666_vm1, %v11177_v5 }
 0x160   : > { %v1900_v9 = vpop.f32.mrf.mxu0  ;;  %v8658_v15 = vpop.f32.mrf.mxu1  ;;  %8886 = vmatmul.mubr.msk.f32.gmra.mxu1 %vm666_vm1, %v11185_v43  ;;  %v13916_v43 = vld [vmem:[#allocation66_spill] sm:$0xff] }
 0x161   : > { %v2134_v20 = vadd.f32 %v1900_v9, %v10847_v27  ;;  %v11200_v29 = vadd.f32 %v8655_v54, %v2135_v6  ;;  %8973 = vmatprep.mubr.msk.f32.mxu1 %vm666_vm1, %v13777_v4 }
 0x162   : > { %v8575_v38 = vpop.f32.mrf.mxu0  ;;  %8803 = vmatmul.mubr.msk.f32.gmra.mxu0 %vm666_vm1, %v11195_v21  ;;  %v2307_v56 = vpop.f32.mrf.mxu1 }
 0x163   : > { %v2137_v17 = vadd.f32 %v8575_v38, %v10853_v49  ;;  %v11207_v63 = vadd.f32 %v2297_v41, %v2134_v20  ;;  %8890 = vmatprep.mubr.msk.f32.mxu0 %vm666_vm1, %v9442_v48  ;;  %v9443_v49 = vld [vmem:[%s9689_s12 + $0x48] sm:$0xff] }
 0x164   : > { %v1910_v27 = vpop.f32.mrf.mxu0  ;;  %v8661_v54 = vpop.f32.mrf.mxu1  ;;  %8974 = vmatmul.mubr.msk.f32.vlgmr.msra.gmra.mxu1 %vm666_vm1, %v13779_v0  ;;  %v13874_v20 = vld [vmem:[#allocation5_spill] sm:$0xff] }
 0x165   : > { %v2136_v4 = vadd.f32 %v1910_v27, %v10859_v28  ;;  %v11214_v16 = vadd.f32 %v8658_v15, %v2137_v17  ;;  %8976 = vmatprep.mubr.msk.f32.mxu1 %vm666_vm1, %v13781_v23  ;;  %v9444_v28 = vld [vmem:[%s9689_s12 + $0x50] sm:$0xff] }
 0x166   : > { %v8578_v10 = vpop.f32.mrf.mxu0  ;;  %8891 = vmatmul.mubr.msk.f32.vlgmr.msra.gmra.mxu0 %vm666_vm1, %v9443_v49  ;;  %v2317_v41 = vpop.f32.mrf.mxu1  ;;  %v13875_v23 = vld [vmem:[#allocation6_spill] sm:$0xff]  ;;  %v13876_v27 = vld [vmem:[#allocation7_spill] sm:$0xff] }
 0x167   : > { %v2139_v6 = vadd.f32 %v8578_v10, %v10872_v61  ;;  %v11221_v9 = vadd.f32 %v2307_v56, %v2136_v4  ;;  %9055 = vmatpush3.msk.msra.mxu0 %vm775_vm0, %v13874_v20  ;;  %8893 = vmatprep.mubr.msk.f32.mxu0 %vm666_vm1, %v9444_v28  ;;  %v9445_v56 = vld [vmem:[%s9689_s12 + $0x60] sm:$0xff]  ;;  %v9446_v49 = vld [vmem:[%s9689_s12 + $0x68] sm:$0xff] }
 0x168   : > { %v1920_v0 = vpop.f32.mrf.mxu0  ;;  %v8664_v15 = vpop.f32.mrf.mxu1  ;;  %8977 = vmatmul.mubr.msk.f32.gmra.mxu1 %vm666_vm1, %v13783_v39 }
 0x169   : > { %v2138_v38 = vadd.f32 %v1920_v0, %v13875_v23  ;;  %v11230_v17 = vadd.f32 %v8661_v54, %v2139_v6  ;;  %8979 = vmatprep.mubr.msk.f32.mxu1 %vm666_vm1, %v13785_v36  ;;  %v13877_v36 = vld [vmem:[#allocation8_spill] sm:$0xff]  ;;  %v9447_v0 = vld [vmem:[%s9689_s12 + $0x70] sm:$0xff]  ;;  %v13878_v23 = vld [vmem:[#allocation9_spill] sm:$0xff] }
 0x16a   : > { %v8581_v61 = vpop.f32.mrf.mxu0  ;;  %8894 = vmatmul.mubr.msk.f32.gmra.mxu0 %vm666_vm1, %v9445_v56  ;;  %v2327_v48 = vpop.f32.mrf.mxu1  ;;  %v9448_v56 = vld [vmem:[%s9689_s12 + $0x80] sm:$0xff] }
 0x16b   : > { %v2141_v4 = vadd.f32 %v8581_v61, %v13876_v27  ;;  %v11237_v10 = vadd.f32 %v2317_v41, %v2138_v38  ;;  %8896 = vmatprep.mubr.msk.f32.mxu0 %vm666_vm1, %v9446_v49 }
 0x16c   : > { %v1930_v39 = vpop.f32.mrf.mxu0  ;;  %v8667_v54 = vpop.f32.mrf.mxu1  ;;  %8980 = vmatmul.mubr.msk.f32.gmra.mxu1 %vm666_vm1, %v13787_v19 }
 0x16d   : > { %v2140_v6 = vadd.f32 %v1930_v39, %v13877_v36  ;;  %v11244_v20 = vadd.f32 %v8664_v15, %v2141_v4  ;;  %8982 = vmatprep.mubr.msk.f32.mxu1 %vm666_vm1, %v13789_v44  ;;  %v13879_v44 = vld [vmem:[#allocation10_spill] sm:$0xff]  ;;  %v13880_v36 = vld [vmem:[#allocation11_spill] sm:$0xff] }
 0x16e   : > { %v8584_v28 = vpop.f32.mrf.mxu0  ;;  %8897 = vmatmul.mubr.msk.f32.gmra.mxu0 %vm666_vm1, %v9447_v0  ;;  %v2337_v41 = vpop.f32.mrf.mxu1  ;;  %v9449_v39 = vld [vmem:[%s9689_s12 + $0x88] sm:$0xff]  ;;  %v9450_v0 = vld [vmem:[%s9689_s12 + $0x90] sm:$0xff] }
 0x16f   : > { %v2143_v38 = vadd.f32 %v8584_v28, %v13878_v23  ;;  %v11251_v61 = vadd.f32 %v2327_v48, %v2140_v6  ;;  %8899 = vmatprep.mubr.msk.f32.mxu0 %vm666_vm1, %v9448_v56 }
 0x170   : > { %v1940_v19 = vpop.f32.mrf.mxu0  ;;  %v8670_v15 = vpop.f32.mrf.mxu1  ;;  %8983 = vmatmul.mubr.msk.f32.gmra.mxu1 %vm666_vm1, %v13791_v14 }
 0x171   : > { %v2142_v27 = vadd.f32 %v1940_v19, %v13879_v44  ;;  %v11258_v4 = vadd.f32 %v8667_v54, %v2143_v38  ;;  %8985 = vmatprep.mubr.msk.f32.mxu1 %vm666_vm1, %v13793_v46  ;;  %v13881_v46 = vld [vmem:[#allocation12_spill] sm:$0xff]  ;;  %v13882_v44 = vld [vmem:[#allocation13_spill] sm:$0xff] }
 0x172   : > { %v8587_v49 = vpop.f32.mrf.mxu0  ;;  %8900 = vmatmul.mubr.msk.f32.gmra.mxu0 %vm666_vm1, %v9449_v39  ;;  %v2347_v48 = vpop.f32.mrf.mxu1  ;;  %v9451_v19 = vld [vmem:[%s9689_s12 + $0xa0] sm:$0xff]  ;;  %v9452_v39 = vld [vmem:[%s9689_s12 + $0xa8] sm:$0xff] }
 0x173   : > { %v2145_v6 = vadd.f32 %v8587_v49, %v13880_v36  ;;  %v11265_v28 = vadd.f32 %v2337_v41, %v2142_v27  ;;  %8902 = vmatprep.mubr.msk.f32.mxu0 %vm666_vm1, %v9450_v0 }
 0x174   : > { %v1950_v14 = vpop.f32.mrf.mxu0  ;;  %v8673_v54 = vpop.f32.mrf.mxu1  ;;  %8986 = vmatmul.mubr.msk.f32.gmra.mxu1 %vm666_vm1, %v13795_v25 }
 0x175   : > { %v2144_v23 = vadd.f32 %v1950_v14, %v13881_v46  ;;  %v11272_v38 = vadd.f32 %v8670_v15, %v2145_v6  ;;  %8988 = vmatprep.mubr.msk.f32.mxu1 %vm666_vm1, %v13797_v58  ;;  %v13883_v58 = vld [vmem:[#allocation14_spill] sm:$0xff]  ;;  %v13884_v46 = vld [vmem:[#allocation15_spill] sm:$0xff] }
 0x176   : > { %v8590_v56 = vpop.f32.mrf.mxu0  ;;  %8903 = vmatmul.mubr.msk.f32.gmra.mxu0 %vm666_vm1, %v9451_v19  ;;  %v2357_v41 = vpop.f32.mrf.mxu1  ;;  %v9453_v14 = vld [vmem:[%s9689_s12 + $0xb0] sm:$0xff]  ;;  %v9454_v19 = vld [vmem:[%s9689_s12 + $0xc0] sm:$0xff] }
 0x177   : > { %v2147_v27 = vadd.f32 %v8590_v56, %v13882_v44  ;;  %v11279_v49 = vadd.f32 %v2347_v48, %v2144_v23  ;;  %8905 = vmatprep.mubr.msk.f32.mxu0 %vm666_vm1, %v9452_v39 }
 0x178   : > { %v1960_v25 = vpop.f32.mrf.mxu0  ;;  %v8676_v15 = vpop.f32.mrf.mxu1  ;;  %8989 = vmatmul.mubr.msk.f32.gmra.mxu1 %vm666_vm1, %v13799_v60 }
 0x179   : > { %v2146_v36 = vadd.f32 %v1960_v25, %v13883_v58  ;;  %v11286_v6 = vadd.f32 %v8673_v54, %v2147_v27  ;;  %8991 = vmatprep.mubr.msk.f32.mxu1 %vm666_vm1, %v13801_v2  ;;  %v13885_v2 = vld [vmem:[#allocation16_spill] sm:$0xff]  ;;  %v9455_v25 = vld [vmem:[%s9689_s12 + $0xc8] sm:$0xff] }
 0x17a   : > { %v8593_v0 = vpop.f32.mrf.mxu0  ;;  %8906 = vmatmul.mubr.msk.f32.gmra.mxu0 %vm666_vm1, %v9453_v14  ;;  %v2367_v48 = vpop.f32.mrf.mxu1  ;;  %v13886_v58 = vld [vmem:[#allocation17_spill] sm:$0xff]  ;;  %v9456_v14 = vld [vmem:[%s9689_s12 + $0xd0] sm:$0xff] }
 0x17b   : > { %v2149_v23 = vadd.f32 %v8593_v0, %v13884_v46  ;;  %v11293_v56 = vadd.f32 %v2357_v41, %v2146_v36  ;;  %8908 = vmatprep.mubr.msk.f32.mxu0 %vm666_vm1, %v9454_v19 }
 0x17c   : > { %v1970_v60 = vpop.f32.mrf.mxu0  ;;  %v8679_v54 = vpop.f32.mrf.mxu1  ;;  %8992 = vmatmul.mubr.msk.f32.gmra.mxu1 %vm666_vm1, %v13803_v22 }
 0x17d   : > { %v2148_v44 = vadd.f32 %v1970_v60, %v13885_v2  ;;  %v11300_v27 = vadd.f32 %v8676_v15, %v2149_v23  ;;  %8994 = vmatprep.mubr.msk.f32.mxu1 %vm666_vm1, %v13805_v7  ;;  %v13887_v7 = vld [vmem:[#allocation18_spill] sm:$0xff]  ;;  %v9457_v60 = vld [vmem:[%s9689_s12 + $0xe0] sm:$0xff]  ;;  %v13888_v2 = vld [vmem:[#allocation19_spill] sm:$0xff] }
 0x17e   : > { %v8596_v39 = vpop.f32.mrf.mxu0  ;;  %8909 = vmatmul.mubr.msk.f32.gmra.mxu0 %vm666_vm1, %v9455_v25  ;;  %v2377_v41 = vpop.f32.mrf.mxu1  ;;  %v9458_v25 = vld [vmem:[%s9689_s12 + $0xe8] sm:$0xff] }
 0x17f   : > { %v2151_v36 = vadd.f32 %v8596_v39, %v13886_v58  ;;  %v11307_v0 = vadd.f32 %v2367_v48, %v2148_v44  ;;  %8911 = vmatprep.mubr.msk.f32.mxu0 %vm666_vm1, %v9456_v14 }
 0x180   : > { %v1980_v22 = vpop.f32.mrf.mxu0  ;;  %v8682_v15 = vpop.f32.mrf.mxu1  ;;  %8995 = vmatmul.mubr.msk.f32.gmra.mxu1 %vm666_vm1, %v13807_v12 }
 0x181   : > { %v2150_v46 = vadd.f32 %v1980_v22, %v13887_v7  ;;  %v11314_v23 = vadd.f32 %v8679_v54, %v2151_v36  ;;  %8997 = vmatprep.mubr.msk.f32.mxu1 %vm666_vm1, %v13809_v40  ;;  %v13889_v40 = vld [vmem:[#allocation20_spill] sm:$0xff]  ;;  %v9459_v22 = vld [vmem:[%s9689_s12 + $0xf0] sm:$0xff]  ;;  %v13890_v7 = vld [vmem:[#allocation21_spill] sm:$0xff] }
 0x182   : > { %v8599_v19 = vpop.f32.mrf.mxu0  ;;  %8912 = vmatmul.mubr.msk.f32.gmra.mxu0 %vm666_vm1, %v9457_v60  ;;  %v2387_v48 = vpop.f32.mrf.mxu1  ;;  %v9460_v60 = vld [vmem:[%s9689_s12 + $0x100] sm:$0xff] }
 0x183   : > { %v2153_v44 = vadd.f32 %v8599_v19, %v13888_v2  ;;  %v11321_v39 = vadd.f32 %v2377_v41, %v2150_v46  ;;  %8914 = vmatprep.mubr.msk.f32.mxu0 %vm666_vm1, %v9458_v25 }
 0x184   : > { %v1990_v12 = vpop.f32.mrf.mxu0  ;;  %v8685_v54 = vpop.f32.mrf.mxu1  ;;  %8998 = vmatmul.mubr.msk.f32.gmra.mxu1 %vm666_vm1, %v13811_v52 }
 0x185   : > { %v2152_v58 = vadd.f32 %v1990_v12, %v13889_v40  ;;  %v11328_v36 = vadd.f32 %v8682_v15, %v2153_v44  ;;  %9000 = vmatprep.mubr.msk.f32.mxu1 %vm666_vm1, %v13813_v62  ;;  %v13891_v62 = vld [vmem:[#allocation22_spill] sm:$0xff]  ;;  %v13892_v40 = vld [vmem:[#allocation23_spill] sm:$0xff] }
 0x186   : > { %v8602_v14 = vpop.f32.mrf.mxu0  ;;  %8915 = vmatmul.mubr.msk.f32.gmra.mxu0 %vm666_vm1, %v9459_v22  ;;  %v2397_v41 = vpop.f32.mrf.mxu1  ;;  %v9461_v12 = vld [vmem:[%s9689_s12 + $0x108] sm:$0xff]  ;;  %v9462_v22 = vld [vmem:[%s9689_s12 + $0x110] sm:$0xff] }
 0x187   : > { %v2155_v46 = vadd.f32 %v8602_v14, %v13890_v7  ;;  %v11335_v19 = vadd.f32 %v2387_v48, %v2152_v58  ;;  %8917 = vmatprep.mubr.msk.f32.mxu0 %vm666_vm1, %v9460_v60 }
 0x188   : > { %v2000_v52 = vpop.f32.mrf.mxu0  ;;  %v8688_v15 = vpop.f32.mrf.mxu1  ;;  %9001 = vmatmul.mubr.msk.f32.gmra.mxu1 %vm666_vm1, %v13815_v42 }
 0x189   : > { %v2154_v2 = vadd.f32 %v2000_v52, %v13891_v62  ;;  %v11342_v44 = vadd.f32 %v8685_v54, %v2155_v46  ;;  %9003 = vmatprep.mubr.msk.f32.mxu1 %vm666_vm1, %v13817_v1  ;;  %v13893_v1 = vld [vmem:[#allocation24_spill] sm:$0xff]  ;;  %v13894_v62 = vld [vmem:[#allocation25_spill] sm:$0xff] }
 0x18a   : > { %v8605_v25 = vpop.f32.mrf.mxu0  ;;  %8918 = vmatmul.mubr.msk.f32.gmra.mxu0 %vm666_vm1, %v9461_v12  ;;  %v2407_v48 = vpop.f32.mrf.mxu1  ;;  %v9463_v52 = vld [vmem:[%s9689_s12 + $0x120] sm:$0xff]  ;;  %v9464_v12 = vld [vmem:[%s9689_s12 + $0x128] sm:$0xff] }
 0x18b   : > { %v2157_v58 = vadd.f32 %v8605_v25, %v13892_v40  ;;  %v11349_v14 = vadd.f32 %v2397_v41, %v2154_v2  ;;  %8920 = vmatprep.mubr.msk.f32.mxu0 %vm666_vm1, %v9462_v22 }
 0x18c   : > { %v2010_v42 = vpop.f32.mrf.mxu0  ;;  %v8691_v54 = vpop.f32.mrf.mxu1  ;;  %9004 = vmatmul.mubr.msk.f32.gmra.mxu1 %vm666_vm1, %v13819_v32 }
 0x18d   : > { %v2156_v7 = vadd.f32 %v2010_v42, %v13893_v1  ;;  %v11356_v46 = vadd.f32 %v8688_v15, %v2157_v58  ;;  %9006 = vmatprep.mubr.msk.f32.mxu1 %vm666_vm1, %v13821_v8  ;;  %v13895_v8 = vld [vmem:[#allocation26_spill] sm:$0xff]  ;;  %v13896_v1 = vld [vmem:[#allocation27_spill] sm:$0xff] }
 0x18e   : > { %v8608_v60 = vpop.f32.mrf.mxu0  ;;  %8921 = vmatmul.mubr.msk.f32.gmra.mxu0 %vm666_vm1, %v9463_v52  ;;  %v2417_v41 = vpop.f32.mrf.mxu1  ;;  %v9465_v42 = vld [vmem:[%s9689_s12 + $0x130] sm:$0xff]  ;;  %v9466_v52 = vld [vmem:[%s9689_s12 + $0x140] sm:$0xff] }
 0x18f   : > { %v2159_v2 = vadd.f32 %v8608_v60, %v13894_v62  ;;  %v11363_v25 = vadd.f32 %v2407_v48, %v2156_v7  ;;  %8923 = vmatprep.mubr.msk.f32.mxu0 %vm666_vm1, %v9464_v12 }
 0x190   : > { %v2020_v32 = vpop.f32.mrf.mxu0  ;;  %v8694_v15 = vpop.f32.mrf.mxu1  ;;  %9007 = vmatmul.mubr.msk.f32.gmra.mxu1 %vm666_vm1, %v13823_v31 }
 0x191   : > { %v2158_v40 = vadd.f32 %v2020_v32, %v13895_v8  ;;  %v11370_v58 = vadd.f32 %v8691_v54, %v2159_v2  ;;  %9009 = vmatprep.mubr.msk.f32.mxu1 %vm666_vm1, %v13825_v33  ;;  %v13897_v33 = vld [vmem:[#allocation28_spill] sm:$0xff]  ;;  %v9467_v32 = vld [vmem:[%s9689_s12 + $0x148] sm:$0xff] }
 0x192   : > { %v8611_v22 = vpop.f32.mrf.mxu0  ;;  %8924 = vmatmul.mubr.msk.f32.gmra.mxu0 %vm666_vm1, %v9465_v42  ;;  %v2427_v48 = vpop.f32.mrf.mxu1  ;;  %v13898_v8 = vld [vmem:[#allocation29_spill] sm:$0xff]  ;;  %v9468_v42 = vld [vmem:[%s9689_s12 + $0x150] sm:$0xff] }
 0x193   : > { %v2161_v7 = vadd.f32 %v8611_v22, %v13896_v1  ;;  %v11377_v60 = vadd.f32 %v2417_v41, %v2158_v40  ;;  %8926 = vmatprep.mubr.msk.f32.mxu0 %vm666_vm1, %v9466_v52 }
 0x194   : > { %v2030_v31 = vpop.f32.mrf.mxu0  ;;  %v8697_v54 = vpop.f32.mrf.mxu1  ;;  %9010 = vmatmul.mubr.msk.f32.gmra.mxu1 %vm666_vm1, %v13827_v37 }
 0x195   : > { %v2160_v62 = vadd.f32 %v2030_v31, %v13897_v33  ;;  %v11384_v2 = vadd.f32 %v8694_v15, %v2161_v7  ;;  %9012 = vmatprep.mubr.msk.f32.mxu1 %vm666_vm1, %v13829_v50  ;;  %v13899_v50 = vld [vmem:[#allocation30_spill] sm:$0xff]  ;;  %v9469_v31 = vld [vmem:[%s9689_s12 + $0x160] sm:$0xff]  ;;  %v13900_v33 = vld [vmem:[#allocation31_spill] sm:$0xff] }
 0x196   : > { %v8614_v12 = vpop.f32.mrf.mxu0  ;;  %8927 = vmatmul.mubr.msk.f32.gmra.mxu0 %vm666_vm1, %v9467_v32  ;;  %v2437_v41 = vpop.f32.mrf.mxu1  ;;  %v9470_v32 = vld [vmem:[%s9689_s12 + $0x168] sm:$0xff] }
 0x197   : > { %v2163_v40 = vadd.f32 %v8614_v12, %v13898_v8  ;;  %v11391_v22 = vadd.f32 %v2427_v48, %v2160_v62  ;;  %8929 = vmatprep.mubr.msk.f32.mxu0 %vm666_vm1, %v9468_v42 }
 0x198   : > { %v2040_v37 = vpop.f32.mrf.mxu0  ;;  %v8700_v15 = vpop.f32.mrf.mxu1  ;;  %9013 = vmatmul.mubr.msk.f32.gmra.mxu1 %vm666_vm1, %v13831_v45 }
 0x199   : > { %v2162_v1 = vadd.f32 %v2040_v37, %v13899_v50  ;;  %v11398_v7 = vadd.f32 %v8697_v54, %v2163_v40  ;;  %9015 = vmatprep.mubr.msk.f32.mxu1 %vm666_vm1, %v13833_v35  ;;  %v13901_v35 = vld [vmem:[#allocation32_spill] sm:$0xff]  ;;  %v9471_v37 = vld [vmem:[%s9689_s12 + $0x170] sm:$0xff]  ;;  %v13902_v50 = vld [vmem:[#allocation33_spill] sm:$0xff] }
 0x19a   : > { %v8617_v52 = vpop.f32.mrf.mxu0  ;;  %8930 = vmatmul.mubr.msk.f32.gmra.mxu0 %vm666_vm1, %v9469_v31  ;;  %v2447_v48 = vpop.f32.mrf.mxu1  ;;  %v9472_v31 = vld [vmem:[%s9689_s12 + $0x180] sm:$0xff] }
 0x19b   : > { %v2165_v62 = vadd.f32 %v8617_v52, %v13900_v33  ;;  %v11405_v12 = vadd.f32 %v2437_v41, %v2162_v1  ;;  %8932 = vmatprep.mubr.msk.f32.mxu0 %vm666_vm1, %v9470_v32 }
 0x19c   : > { %v2050_v45 = vpop.f32.mrf.mxu0  ;;  %v8703_v54 = vpop.f32.mrf.mxu1  ;;  %9016 = vmatmul.mubr.msk.f32.gmra.mxu1 %vm666_vm1, %v13835_v53 }
 0x19d   : > { %v2164_v8 = vadd.f32 %v2050_v45, %v13901_v35  ;;  %v11412_v40 = vadd.f32 %v8700_v15, %v2165_v62  ;;  %9018 = vmatprep.mubr.msk.f32.mxu1 %vm666_vm1, %v13837_v34  ;;  %v13903_v34 = vld [vmem:[#allocation34_spill] sm:$0xff] }
 0x19e   : > { %v8620_v42 = vpop.f32.mrf.mxu0  ;;  %8933 = vmatmul.mubr.msk.f32.gmra.mxu0 %vm666_vm1, %v9471_v37  ;;  %v2457_v41 = vpop.f32.mrf.mxu1  ;;  %v9473_v45 = vld [vmem:[%s9689_s12 + $0x188] sm:$0xff]  ;;  %v9474_v37 = vld [vmem:[%s9689_s12 + $0x190] sm:$0xff] }
 0x19f   : > { %v2167_v1 = vadd.f32 %v8620_v42, %v13902_v50  ;;  %v11419_v52 = vadd.f32 %v2447_v48, %v2164_v8  ;;  %8935 = vmatprep.mubr.msk.f32.mxu0 %vm666_vm1, %v9472_v31  ;;  %v13904_v35 = vld [vmem:[#allocation38_spill] sm:$0xff] }
 0x1a0   : > { %v2060_v53 = vpop.f32.mrf.mxu0  ;;  %v8706_v15 = vpop.f32.mrf.mxu1  ;;  %9019 = vmatmul.mubr.msk.f32.gmra.mxu1 %vm666_vm1, %v13839_v59 }
 0x1a1   : > { %v2166_v33 = vadd.f32 %v2060_v53, %v13903_v34  ;;  %v11426_v62 = vadd.f32 %v8703_v54, %v2167_v1  ;;  %9021 = vmatprep.mubr.msk.f32.mxu1 %vm666_vm1, %v13841_v57  ;;  %v13905_v57 = vld [vmem:[#allocation39_spill] sm:$0xff]  ;;  %v9475_v53 = vld [vmem:[%s9689_s12 + $0x1a0] sm:$0xff]  ;;  %v13906_v34 = vld [vmem:[#allocation42_spill] sm:$0xff] }
 0x1a2   : > { %v8623_v32 = vpop.f32.mrf.mxu0  ;;  %8936 = vmatmul.mubr.msk.f32.gmra.mxu0 %vm666_vm1, %v9473_v45  ;;  %v2467_v48 = vpop.f32.mrf.mxu1  ;;  %v9476_v45 = vld [vmem:[%s9689_s12 + $0x1a8] sm:$0xff] }
 0x1a3   : > { %v2169_v8 = vadd.f32 %v8623_v32, %v13904_v35  ;;  %v11433_v42 = vadd.f32 %v2457_v41, %v2166_v33  ;;  %8938 = vmatprep.mubr.msk.f32.mxu0 %vm666_vm1, %v9474_v37  ;;  %v13908_v37 = vld [vmem:[#allocation57_spill] sm:$0xff] }
 0x1a4   : > { %v2070_v59 = vpop.f32.mrf.mxu0  ;;  %v8709_v54 = vpop.f32.mrf.mxu1  ;;  %9022 = vmatmul.mubr.msk.f32.gmra.mxu1 %vm666_vm1, %v13843_v3 }
 0x1a5   : > { %v2168_v50 = vadd.f32 %v2070_v59, %v13905_v57  ;;  %v11440_v1 = vadd.f32 %v8706_v15, %v2169_v8  ;;  %9024 = vmatprep.mubr.msk.f32.mxu1 %vm666_vm1, %v13845_v11  ;;  %v13907_v11 = vld [vmem:[#allocation43_spill] sm:$0xff] }
 0x1a6   : > { %v8626_v31 = vpop.f32.mrf.mxu0  ;;  %8939 = vmatmul.mubr.msk.f32.gmra.mxu0 %vm666_vm1, %v9475_v53  ;;  %v2477_v41 = vpop.f32.mrf.mxu1  ;;  %v9477_v57 = vld [vmem:[%s9689_s12 + $0x1b0] sm:$0xff] }
 0x1a7   : > { %v2171_v33 = vadd.f32 %v8626_v31, %v13906_v34  ;;  %v11447_v32 = vadd.f32 %v2467_v48, %v2168_v50  ;;  %8941 = vmatprep.mubr.msk.f32.mxu0 %vm666_vm1, %v9476_v45  ;;  %v13909_v50 = vld [vmem:[#allocation47_spill] sm:$0xff]  ;;  %v9478_v34 = vld [vmem:[%s9689_s12 + $0x1c0] sm:$0xff] }
 0x1a8   : > { %v2080_v3 = vpop.f32.mrf.mxu0  ;;  %v8712_v15 = vpop.f32.mrf.mxu1  ;;  %9025 = vmatmul.mubr.msk.f32.gmra.mxu1 %vm666_vm1, %v13847_v18  ;;  %v13911_v45 = vld [vmem:[#allocation48_spill] sm:$0xff] }
 0x1a9   : > { %v2170_v35 = vadd.f32 %v2080_v3, %v13907_v11  ;;  %v11454_v8 = vadd.f32 %v8709_v54, %v2171_v33  ;;  %9027 = vmatprep.mubr.msk.f32.mxu1 %vm666_vm1, %v13908_v37  ;;  %v13910_v33 = vld [vmem:[#allocation61_spill] sm:$0xff]  ;;  %v13912_v37 = vld [vmem:[#allocation62_spill] sm:$0xff] }
 0x1aa   : > { %v8629_v59 = vpop.f32.mrf.mxu0  ;;  %8942 = vmatmul.mubr.msk.f32.gmra.mxu0 %vm666_vm1, %v9477_v57  ;;  %v2487_v48 = vpop.f32.mrf.mxu1  ;;  %v9479_v57 = vld [vmem:[%s9689_s12 + $0x1c8] sm:$0xff] }
 0x1ab   : > { %v2173_v31 = vadd.f32 %v8629_v59, %v13909_v50  ;;  %v11461_v53 = vadd.f32 %v2477_v41, %v2170_v35  ;;  %8944 = vmatprep.mubr.msk.f32.mxu0 %vm666_vm1, %v9478_v34  ;;  %v13913_v35 = vld [vmem:[#allocation52_spill] sm:$0xff] }
 0x1ac   : > { %v2090_v18 = vpop.f32.mrf.mxu0  ;;  %v8715_v54 = vpop.f32.mrf.mxu1  ;;  %9028 = vmatmul.mubr.msk.f32.gmra.mxu1 %vm666_vm1, %v13910_v33  ;;  %v9480_v33 = vld [vmem:[%s9689_s12 + $0x1d0] sm:$0xff] }
 0x1ad   : > { %v2172_v3 = vadd.f32 %v2090_v18, %v13911_v45  ;;  %v11468_v11 = vadd.f32 %v8712_v15, %v2173_v31  ;;  %9030 = vmatprep.mubr.msk.f32.mxu1 %vm666_vm1, %v13912_v37  ;;  %v13914_v18 = vld [vmem:[#allocation65_spill] sm:$0xff] }
 0x1ae   : > { %v8632_v59 = vpop.f32.mrf.mxu0  ;;  %8945 = vmatmul.mubr.msk.f32.gmra.mxu0 %vm666_vm1, %v9479_v57  ;;  %v11474_v41 = vpop.f32.mrf.mxu1  ;;  %v13915_v45 = vld [vmem:[#allocation53_spill] sm:$0xff] }
 0x1af   : > { %v2175_v50 = vadd.f32 %v8632_v59, %v13913_v35  ;;  %v11477_v34 = vadd.f32 %v2487_v48, %v2172_v3  ;;  %8947 = vmatprep.mubr.msk.f32.mxu0 %vm666_vm1, %v9480_v33  ;;  %v9481_v3 = vld [vmem:[%s9689_s12 + $0x1e0] sm:$0xff]  ;;  %v9482_v35 = vld [vmem:[%s9689_s12 + $0x1e8] sm:$0xff] }
 0x1b0   : > { %v2100_v15 = vpop.f32.mrf.mxu0  ;;  %v8718_v31 = vpop.f32.mrf.mxu1  ;;  %9031 = vmatmul.mubr.msk.f32.gmra.mxu1 %vm666_vm1, %v13914_v18 }
 0x1b1   : > { %v11484_v37 = vadd.f32 %v2100_v15, %v13915_v45  ;;  %v11486_v57 = vadd.f32 %v8715_v54, %v2175_v50  ;;  %9033 = vmatprep.mubr.msk.f32.mxu1 %vm666_vm1, %v13916_v43  ;;  %v13918_v15 = vld [vmem:[#allocation68_spill] sm:$0xff]  ;;  %v13921_v43 = vld [vmem:[#allocation69_spill] sm:$0xff]  ;;  %v9483_v45 = vld [vmem:[%s9689_s12 + $0x1f0] sm:$0xff] }
 0x1b2   : > { %v8635_v48 = vpop.f32.mrf.mxu0  ;;  %8948 = vmatmul.mubr.msk.f32.gmra.mxu0 %vm666_vm1, %v9481_v3  ;;  %v11492_v59 = vpop.f32.mrf.mxu1  ;;  %v13919_v54 = vld [vmem:[#allocation56_spill] sm:$0xff] }
 0x1b3   : > { %13917 = vst [vmem:[#allocation74_spill] sm:$0xff] %v11492_v59  ;;  %8950 = vmatprep.mubr.msk.f32.mxu0 %vm666_vm1, %v9482_v35  ;;  %v9484_v3 = vld [vmem:[%s9689_s12 + $0x200] sm:$0xff]  ;;  %v13922_v59 = vld [vmem:[#allocation70_spill] sm:$0xff] }
 0x1b4   : > { %v2110_v33 = vpop.f32.mrf.mxu0  ;;  %v8721_v31 = vpop.f32.mrf.mxu1  ;;  %9034 = vmatmul.mubr.msk.f32.gmra.mxu1 %vm666_vm1, %v13918_v15 }
 0x1b5   : > { %v11499_v50 = vadd.f32 %v2110_v33, %v13919_v54  ;;  %9036 = vmatprep.mubr.msk.f32.mxu1 %vm666_vm1, %v13921_v43  ;;  %v13923_v33 = vld [vmem:[#allocation71_spill] sm:$0xff]  ;;  %v9485_v54 = vld [vmem:[%s9689_s12 + $0x208] sm:$0xff] }
 0x1b6   : > { %v8638_v18 = vpop.f32.mrf.mxu0  ;;  %8951 = vmatmul.mubr.msk.f32.gmra.mxu0 %vm666_vm1, %v9483_v45  ;;  %v2516_v48 = vpop.f32.mrf.mxu1 }
 0x1b7   : > { %13920 = vst [vmem:[#allocation107_spill] sm:$0xff] %v11499_v50  ;;  %8953 = vmatprep.mubr.msk.f32.mxu0 %vm666_vm1, %v9484_v3  ;;  %v9486_v18 = vld [vmem:[%s9689_s12 + $0x210] sm:$0xff]  ;;  %v13924_v3 = vld [vmem:[#allocation72_spill] sm:$0xff] }
 0x1b8   : > { %v2119_v35 = vpop.f32.mrf.mxu0  ;;  %v8809_v31 = vpop.f32.mrf.mxu1  ;;  %9037 = vmatmul.mubr.msk.f32.gmra.mxu1 %vm666_vm1, %v13922_v59  ;;  %v13925_v59 = vld [vmem:[#allocation73_spill] sm:$0xff] }
 0x1b9   : > { %9039 = vmatprep.mubr.msk.f32.mxu1 %vm666_vm1, %v13923_v33  ;;  %v9487_v31 = vld [vmem:[%s9689_s12 + $0x220] sm:$0xff] }
 0x1ba   : > { %v8726_v15 = vpop.f32.mrf.mxu0  ;;  %8954 = vmatmul.mubr.msk.f32.gmra.mxu0 %vm666_vm1, %v9485_v54  ;;  %v3060_v43 = vpop.f32.mrf.mxu1  ;;  %v11525_v54 = vld [vmem:[%s9689_s12 + $0x268] sm:$0xff] }
 0x1bb   : > { %8956 = vmatprep.mubr.msk.f32.mxu0 %vm666_vm1, %v9486_v18  ;;  %v11522_v15 = vld [vmem:[%s9689_s12 + $0x260] sm:$0xff]  ;;  %v13926_v43 = vld [vmem:[#allocation58_spill] sm:$0xff] }
 0x1bc   : > { %v2659_v45 = vpop.f32.mrf.mxu0  ;;  %v8812_v48 = vpop.f32.mrf.mxu1  ;;  %9040 = vmatmul.mubr.msk.f32.gmra.mxu1 %vm666_vm1, %v13924_v3 }
 0x1bd   : > { %9042 = vmatprep.mubr.msk.f32.mxu1 %vm666_vm1, %v13925_v59  ;;  %v9488_v45 = vld [vmem:[%s9689_s12 + $0x228] sm:$0xff] }
 0x1be   : > { %v8729_v35 = vpop.f32.mrf.mxu0  ;;  %8957 = vmatmul.mubr.msk.f32.gmra.mxu0 %vm666_vm1, %v9487_v31  ;;  %v3070_v33 = vpop.f32.mrf.mxu1  ;;  %v3775_v31 = vrot.slane %v11522_v15, 1 }
 0x1bf   : > { %v2928_v18 = vadd.f32 %v8729_v35, %v13926_v43  ;;  %8959 = vmatprep.mubr.msk.f32.mxu0 %vm666_vm1, %v9488_v45  ;;  %v9489_v35 = vld [vmem:[%s9689_s12 + $0x230] sm:$0xff] }
 0x1c0   : > { %v2669_v3 = vpop.f32.mrf.mxu0  ;;  %v8815_v50 = vpop.f32.mrf.mxu1  ;;  %9043 = vmatmul.mubr.msk.f32.gmra.mxu1 %vm666_vm1, %v13870_v55  ;;  %v13928_v45 = vld [vmem:[#allocation63_spill] sm:$0xff]  ;;  %v9490_v55 = vld [vmem:[%s9689_s12 + $0x240] sm:$0xff] }
 0x1c1   : > { %v11532_v59 = vadd.f32 %v8812_v48, %v2928_v18  ;;  %9045 = vmatprep.mubr.msk.f32.mxu1 %vm666_vm1, %v11172_v26 }
 0x1c2   : > { %v8732_v30 = vpop.f32.mrf.mxu0  ;;  %8960 = vmatmul.mubr.msk.f32.gmra.mxu0 %vm666_vm1, %v9489_v35  ;;  %v11540_v43 = vpop.f32.mrf.mxu1  ;;  %v13929_v35 = vrot.slane %v11525_v54, 1 }
 0x1c3   : > { %13927 = vst [vmem:[#allocation108_spill] sm:$0xff] %v11540_v43  ;;  %v2930_v3 = vadd.f32 %v8732_v30, %v13928_v45  ;;  %8962 = vmatprep.mubr.msk.f32.mxu0 %vm666_vm1, %v9490_v55  ;;  %v9491_v43 = vld [vmem:[%s9689_s12 + $0x248] sm:$0xff] }
 0x1c4   : > { %v2679_v48 = vpop.f32.mrf.mxu0  ;;  %v8818_v18 = vpop.f32.mrf.mxu1  ;;  %9046 = vmatmul.mubr.msk.f32.gmra.mxu1 %vm666_vm1, %v11177_v5  ;;  %v3777_v30 = vsel %vm537_vm2, %v3775_v31, %v13929_v35  ;;  %v11578_v35 = vld [vmem:[%s9689_s12 + $0x270] sm:$0xff] }
 0x1c5   : > { %v11548_v26 = vadd.f32 %v2679_v48, %v11167_v13  ;;  %v11550_v33 = vadd.f32 %v8815_v50, %v2930_v3  ;;  %9048 = vmatprep.mubr.msk.f32.mxu1 %vm666_vm1, %v11195_v21  ;;  %v9492_v13 = vld [vmem:[%s9689_s12 + $0x250] sm:$0xff] }
 0x1c6   : > { %v8735_v45 = vpop.f32.mrf.mxu0  ;;  %8963 = vmatmul.mubr.msk.f32.gmra.mxu0 %vm666_vm1, %v9491_v43  ;;  %v11559_v55 = vpop.f32.mrf.mxu1 }
 0x1c7   : > { %13930 = vst [vmem:[#allocation5_spill] sm:$0xff] %v11559_v55  ;;  %v2932_v5 = vadd.f32 %v8735_v45, %v11180_v24  ;;  %8965 = vmatprep.mubr.msk.f32.mxu0 %vm666_vm1, %v9492_v13 }
 0x1c8   : > { %v2689_v50 = vpop.f32.mrf.mxu0  ;;  %v8821_v3 = vpop.f32.mrf.mxu1  ;;  %9049 = vmatmul.mubr.msk.f32.gmra.mxu1 %vm666_vm1, %v3777_v30 }
 0x1c9   : > { %v11566_v21 = vadd.f32 %v2689_v50, %v11190_v47  ;;  %v11568_v31 = vadd.f32 %v8818_v18, %v2932_v5  ;;  %v13934_v50 = vld [vmem:[#allocation75_spill] sm:$0xff] }
 0x1ca   : > { %v8738_v48 = vpop.f32.mrf.mxu0  ;;  %8966 = vmatmul.mubr.msk.f32.gmra.mxu0 %vm666_vm1, %v11522_v15  ;;  %v11572_v43 = vpop.f32.mrf.mxu1 }
 0x1cb   : > { %13931 = vst [vmem:[#allocation6_spill] sm:$0xff] %v11572_v43  ;;  %v2934_v24 = vadd.f32 %v8738_v48, %v11200_v29  ;;  %8968 = vmatprep.mubr.msk.f32.mxu0 %vm666_vm1, %v11525_v54 }
 0x1cc   : > { %v2699_v45 = vpop.f32.mrf.mxu0  ;;  %v8824_v30 = vpop.f32.mrf.mxu1 }
 0x1cd   : > { %v11581_v47 = vadd.f32 %v2699_v45, %v11207_v63  ;;  %v11583_v18 = vadd.f32 %v8821_v3, %v2934_v24  ;;  %v13935_v24 = vld [vmem:[#allocation76_spill] sm:$0xff] }
 0x1ce   : > { %v8741_v5 = vpop.f32.mrf.mxu0  ;;  %8969 = vmatmul.mubr.msk.f32.gmra.mxu0 %vm666_vm1, %v11578_v35  ;;  %v11587_v13 = vpop.f32.mrf.mxu1 }
 0x1cf   : > { %13932 = vst [vmem:[#allocation7_spill] sm:$0xff] %v11581_v47  ;;  %13933 = vst [vmem:[#allocation8_spill] sm:$0xff] %v11587_v13  ;;  %v2936_v29 = vadd.f32 %v8741_v5, %v11214_v16  ;;  %9056 = vmatprep.mubr.msk.f32.mxu0 %vm666_vm1, %v13934_v50  ;;  %v13937_v47 = vld [vmem:[#allocation77_spill] sm:$0xff] }
 0x1d0   : > { %v2709_v48 = vpop.f32.mrf.mxu0  ;;  %v8827_v43 = vpop.f32.mrf.mxu1 }
 0x1d1   : > { %v11593_v55 = vadd.f32 %v2709_v48, %v11221_v9  ;;  %v11595_v63 = vadd.f32 %v8824_v30, %v2936_v29  ;;  %v13938_v29 = vld [vmem:[#allocation78_spill] sm:$0xff] }
 0x1d2   : > { %v8744_v3 = vpop.f32.mrf.mxu0  ;;  %9057 = vmatmul.mubr.msk.f32.vlgmr.msra.gmra.mxu0 %vm666_vm1, %v13935_v24  ;;  %v11599_v45 = vpop.f32.mrf.mxu1 }
 0x1d3   : > { %13936 = vst [vmem:[#allocation9_spill] sm:$0xff] %v11599_v45  ;;  %v2938_v13 = vadd.f32 %v8744_v3, %v11230_v17  ;;  %9059 = vmatprep.mubr.msk.f32.mxu0 %vm666_vm1, %v13937_v47  ;;  %v13940_v45 = vld [vmem:[#allocation79_spill] sm:$0xff] }
 0x1d4   : > { %v2719_v16 = vpop.f32.mrf.mxu0  ;;  %v8830_v5 = vpop.f32.mrf.mxu1 }
 0x1d5   : > { %v11605_v50 = vadd.f32 %v2719_v16, %v11237_v10  ;;  %v11607_v9 = vadd.f32 %v8827_v43, %v2938_v13  ;;  %v13941_v13 = vld [vmem:[#allocation80_spill] sm:$0xff] }
 0x1d6   : > { %v8747_v30 = vpop.f32.mrf.mxu0  ;;  %9060 = vmatmul.mubr.msk.f32.gmra.mxu0 %vm666_vm1, %v13938_v29  ;;  %v11611_v48 = vpop.f32.mrf.mxu1 }
 0x1d7   : > { %13939 = vst [vmem:[#allocation10_spill] sm:$0xff] %v11611_v48  ;;  %v2940_v24 = vadd.f32 %v8747_v30, %v11244_v20  ;;  %9062 = vmatprep.mubr.msk.f32.mxu0 %vm666_vm1, %v13940_v45  ;;  %v13943_v48 = vld [vmem:[#allocation81_spill] sm:$0xff] }
 0x1d8   : > { %v2729_v17 = vpop.f32.mrf.mxu0  ;;  %v8833_v47 = vpop.f32.mrf.mxu1 }
 0x1d9   : > { %v11617_v3 = vadd.f32 %v2729_v17, %v11251_v61  ;;  %v11619_v10 = vadd.f32 %v8830_v5, %v2940_v24  ;;  %v13945_v24 = vld [vmem:[#allocation82_spill] sm:$0xff] }
 0x1da   : > { %v8750_v43 = vpop.f32.mrf.mxu0  ;;  %9063 = vmatmul.mubr.msk.f32.gmra.mxu0 %vm666_vm1, %v13941_v13  ;;  %v11623_v16 = vpop.f32.mrf.mxu1 }
 0x1db   : > { %13942 = vst [vmem:[#allocation11_spill] sm:$0xff] %v11623_v16  ;;  %v2942_v29 = vadd.f32 %v8750_v43, %v11258_v4  ;;  %9065 = vmatprep.mubr.msk.f32.mxu0 %vm666_vm1, %v13943_v48  ;;  %v13947_v16 = vld [vmem:[#allocation83_spill] sm:$0xff] }
 0x1dc   : > { %v2739_v20 = vpop.f32.mrf.mxu0  ;;  %v8836_v45 = vpop.f32.mrf.mxu1 }
 0x1dd   : > { %v11629_v30 = vadd.f32 %v2739_v20, %v11265_v28  ;;  %v11631_v61 = vadd.f32 %v8833_v47, %v2942_v29  ;;  %v13949_v29 = vld [vmem:[#allocation84_spill] sm:$0xff] }
 0x1de   : > { %v8753_v5 = vpop.f32.mrf.mxu0  ;;  %9066 = vmatmul.mubr.msk.f32.gmra.mxu0 %vm666_vm1, %v13945_v24  ;;  %v11635_v17 = vpop.f32.mrf.mxu1 }
 0x1df   : > { %13944 = vst [vmem:[#allocation12_spill] sm:$0xff] %v11629_v30  ;;  %13946 = vst [vmem:[#allocation13_spill] sm:$0xff] %v11635_v17  ;;  %v2944_v13 = vadd.f32 %v8753_v5, %v11272_v38  ;;  %9068 = vmatprep.mubr.msk.f32.mxu0 %vm666_vm1, %v13947_v16  ;;  %v13951_v17 = vld [vmem:[#allocation85_spill] sm:$0xff] }
 0x1e0   : > { %v2749_v4 = vpop.f32.mrf.mxu0  ;;  %v8839_v48 = vpop.f32.mrf.mxu1 }
 0x1e1   : > { %v11641_v43 = vadd.f32 %v2749_v4, %v11279_v49  ;;  %v11643_v28 = vadd.f32 %v8836_v45, %v2944_v13  ;;  %v13953_v13 = vld [vmem:[#allocation86_spill] sm:$0xff] }
 0x1e2   : > { %v8756_v47 = vpop.f32.mrf.mxu0  ;;  %9069 = vmatmul.mubr.msk.f32.gmra.mxu0 %vm666_vm1, %v13949_v29  ;;  %v11647_v20 = vpop.f32.mrf.mxu1 }
 0x1e3   : > { %13948 = vst [vmem:[#allocation14_spill] sm:$0xff] %v11641_v43  ;;  %13950 = vst [vmem:[#allocation15_spill] sm:$0xff] %v11647_v20  ;;  %v2946_v24 = vadd.f32 %v8756_v47, %v11286_v6  ;;  %9071 = vmatprep.mubr.msk.f32.mxu0 %vm666_vm1, %v13951_v17  ;;  %v13955_v20 = vld [vmem:[#allocation87_spill] sm:$0xff] }
 0x1e4   : > { %v2759_v38 = vpop.f32.mrf.mxu0  ;;  %v8842_v16 = vpop.f32.mrf.mxu1 }
 0x1e5   : > { %v11653_v5 = vadd.f32 %v2759_v38, %v11293_v56  ;;  %v11655_v49 = vadd.f32 %v8839_v48, %v2946_v24  ;;  %v13957_v24 = vld [vmem:[#allocation88_spill] sm:$0xff] }
 0x1e6   : > { %v8759_v45 = vpop.f32.mrf.mxu0  ;;  %9072 = vmatmul.mubr.msk.f32.gmra.mxu0 %vm666_vm1, %v13953_v13  ;;  %v11659_v4 = vpop.f32.mrf.mxu1 }
 0x1e7   : > { %13952 = vst [vmem:[#allocation16_spill] sm:$0xff] %v11653_v5  ;;  %13954 = vst [vmem:[#allocation17_spill] sm:$0xff] %v11659_v4  ;;  %v2948_v29 = vadd.f32 %v8759_v45, %v11300_v27  ;;  %9074 = vmatprep.mubr.msk.f32.mxu0 %vm666_vm1, %v13955_v20  ;;  %v13959_v4 = vld [vmem:[#allocation89_spill] sm:$0xff] }
 0x1e8   : > { %v2769_v6 = vpop.f32.mrf.mxu0  ;;  %v8845_v17 = vpop.f32.mrf.mxu1 }
 0x1e9   : > { %v11665_v47 = vadd.f32 %v2769_v6, %v11307_v0  ;;  %v11667_v56 = vadd.f32 %v8842_v16, %v2948_v29  ;;  %v13961_v29 = vld [vmem:[#allocation90_spill] sm:$0xff] }
 0x1ea   : > { %v8762_v48 = vpop.f32.mrf.mxu0  ;;  %9075 = vmatmul.mubr.msk.f32.gmra.mxu0 %vm666_vm1, %v13957_v24  ;;  %v11671_v38 = vpop.f32.mrf.mxu1 }
 0x1eb   : > { %13956 = vst [vmem:[#allocation18_spill] sm:$0xff] %v11665_v47  ;;  %13958 = vst [vmem:[#allocation19_spill] sm:$0xff] %v11671_v38  ;;  %v2950_v13 = vadd.f32 %v8762_v48, %v11314_v23  ;;  %9077 = vmatprep.mubr.msk.f32.mxu0 %vm666_vm1, %v13959_v4  ;;  %v13963_v38 = vld [vmem:[#allocation91_spill] sm:$0xff]  ;;  %v7572_v23 = vld [vmem:[%s13409_s3 + $0x8] sm:$0xff] }
 0x1ec   : > { %v2779_v27 = vpop.f32.mrf.mxu0  ;;  %v8848_v20 = vpop.f32.mrf.mxu1  ;;  %9137 = vmatprep.subr.mxu1 %v7572_v23 }
 0x1ed   : > { %v11677_v45 = vadd.f32 %v2779_v27, %v11321_v39  ;;  %v11679_v0 = vadd.f32 %v8845_v17, %v2950_v13  ;;  %9138 = vmatpush3.msra.mxu1 %v7572_v23  ;;  %v13965_v27 = vld [vmem:[#allocation92_spill] sm:$0xff] }
 0x1ee   : > { %v8765_v16 = vpop.f32.mrf.mxu0  ;;  %9078 = vmatmul.mubr.msk.f32.gmra.mxu0 %vm666_vm1, %v13961_v29  ;;  %v11683_v6 = vpop.f32.mrf.mxu1 }
 0x1ef   : > { %13960 = vst [vmem:[#allocation20_spill] sm:$0xff] %v11677_v45  ;;  %13962 = vst [vmem:[#allocation21_spill] sm:$0xff] %v11683_v6  ;;  %v2952_v24 = vadd.f32 %v8765_v16, %v11328_v36  ;;  %9080 = vmatprep.mubr.msk.f32.mxu0 %vm666_vm1, %v13963_v38  ;;  %v13967_v16 = vld [vmem:[#allocation93_spill] sm:$0xff] }
 0x1f0   : > { %v2789_v4 = vpop.f32.mrf.mxu0  ;;  %v8851_v39 = vpop.f32.mrf.mxu1 }
 0x1f1   : > { %v11692_v17 = vadd.f32 %v2789_v4, %v11335_v19  ;;  %v11694_v48 = vadd.f32 %v8848_v20, %v2952_v24  ;;  %v13969_v24 = vld [vmem:[#allocation94_spill] sm:$0xff] }
 0x1f2   : > { %v8768_v13 = vpop.f32.mrf.mxu0  ;;  %9081 = vmatmul.mubr.msk.f32.gmra.mxu0 %vm666_vm1, %v13965_v27  ;;  %v11698_v36 = vpop.f32.mrf.mxu1  ;;  %v13971_v27 = vld [vmem:[#allocation95_spill] sm:$0xff] }
 0x1f3   : > { %13964 = vst [vmem:[#allocation22_spill] sm:$0xff] %v11692_v17  ;;  %13966 = vst [vmem:[#allocation23_spill] sm:$0xff] %v11698_v36  ;;  %v2954_v38 = vadd.f32 %v8768_v13, %v11342_v44  ;;  %9083 = vmatprep.mubr.msk.f32.mxu0 %vm666_vm1, %v13967_v16 }
 0x1f4   : > { %v2799_v29 = vpop.f32.mrf.mxu0  ;;  %v8854_v6 = vpop.f32.mrf.mxu1 }
 0x1f5   : > { %v11704_v45 = vadd.f32 %v2799_v29, %v11349_v14  ;;  %v11706_v19 = vadd.f32 %v8851_v39, %v2954_v38  ;;  %v13973_v38 = vld [vmem:[#allocation96_spill] sm:$0xff] }
 0x1f6   : > { %v8771_v20 = vpop.f32.mrf.mxu0  ;;  %9084 = vmatmul.mubr.msk.f32.gmra.mxu0 %vm666_vm1, %v13969_v24  ;;  %v11710_v23 = vpop.f32.mrf.mxu1 }
 0x1f7   : > { %13968 = vst [vmem:[#allocation24_spill] sm:$0xff] %v11704_v45  ;;  %13970 = vst [vmem:[#allocation25_spill] sm:$0xff] %v11710_v23  ;;  %v2956_v4 = vadd.f32 %v8771_v20, %v11356_v46  ;;  %9086 = vmatprep.mubr.msk.f32.mxu0 %vm666_vm1, %v13971_v27  ;;  %v13975_v23 = vld [vmem:[#allocation97_spill] sm:$0xff] }
 0x1f8   : > { %v2809_v44 = vpop.f32.mrf.mxu0  ;;  %v8857_v13 = vpop.f32.mrf.mxu1 }
 0x1f9   : > { %v11716_v16 = vadd.f32 %v2809_v44, %v11363_v25  ;;  %v11718_v14 = vadd.f32 %v8854_v6, %v2956_v4  ;;  %v13977_v4 = vld [vmem:[#allocation98_spill] sm:$0xff] }
 0x1fa   : > { %v8774_v39 = vpop.f32.mrf.mxu0  ;;  %9087 = vmatmul.mubr.msk.f32.gmra.mxu0 %vm666_vm1, %v13973_v38  ;;  %v11722_v29 = vpop.f32.mrf.mxu1 }
 0x1fb   : > { %13972 = vst [vmem:[#allocation26_spill] sm:$0xff] %v11716_v16  ;;  %13974 = vst [vmem:[#allocation27_spill] sm:$0xff] %v11722_v29  ;;  %v2958_v24 = vadd.f32 %v8774_v39, %v11370_v58  ;;  %9089 = vmatprep.mubr.msk.f32.mxu0 %vm666_vm1, %v13975_v23  ;;  %v13979_v29 = vld [vmem:[#allocation99_spill] sm:$0xff] }
 0x1fc   : > { %v2819_v46 = vpop.f32.mrf.mxu0  ;;  %v8860_v20 = vpop.f32.mrf.mxu1 }
 0x1fd   : > { %v11728_v27 = vadd.f32 %v2819_v46, %v11377_v60  ;;  %v11730_v25 = vadd.f32 %v8857_v13, %v2958_v24  ;;  %v13981_v24 = vld [vmem:[#allocation100_spill] sm:$0xff] }
 0x1fe   : > { %v8777_v6 = vpop.f32.mrf.mxu0  ;;  %9090 = vmatmul.mubr.msk.f32.gmra.mxu0 %vm666_vm1, %v13977_v4  ;;  %v11734_v44 = vpop.f32.mrf.mxu1 }
 0x1ff   : > { %13976 = vst [vmem:[#allocation28_spill] sm:$0xff] %v11728_v27  ;;  %13978 = vst [vmem:[#allocation29_spill] sm:$0xff] %v11734_v44  ;;  %v2960_v38 = vadd.f32 %v8777_v6, %v11384_v2  ;;  %9092 = vmatprep.mubr.msk.f32.mxu0 %vm666_vm1, %v13979_v29  ;;  %v13983_v44 = vld [vmem:[#allocation101_spill] sm:$0xff] }
 0x200   : > { %v2829_v58 = vpop.f32.mrf.mxu0  ;;  %v8863_v23 = vpop.f32.mrf.mxu1 }
 0x201   : > { %v11740_v39 = vadd.f32 %v2829_v58, %v11391_v22  ;;  %v11742_v60 = vadd.f32 %v8860_v20, %v2960_v38  ;;  %v13985_v38 = vld [vmem:[#allocation102_spill] sm:$0xff] }
 0x202   : > { %v8780_v13 = vpop.f32.mrf.mxu0  ;;  %9093 = vmatmul.mubr.msk.f32.gmra.mxu0 %vm666_vm1, %v13981_v24  ;;  %v11746_v46 = vpop.f32.mrf.mxu1 }
 0x203   : > { %13980 = vst [vmem:[#allocation30_spill] sm:$0xff] %v11740_v39  ;;  %13982 = vst [vmem:[#allocation31_spill] sm:$0xff] %v11746_v46  ;;  %v2962_v4 = vadd.f32 %v8780_v13, %v11398_v7  ;;  %9095 = vmatprep.mubr.msk.f32.mxu0 %vm666_vm1, %v13983_v44  ;;  %v13987_v46 = vld [vmem:[#allocation35_spill] sm:$0xff] }
 0x204   : > { %v2839_v2 = vpop.f32.mrf.mxu0  ;;  %v8866_v29 = vpop.f32.mrf.mxu1  ;;  %v14002_v39 = vld [vmem:[#allocation55_spill] sm:$0xff] }
 0x205   : > { %v11752_v6 = vadd.f32 %v2839_v2, %v11405_v12  ;;  %v11754_v22 = vadd.f32 %v8863_v23, %v2962_v4  ;;  %v13989_v4 = vld [vmem:[#allocation36_spill] sm:$0xff] }
 0x206   : > { %v8783_v20 = vpop.f32.mrf.mxu0  ;;  %9096 = vmatmul.mubr.msk.f32.gmra.mxu0 %vm666_vm1, %v13985_v38  ;;  %v11758_v58 = vpop.f32.mrf.mxu1 }
 0x207   : > { %13984 = vst [vmem:[#allocation32_spill] sm:$0xff] %v11752_v6  ;;  %13986 = vst [vmem:[#allocation33_spill] sm:$0xff] %v11758_v58  ;;  %v2964_v24 = vadd.f32 %v8783_v20, %v11412_v40  ;;  %9098 = vmatprep.mubr.msk.f32.mxu0 %vm666_vm1, %v13987_v46  ;;  %v13991_v58 = vld [vmem:[#allocation37_spill] sm:$0xff]  ;;  %v14001_v6 = vld [vmem:[#allocation54_spill] sm:$0xff] }
 0x208   : > { %v2849_v7 = vpop.f32.mrf.mxu0  ;;  %v8869_v44 = vpop.f32.mrf.mxu1 }
 0x209   : > { %v11764_v13 = vadd.f32 %v2849_v7, %v11419_v52  ;;  %v11766_v12 = vadd.f32 %v8866_v29, %v2964_v24  ;;  %v13993_v24 = vld [vmem:[#allocation40_spill] sm:$0xff] }
 0x20a   : > { %v8786_v23 = vpop.f32.mrf.mxu0  ;;  %9099 = vmatmul.mubr.msk.f32.gmra.mxu0 %vm666_vm1, %v13989_v4  ;;  %v11770_v2 = vpop.f32.mrf.mxu1 }
 0x20b   : > { %13988 = vst [vmem:[#allocation34_spill] sm:$0xff] %v11764_v13  ;;  %13990 = vst [vmem:[#allocation38_spill] sm:$0xff] %v11770_v2  ;;  %v2966_v38 = vadd.f32 %v8786_v23, %v11426_v62  ;;  %9101 = vmatprep.mubr.msk.f32.mxu0 %vm666_vm1, %v13991_v58  ;;  %v13994_v2 = vld [vmem:[#allocation41_spill] sm:$0xff] }
 0x20c   : > { %v2859_v40 = vpop.f32.mrf.mxu0  ;;  %v8872_v46 = vpop.f32.mrf.mxu1  ;;  %v13998_v13 = vld [vmem:[#allocation49_spill] sm:$0xff] }
 0x20d   : > { %v11776_v20 = vadd.f32 %v2859_v40, %v11433_v42  ;;  %v11778_v52 = vadd.f32 %v8869_v44, %v2966_v38  ;;  %v13995_v38 = vld [vmem:[#allocation44_spill] sm:$0xff] }
 0x20e   : > { %v8789_v29 = vpop.f32.mrf.mxu0  ;;  %9102 = vmatmul.mubr.msk.f32.gmra.mxu0 %vm666_vm1, %v13993_v24  ;;  %v11782_v7 = vpop.f32.mrf.mxu1 }
 0x20f   : > { %13992 = vst [vmem:[#allocation39_spill] sm:$0xff] %v11776_v20  ;;  %v2968_v4 = vadd.f32 %v8789_v29, %v11440_v1  ;;  %9104 = vmatprep.mubr.msk.f32.mxu0 %vm666_vm1, %v13994_v2  ;;  %v13996_v20 = vld [vmem:[#allocation45_spill] sm:$0xff] }
 0x210   : > { %v2869_v62 = vpop.f32.mrf.mxu0  ;;  %v8875_v58 = vpop.f32.mrf.mxu1 }
 0x211   : > { %v11788_v23 = vadd.f32 %v2869_v62, %v11447_v32  ;;  %v11790_v42 = vadd.f32 %v8872_v46, %v2968_v4  ;;  %v13997_v4 = vld [vmem:[#allocation46_spill] sm:$0xff] }
 0x212   : > { %v8792_v44 = vpop.f32.mrf.mxu0  ;;  %9105 = vmatmul.mubr.msk.f32.gmra.mxu0 %vm666_vm1, %v13995_v38  ;;  %v11794_v40 = vpop.f32.mrf.mxu1 }
 0x213   : > { %v2970_v24 = vadd.f32 %v8792_v44, %v11454_v8  ;;  %9107 = vmatprep.mubr.msk.f32.mxu0 %vm666_vm1, %v13996_v20 }
 0x214   : > { %v2879_v1 = vpop.f32.mrf.mxu0  ;;  %v8878_v2 = vpop.f32.mrf.mxu1 }
 0x215   : > { %v11800_v29 = vadd.f32 %v2879_v1, %v11461_v53  ;;  %v11802_v32 = vadd.f32 %v8875_v58, %v2970_v24  ;;  %v13999_v24 = vld [vmem:[#allocation50_spill] sm:$0xff] }
 0x216   : > { %v8795_v46 = vpop.f32.mrf.mxu0  ;;  %9108 = vmatmul.mubr.msk.f32.gmra.mxu0 %vm666_vm1, %v13997_v4  ;;  %v11806_v62 = vpop.f32.mrf.mxu1  ;;  %v2571_v4 = vadd.f32 %v11474_v41, %v11484_v37 }
 0x217   : > { %v2972_v38 = vadd.f32 %v8795_v46, %v11468_v11  ;;  %9110 = vmatprep.mubr.msk.f32.mxu0 %vm666_vm1, %v13998_v13  ;;  %v14000_v46 = vld [vmem:[#allocation51_spill] sm:$0xff] }
 0x218   : > { %v2889_v8 = vpop.f32.mrf.mxu0  ;;  %v8881_v20 = vpop.f32.mrf.mxu1 }
 0x219   : > { %v11812_v44 = vadd.f32 %v2889_v8, %v11477_v34  ;;  %v11814_v53 = vadd.f32 %v8878_v2, %v2972_v38 }
 0x21a   : > { %v8798_v58 = vpop.f32.mrf.mxu0  ;;  %9111 = vmatmul.mubr.msk.f32.gmra.mxu0 %vm666_vm1, %v13999_v24  ;;  %v11818_v1 = vpop.f32.mrf.mxu1 }
 0x21b   : > { %v2974_v11 = vadd.f32 %v8798_v58, %v11486_v57  ;;  %9113 = vmatprep.mubr.msk.f32.mxu0 %vm666_vm1, %v14000_v46  ;;  %v14003_v58 = vld [vmem:[#allocation59_spill] sm:$0xff]  ;;  %v14004_v46 = vld [vmem:[#allocation60_spill] sm:$0xff] }
 0x21c   : > { %v2899_v13 = vpop.f32.mrf.mxu0  ;;  %v8884_v34 = vpop.f32.mrf.mxu1 }
 0x21d   : > { %v11825_v8 = vadd.f32 %v2899_v13, %v2571_v4  ;;  %v11827_v2 = vadd.f32 %v8881_v20, %v2974_v11  ;;  %v463_v20 = vld [vmem:[%s9689_s12 + $0x278] sm:$0x3]  ;;  %v3778_v11 = vrot.slane %v11578_v35, 1  ;;  %s13371_s12 = scalar_lea.hbm %s13417_s11, %s7726_s13 }
 0x21e   : > { %v8801_v38 = vpop.f32.mrf.mxu0  ;;  %9114 = vmatmul.mubr.msk.f32.gmra.mxu0 %vm666_vm1, %v14001_v6  ;;  %v11831_v24 = vpop.f32.mrf.mxu1  ;;  %v3780_v34 = vrot.slane %v463_v20, 1 }
 0x21f   : > { %9116 = vmatprep.mubr.msk.f32.mxu0 %vm666_vm1, %v14002_v39  ;;  %v14005_v38 = vrot.slane %v11525_v54, 1 }
 0x220   : > { %v11835_v41 = vpop.f32.mrf.mxu0  ;;  %v8887_v37 = vpop.f32.mrf.mxu1 }
 0x221   : > { %v3779_v39 = vsel %vm537_vm2, %v14005_v38, %v3778_v11  ;;  %v7637_v37 = vld [vmem:[%s13409_s3 + $0x20] sm:$0xff]  ;;  %v13602_v38 = vmov 0.0  }
 0x222   : > { %v8804_v57 = vpop.f32.mrf.mxu0  ;;  %9117 = vmatmul.mubr.msk.f32.gmra.mxu0 %vm666_vm1, %v14003_v58  ;;  %v3319_v4 = vpop.f32.mrf.mxu1  ;;  %v14006_v58 = vld [vmem:[#allocation64_spill] sm:$0xff]  ;;  %9051 = vmatprep.mubr.msk.f32.mxu1 %vm666_vm1, %v3779_v39 }
 0x223   : > { %9119 = vmatprep.mubr.msk.f32.mxu0 %vm666_vm1, %v14004_v46  ;;  %v3781_v46 = vsel %vm537_vm2, %v3778_v11, %v3780_v34  ;;  %9241 = vmatprep.subr.mxu0 %v7637_v37  ;;  %v14009_v34 = vld [vmem:[#allocation106_spill] sm:$0xff] }
 0x224   : > { %v2918_v6 = vpop.f32.mrf.mxu0  ;;  %v8975_v13 = vpop.f32.mrf.mxu1  ;;  %9052 = vmatmul.mubr.msk.f32.gmra.mxu1 %vm666_vm1, %v3781_v46  ;;  %9242 = vmatpush3.msra.mxu0 %v7637_v37 }
 0x225   : > { %v14007_v6 = vld [vmem:[#allocation67_spill] sm:$0xff] }
 0x226   : > { %v8892_v57 = vpop.f32.mrf.mxu0  ;;  %9120 = vmatmul.mubr.msk.f32.gmra.mxu0 %vm666_vm1, %v14006_v58  ;;  %v3859_v4 = vpop.f32.mrf.mxu1  ;;  %v14008_v58 = vld [vmem:[#allocation105_spill] sm:$0xff] }
 0x227   : > { %9122 = vmatprep.mubr.msk.f32.mxu0 %vm666_vm1, %v14007_v6  ;;  %v4784_v57 = vrot.slane %v13602_v38, 1 }
 0x228   : > { %v3457_v13 = vpop.f32.mrf.mxu0  ;;  %v8978_v27 = vpop.f32.mrf.mxu1 }
 0x229   : > { %9139 = vmatprep.mubr.msk.f32.mxu1 %vm4826_vm4, %v4784_v57  ;;  %v14010_v13 = vld [vmem:[#allocation109_spill] sm:$0xff] }
 0x22a   : > { %v8895_v16 = vpop.f32.mrf.mxu0  ;;  %9123 = vmatmul.mubr.msk.f32.gmra.mxu0 %vm666_vm1, %v14008_v58  ;;  %v3869_v39 = vpop.f32.mrf.mxu1  ;;  %9140 = vmatmul.mubr.msk.f32.vlgmr.msra.gmra.mxu1 %vm4826_vm4, %v4784_v57  ;;  %v4176_v58 = vrot.slane %v11522_v15, 2 }
 0x22b   : > { %v3726_v11 = vadd.f32 %v8895_v16, %v11532_v59  ;;  %9125 = vmatprep.mubr.msk.f32.mxu0 %vm666_vm1, %v14009_v34  ;;  %v4177_v59 = vrot.slane %v11525_v54, 2  ;;  %v4181_v54 = vrot.slane %v463_v20, 2 }
 0x22c   : > { %v3467_v4 = vpop.f32.mrf.mxu0  ;;  %v8981_v6 = vpop.f32.mrf.mxu1 }
 0x22d   : > { %v11864_v37 = vadd.f32 %v8978_v27, %v3726_v11  ;;  %v4179_v27 = vrot.slane %v11578_v35, 2  ;;  %v14011_v4 = vld [vmem:[#allocation103_spill] sm:$0xff] }
 0x22e   : > { %v8898_v46 = vpop.f32.mrf.mxu0  ;;  %9126 = vmatmul.mubr.msk.f32.gmra.mxu0 %vm666_vm1, %v14010_v13  ;;  %v11868_v38 = vpop.f32.mrf.mxu1 }
 0x22f   : > { %v3728_v39 = vadd.f32 %v8898_v46, %v11550_v33  ;;  %9128 = vmatprep.mubr.msk.f32.mxu0 %vm666_vm1, %v11159_v51  ;;  %v14012_v33 = vld [vmem:[#allocation104_spill] sm:$0xff]  ;;  %v4178_v51 = vsel %vm1554_vm3, %v4176_v58, %v4177_v59  ;;  %v4180_v35 = vsel %vm1554_vm3, %v4177_v59, %v4179_v27 }
 0x230   : > { %v11875_v16 = vpop.f32.mrf.mxu0  ;;  %v8984_v57 = vpop.f32.mrf.mxu1 }
 0x231   : > { %v11878_v11 = vadd.f32 %v8981_v6, %v3728_v39 }
 0x232   : > { %v8901_v34 = vpop.f32.mrf.mxu0  ;;  %9129 = vmatmul.mubr.msk.f32.gmra.mxu0 %vm666_vm1, %v14011_v4  ;;  %v11882_v13 = vpop.f32.mrf.mxu1 }
 0x233   : > { %v3730_v15 = vadd.f32 %v8901_v34, %v11568_v31  ;;  %9131 = vmatprep.mubr.msk.f32.mxu0 %vm666_vm1, %v14012_v33  ;;  %v4182_v34 = vsel %vm1554_vm3, %v4179_v27, %v4181_v54 }
 0x234   : > { %v11888_v46 = vpop.f32.mrf.mxu0  ;;  %v8987_v36 = vpop.f32.mrf.mxu1 }
 0x235   : > { %v11891_v6 = vadd.f32 %v8984_v57, %v3730_v15 }
 0x236   : > { %v8904_v39 = vpop.f32.mrf.mxu0  ;;  %9132 = vmatmul.mubr.msk.f32.gmra.mxu0 %vm666_vm1, %v4178_v51  ;;  %v11894_v4 = vpop.f32.mrf.mxu1 }
 0x237   : > { %v3732_v31 = vadd.f32 %v8904_v39, %v11583_v18  ;;  %9134 = vmatprep.mubr.msk.f32.mxu0 %vm666_vm1, %v4180_v35 }
 0x238   : > { %v11899_v58 = vpop.f32.mrf.mxu0  ;;  %v8990_v20 = vpop.f32.mrf.mxu1 }
 0x239   : > { %v11901_v33 = vadd.f32 %v8987_v36, %v3732_v31 }
 0x23a   : > { %v8907_v45 = vpop.f32.mrf.mxu0  ;;  %v11903_v59 = vpop.f32.mrf.mxu1  ;;  %9135 = vmatmul.mubr.msk.f32.gmra.mxu0 %vm666_vm1, %v4182_v34 }
 0x23b   : > { %v3734_v57 = vadd.f32 %v8907_v45, %v11595_v63 }
 0x23c   : > { %v11907_v15 = vpop.f32.mrf.mxu0  ;;  %v8993_v51 = vpop.f32.mrf.mxu1 }
 0x23d   : > { %v11909_v18 = vadd.f32 %v8990_v20, %v3734_v57 }
 0x23e   : > { %v8910_v35 = vpop.f32.mrf.mxu0  ;;  %v11911_v39 = vpop.f32.mrf.mxu1 }
 0x23f   : > { %v3736_v27 = vadd.f32 %v8910_v35, %v11607_v9 }
 0x240   : > { %v11914_v54 = vpop.f32.mrf.mxu0  ;;  %v8996_v36 = vpop.f32.mrf.mxu1 }
 0x241   : > { %v11916_v31 = vadd.f32 %v8993_v51, %v3736_v27 }
 0x242   : > { %v8913_v17 = vpop.f32.mrf.mxu0  ;;  %v11918_v47 = vpop.f32.mrf.mxu1 }
 0x243   : > { %14013 = vst [vmem:[#allocation42_spill] sm:$0xff] %v11918_v47  ;;  %v3738_v63 = vadd.f32 %v8913_v17, %v11619_v10 }
 0x244   : > { %v11921_v45 = vpop.f32.mrf.mxu0  ;;  %v8999_v34 = vpop.f32.mrf.mxu1 }
 0x245   : > { %v11923_v20 = vadd.f32 %v8996_v36, %v3738_v63 }
 0x246   : > { %v8916_v57 = vpop.f32.mrf.mxu0  ;;  %v11925_v5 = vpop.f32.mrf.mxu1 }
 0x247   : > { %14014 = vst [vmem:[#allocation43_spill] sm:$0xff] %v11923_v20  ;;  %14015 = vst [vmem:[#allocation57_spill] sm:$0xff] %v11925_v5  ;;  %v3740_v9 = vadd.f32 %v8916_v57, %v11631_v61 }
 0x248   : > { %v11928_v35 = vpop.f32.mrf.mxu0  ;;  %v9002_v43 = vpop.f32.mrf.mxu1 }
 0x249   : > { %v11930_v51 = vadd.f32 %v8999_v34, %v3740_v9 }
 0x24a   : > { %v8919_v27 = vpop.f32.mrf.mxu0  ;;  %v11932_v30 = vpop.f32.mrf.mxu1 }
 0x24b   : > { %14016 = vst [vmem:[#allocation47_spill] sm:$0xff] %v11930_v51  ;;  %14017 = vst [vmem:[#allocation61_spill] sm:$0xff] %v11932_v30  ;;  %v3742_v10 = vadd.f32 %v8919_v27, %v11643_v28 }
 0x24c   : > { %v11935_v17 = vpop.f32.mrf.mxu0  ;;  %v9005_v47 = vpop.f32.mrf.mxu1 }
 0x24d   : > { %v11937_v36 = vadd.f32 %v9002_v43, %v3742_v10 }
 0x24e   : > { %v8922_v63 = vpop.f32.mrf.mxu0  ;;  %v11939_v20 = vpop.f32.mrf.mxu1 }
 0x24f   : > { %14018 = vst [vmem:[#allocation48_spill] sm:$0xff] %v11937_v36  ;;  %14019 = vst [vmem:[#allocation62_spill] sm:$0xff] %v11939_v20  ;;  %v3744_v61 = vadd.f32 %v8922_v63, %v11655_v49 }
 0x250   : > { %v11942_v57 = vpop.f32.mrf.mxu0  ;;  %v9008_v5 = vpop.f32.mrf.mxu1 }
 0x251   : > { %v11944_v34 = vadd.f32 %v9005_v47, %v3744_v61 }
 0x252   : > { %v8925_v9 = vpop.f32.mrf.mxu0  ;;  %v11946_v51 = vpop.f32.mrf.mxu1 }
 0x253   : > { %14020 = vst [vmem:[#allocation52_spill] sm:$0xff] %v11944_v34  ;;  %14021 = vst [vmem:[#allocation65_spill] sm:$0xff] %v11946_v51  ;;  %v3746_v28 = vadd.f32 %v8925_v9, %v11667_v56 }
 0x254   : > { %v11949_v27 = vpop.f32.mrf.mxu0  ;;  %v9011_v30 = vpop.f32.mrf.mxu1 }
 0x255   : > { %v11951_v43 = vadd.f32 %v9008_v5, %v3746_v28 }
 0x256   : > { %v8928_v10 = vpop.f32.mrf.mxu0  ;;  %v11953_v36 = vpop.f32.mrf.mxu1 }
 0x257   : > { %14022 = vst [vmem:[#allocation53_spill] sm:$0xff] %v11951_v43  ;;  %14023 = vst [vmem:[#allocation66_spill] sm:$0xff] %v11953_v36  ;;  %v3748_v49 = vadd.f32 %v8928_v10, %v11679_v0 }
 0x258   : > { %v11956_v63 = vpop.f32.mrf.mxu0  ;;  %v9014_v20 = vpop.f32.mrf.mxu1 }
 0x259   : > { %v11958_v47 = vadd.f32 %v9011_v30, %v3748_v49  ;;  %v4759_v30 = vld [vmem:[%s13409_s3] sm:$0xff] }
 0x25a   : > { %v8931_v61 = vpop.f32.mrf.mxu0  ;;  %v11960_v34 = vpop.f32.mrf.mxu1  ;;  %9163 = vmatprep.subr.mxu1 %v4759_v30 }
 0x25b   : > { %14024 = vst [vmem:[#allocation68_spill] sm:$0xff] %v11960_v34  ;;  %v3750_v56 = vadd.f32 %v8931_v61, %v11694_v48  ;;  %9164 = vmatpush3.msra.mxu1 %v4759_v30 }
 0x25c   : > { %v11963_v9 = vpop.f32.mrf.mxu0  ;;  %v9017_v51 = vpop.f32.mrf.mxu1 }
 0x25d   : > { %v11965_v5 = vadd.f32 %v9014_v20, %v3750_v56 }
 0x25e   : > { %v8934_v28 = vpop.f32.mrf.mxu0  ;;  %v11967_v43 = vpop.f32.mrf.mxu1 }
 0x25f   : > { %14025 = vst [vmem:[#allocation56_spill] sm:$0xff] %v11965_v5  ;;  %14026 = vst [vmem:[#allocation69_spill] sm:$0xff] %v11967_v43  ;;  %v3752_v0 = vadd.f32 %v8934_v28, %v11706_v19 }
 0x260   : > { %v11970_v10 = vpop.f32.mrf.mxu0  ;;  %v9020_v36 = vpop.f32.mrf.mxu1 }
 0x261   : > { %14027 = vst [vmem:[#allocation70_spill] sm:$0xff] %v11970_v10  ;;  %v11975_v49 = vadd.f32 %v9017_v51, %v3752_v0 }
 0x262   : > { %v8937_v48 = vpop.f32.mrf.mxu0  ;;  %v11977_v61 = vpop.f32.mrf.mxu1 }
 0x263   : > { %14028 = vst [vmem:[#allocation71_spill] sm:$0xff] %v11975_v49  ;;  %14029 = vst [vmem:[#allocation72_spill] sm:$0xff] %v11977_v61  ;;  %v3754_v20 = vadd.f32 %v8937_v48, %v11718_v14 }
 0x264   : > { %v11980_v56 = vpop.f32.mrf.mxu0  ;;  %v9023_v43 = vpop.f32.mrf.mxu1 }
 0x265   : > { %v11982_v19 = vadd.f32 %v9020_v36, %v3754_v20 }
 0x266   : > { %v8940_v28 = vpop.f32.mrf.mxu0  ;;  %v11984_v5 = vpop.f32.mrf.mxu1 }
 0x267   : > { %14030 = vst [vmem:[#allocation73_spill] sm:$0xff] %v11982_v19  ;;  %14031 = vst [vmem:[#allocation58_spill] sm:$0xff] %v11984_v5  ;;  %v3756_v10 = vadd.f32 %v8940_v28, %v11730_v25 }
 0x268   : > { %v11987_v34 = vpop.f32.mrf.mxu0  ;;  %v9026_v51 = vpop.f32.mrf.mxu1 }
 0x269   : > { %v11989_v0 = vadd.f32 %v9023_v43, %v3756_v10 }
 0x26a   : > { %v8943_v49 = vpop.f32.mrf.mxu0  ;;  %v11991_v61 = vpop.f32.mrf.mxu1 }
 0x26b   : > { %14032 = vst [vmem:[#allocation63_spill] sm:$0xff] %v11989_v0  ;;  %14033 = vst [vmem:[#allocation75_spill] sm:$0xff] %v11991_v61  ;;  %v3758_v14 = vadd.f32 %v8943_v49, %v11742_v60 }
 0x26c   : > { %v11994_v30 = vpop.f32.mrf.mxu0  ;;  %v9029_v48 = vpop.f32.mrf.mxu1 }
 0x26d   : > { %v11996_v36 = vadd.f32 %v9026_v51, %v3758_v14 }
 0x26e   : > { %v8946_v20 = vpop.f32.mrf.mxu0  ;;  %v11998_v19 = vpop.f32.mrf.mxu1 }
 0x26f   : > { %14034 = vst [vmem:[#allocation76_spill] sm:$0xff] %v11996_v36  ;;  %14035 = vst [vmem:[#allocation77_spill] sm:$0xff] %v11998_v19  ;;  %v3760_v25 = vadd.f32 %v8946_v20, %v11754_v22 }
 0x270   : > { %v12001_v28 = vpop.f32.mrf.mxu0  ;;  %v9032_v5 = vpop.f32.mrf.mxu1 }
 0x271   : > { %v12003_v43 = vadd.f32 %v9029_v48, %v3760_v25 }
 0x272   : > { %v8949_v10 = vpop.f32.mrf.mxu0  ;;  %v12005_v0 = vpop.f32.mrf.mxu1 }
 0x273   : > { %14036 = vst [vmem:[#allocation78_spill] sm:$0xff] %v12003_v43  ;;  %14037 = vst [vmem:[#allocation79_spill] sm:$0xff] %v12005_v0  ;;  %v3762_v60 = vadd.f32 %v8949_v10, %v11766_v12  ;;  %v3368_v12 = vadd.f32 %v11782_v7, %v11788_v23 }
 0x274   : > { %v12008_v49 = vpop.f32.mrf.mxu0  ;;  %v9035_v61 = vpop.f32.mrf.mxu1 }
 0x275   : > { %14038 = vst [vmem:[#allocation80_spill] sm:$0xff] %v12008_v49  ;;  %v12010_v51 = vadd.f32 %v9032_v5, %v3762_v60 }
 0x276   : > { %v8952_v14 = vpop.f32.mrf.mxu0  ;;  %v12012_v36 = vpop.f32.mrf.mxu1 }
 0x277   : > { %14039 = vst [vmem:[#allocation81_spill] sm:$0xff] %v12010_v51  ;;  %14040 = vst [vmem:[#allocation82_spill] sm:$0xff] %v12012_v36  ;;  %v3764_v22 = vadd.f32 %v8952_v14, %v11778_v52  ;;  %v12027_v52 = vld [vmem:[%s13409_s3 + $0x30] sm:$0xff] }
 0x278   : > { %v12015_v20 = vpop.f32.mrf.mxu0  ;;  %v9038_v19 = vpop.f32.mrf.mxu1  ;;  %9293 = vmatprep.subr.mxu0 %v12027_v52 }
 0x279   : > { %v12017_v48 = vadd.f32 %v9035_v61, %v3764_v22  ;;  %v3370_v61 = vadd.f32 %v11794_v40, %v11800_v29  ;;  %v3372_v29 = vadd.f32 %v11806_v62, %v11812_v44 }
 0x27a   : > { %v8955_v25 = vpop.f32.mrf.mxu0  ;;  %v4069_v43 = vpop.f32.mrf.mxu1 }
 0x27b   : > { %v3766_v10 = vadd.f32 %v8955_v25, %v11790_v42 }
 0x27c   : > { %v3667_v0 = vpop.f32.mrf.mxu0  ;;  %v9041_v5 = vpop.f32.mrf.mxu1 }
 0x27d   : > { %v3765_v60 = vadd.f32 %v3667_v0, %v3368_v12  ;;  %v12022_v51 = vadd.f32 %v9038_v19, %v3766_v10  ;;  %v12038_v19 = vld [vmem:[%s13409_s3 + $0x10] sm:$0xff] }
 0x27e   : > { %v8958_v36 = vpop.f32.mrf.mxu0  ;;  %v4079_v49 = vpop.f32.mrf.mxu1  ;;  %14043 = vst [vmem:[#allocation85_spill] sm:$0xff] %v12038_v19  ;;  %9189 = vmatprep.subr.mxu1 %v12038_v19  ;;  %v14044_v10 = vld [vmem:[#allocation107_spill] sm:$0xff] }
 0x27f   : > { %14041 = vst [vmem:[#allocation83_spill] sm:$0xff] %v12022_v51  ;;  %v3768_v14 = vadd.f32 %v8958_v36, %v11802_v32  ;;  %v12032_v7 = vadd.f32 %v4069_v43, %v3765_v60  ;;  %v14045_v60 = vld [vmem:[#allocation74_spill] sm:$0xff] }
 0x280   : > { %v3677_v23 = vpop.f32.mrf.mxu0  ;;  %v9044_v42 = vpop.f32.mrf.mxu1 }
 0x281   : > { %14042 = vst [vmem:[#allocation84_spill] sm:$0xff] %v12032_v7  ;;  %v3767_v0 = vadd.f32 %v3677_v23, %v3370_v61  ;;  %v12040_v22 = vadd.f32 %v9041_v5, %v3768_v14  ;;  %v2573_v7 = vadd.f32 %v14045_v60, %v14044_v10  ;;  %v3374_v23 = vadd.f32 %v11818_v1, %v11825_v8 }
 0x282   : > { %v8961_v25 = vpop.f32.mrf.mxu0  ;;  %v4089_v40 = vpop.f32.mrf.mxu1 }
 0x283   : > { %v3770_v32 = vadd.f32 %v8961_v25, %v11814_v53  ;;  %v12046_v36 = vadd.f32 %v4079_v49, %v3767_v0  ;;  %v2975_v19 = vadd.f32 %v11835_v41, %v2573_v7 }
 0x284   : > { %v3687_v43 = vpop.f32.mrf.mxu0  ;;  %v9047_v12 = vpop.f32.mrf.mxu1 }
 0x285   : > { %v3769_v51 = vadd.f32 %v3687_v43, %v3372_v29  ;;  %v12050_v61 = vadd.f32 %v9044_v42, %v3770_v32  ;;  %v3376_v42 = vadd.f32 %v11831_v24, %v2975_v19 }
 0x286   : > { %v8964_v5 = vpop.f32.mrf.mxu0  ;;  %v4099_v14 = vpop.f32.mrf.mxu1 }
 0x287   : > { %v3772_v62 = vadd.f32 %v8964_v5, %v11827_v2  ;;  %v12056_v44 = vadd.f32 %v4089_v40, %v3769_v51  ;;  %v4686_v2 = vlaneseq  ;;  %v14046_v51 = vld [vmem:[#allocation108_spill] sm:$0xff]  ;;  %v14047_v5 = vld [vmem:[#allocation5_spill] sm:$0xff] }
 0x288   : > { %v3697_v53 = vpop.f32.mrf.mxu0  ;;  %v9050_v49 = vpop.f32.mrf.mxu1  ;;  %v3330_v40 = vadd.f32 %v14046_v51, %v11548_v26 }
 0x289   : > { %v3771_v0 = vadd.f32 %v3697_v53, %v3374_v23  ;;  %v12058_v25 = vadd.f32 %v9047_v12, %v3772_v62  ;;  %v12070_v12 = vld [vmem:[%s13408_s2] ss:$0 sm:$0xff]  ;;  %v12076_v23 = vshrl.u32 %v4686_v2, 7 }
 0x28a   : > { %v8967_v10 = vpop.f32.mrf.mxu0  ;;  %v3727_v24 = vadd.f32 %v11875_v16, %v3330_v40  ;;  %v14050_v40 = vld [vmem:[#allocation8_spill] sm:$0xff] }
 0x28b   : > { %v12061_v29 = vadd.f32 %v4099_v14, %v3771_v0  ;;  %v3332_v14 = vadd.f32 %v14047_v5, %v11566_v21  ;;  %v12081_v0 = vadd.s32 16, %v12076_v23  ;;  %vm4690_vm5 = vcmp.ge.s32.totalorder %v12076_v23, 1 }
 0x28c   : > { %v3707_v32 = vpop.f32.mrf.mxu0  ;;  %v4129_v10 = vadd.f32 %v11868_v38, %v3727_v24 }
 0x28d   : > { %v12063_v43 = vadd.f32 %v3707_v32, %v3376_v42  ;;  %v3729_v26 = vadd.f32 %v11888_v46, %v3332_v14  ;;  %v14048_v32 = vld [vmem:[#allocation7_spill] sm:$0xff]  ;;  %vm4701_vm6 = vcmp.le.s32.totalorder %v12081_v0, 16 }
 0x28e   : > { %v8970_v1 = vpop.f32.mrf.mxu0 }
 0x28f   : > { %v14049_v1 = vld [vmem:[#allocation6_spill] sm:$0xff]  ;;  %v4131_v46 = vadd.f32 %v11882_v13, %v3729_v26 }
 0x290   : > { %v3716_v8 = vpop.f32.mrf.mxu0  ;;  %v3334_v21 = vadd.f32 %v14049_v1, %v14048_v32 }
 0x292   : > { %v9058_v41 = vpop.f32.mrf.mxu0  ;;  %v3731_v2 = vadd.f32 %v11899_v58, %v3334_v21 }
 0x294   : > { %v4260_v7 = vpop.f32.mrf.mxu0 }
 0x296   : > { %v9061_v60 = vpop.f32.mrf.mxu0 }
 0x297   : > { %v4529_v19 = vadd.f32 %v9061_v60, %v11864_v37  ;;  %v3336_v60 = vadd.f32 %v14050_v40, %v11593_v55  ;;  %v4133_v55 = vadd.f32 %v11894_v4, %v3731_v2 }
 0x298   : > { %v4270_v62 = vpop.f32.mrf.mxu0 }
 0x299   : > { %v4587_v53 = vadd.f32 %v12070_v12, %v4529_v19  ;;  %v3733_v62 = vadd.f32 %v11907_v15, %v3336_v60 }
 0x29a   : > { %v9064_v49 = vpop.f32.mrf.mxu0 }
 0x29b   : > { %v4531_v16 = vadd.f32 %v9064_v49, %v11878_v11  ;;  %v4638_v42 = vmax.f32 %v4587_v53, 0.0 }
 0x29c   : > { %v4280_v37 = vpop.f32.mrf.mxu0 }
 0x29d   : > { %v4589_v8 = vadd.f32 %v12070_v12, %v4531_v16  ;;  %v4530_v41 = vadd.f32 %v4280_v37, %v4129_v10  ;;  %v12098_v24 = vsel %vm4690_vm5, %v4638_v42, 0.0  ;;  %v14051_v16 = vld [vmem:[#allocation9_spill] sm:$0xff] }
 0x29e   : > { %v9067_v7 = vpop.f32.mrf.mxu0  ;;  %v5635_v26 = vrot.slane %v12098_v24, 1  ;;  %v3338_v42 = vadd.f32 %v14051_v16, %v11605_v50  ;;  %v12126_v50 = vld [vmem:[%s13409_s3 + $0x40] sm:$0xff] }
 0x29f   : > { %v4640_v38 = vmax.f32 %v4589_v8, 0.0  ;;  %v4588_v11 = vadd.f32 %v12070_v12, %v4530_v41  ;;  %v4533_v51 = vadd.f32 %v9067_v7, %v11891_v6  ;;  %v4135_v41 = vadd.f32 %v11903_v59, %v3733_v62  ;;  %v14054_v16 = vld [vmem:[#allocation12_spill] sm:$0xff] }
 0x2a0   : > { %v4290_v19 = vpop.f32.mrf.mxu0 }
 0x2a1   : > { %v12102_v13 = vsel %vm4701_vm6, %v4640_v38, 0.0  ;;  %v12104_v5 = vmax.f32 %v4588_v11, 0.0  ;;  %v4591_v58 = vadd.f32 %v12070_v12, %v4533_v51  ;;  %v4532_v14 = vadd.f32 %v4290_v19, %v4131_v46  ;;  %v14052_v11 = vld [vmem:[#allocation10_spill] sm:$0xff] }
 0x2a2   : > { %v5638_v6 = vrot.slane %v12102_v13, 1  ;;  %v9070_v53 = vpop.f32.mrf.mxu0  ;;  %v3340_v51 = vadd.f32 %v14052_v11, %v11617_v3 }
 0x2a3   : > { %v5636_v49 = vrot.slane %v12104_v5, 1  ;;  %v4590_v10 = vadd.f32 %v12070_v12, %v4532_v14  ;;  %v12115_v37 = vmax.f32 %v4591_v58, 0.0  ;;  %v4535_v32 = vadd.f32 %v9070_v53, %v11901_v33 }
 0x2a4   : > { %v4300_v1 = vpop.f32.mrf.mxu0  ;;  %v3735_v33 = vadd.f32 %v11914_v54, %v3338_v42  ;;  %v14055_v42 = vld [vmem:[#allocation11_spill] sm:$0xff] }
 0x2a5   : > { %v4641_v15 = vmax.f32 %v4590_v10, 0.0  ;;  %v4534_v21 = vadd.f32 %v4300_v1, %v4133_v55  ;;  %v5637_v8 = vsel %vm537_vm2, %v5635_v26, %v5636_v49  ;;  %v5639_v4 = vsel %vm537_vm2, %v5636_v49, %v5638_v6 }
 0x2a6   : > { %v4593_v46 = vadd.f32 %v12070_v12, %v4535_v32  ;;  %v9073_v7 = vpop.f32.mrf.mxu0  ;;  %9243 = vmatprep.mubr.msk.f32.mxu0 %vm4826_vm4, %v5637_v8  ;;  %v4790_v19 = vrot.slane %v12115_v37, 1  ;;  %v4137_v3 = vadd.f32 %v11911_v39, %v3735_v33  ;;  %v3342_v32 = vadd.f32 %v14055_v42, %v14054_v16  ;;  %v14063_v42 = vld [vmem:[#allocation47_spill] sm:$0xff] }
 0x2a7   : > { %v12131_v2 = vsel %vm4690_vm5, %v4641_v15, 0.0  ;;  %v4592_v38 = vadd.f32 %v12070_v12, %v4534_v21  ;;  %v4537_v59 = vadd.f32 %v9073_v7, %v11909_v18  ;;  %9244 = vmatmul.mubr.msk.f32.vlgmr.msra.gmra.mxu0 %vm4826_vm4, %v5639_v4  ;;  %v3737_v18 = vadd.f32 %v11921_v45, %v3340_v51  ;;  %v14057_v21 = vld [vmem:[#allocation42_spill] sm:$0xff] }
 0x2a8   : > { %v4310_v40 = vpop.f32.mrf.mxu0  ;;  %v4789_v60 = vrot.slane %v12131_v2, 1  ;;  %9294 = vmatpush3.msra.mxu0 %v12027_v52  ;;  %v4644_v54 = vmax.f32 %v4593_v46, 0.0  ;;  %v3739_v7 = vadd.f32 %v11928_v35, %v3342_v32  ;;  %v14060_v51 = vld [vmem:[#allocation14_spill] sm:$0xff] }
 0x2a9   : > { %v4643_v58 = vmax.f32 %v4592_v38, 0.0  ;;  %v4595_v14 = vadd.f32 %v12070_v12, %v4537_v59  ;;  %v4536_v62 = vadd.f32 %v4310_v40, %v4135_v41  ;;  %9345 = vmatprep.subr.mxu0 %v12126_v50  ;;  %v4139_v8 = vadd.f32 %v14057_v21, %v3737_v18  ;;  %v14058_v38 = vld [vmem:[#allocation43_spill] sm:$0xff]  ;;  %v14061_v40 = vld [vmem:[#allocation13_spill] sm:$0xff] }
 0x2aa   : > { %v9076_v6 = vpop.f32.mrf.mxu0  ;;  %v12145_v53 = vsel %vm537_vm2, %v4789_v60, %v4790_v19  ;;  %v12161_v39 = vsel %vm4690_vm5, %v4644_v54, 0.0  ;;  %v3344_v60 = vadd.f32 %v14061_v40, %v14060_v51  ;;  %v14065_v21 = vld [vmem:[#allocation15_spill] sm:$0xff] }
 0x2ab   : > { %14053 = vst [vmem:[#allocation86_spill] sm:$0xff] %v12145_v53  ;;  %v12150_v55 = vsel %vm4701_vm6, %v4643_v58, 0.0  ;;  %v4646_v52 = vmax.f32 %v4595_v14, 0.0  ;;  %9142 = vmatprep.mubr.msk.f32.mxu1 %vm4826_vm4, %v12145_v53  ;;  %v4594_v49 = vadd.f32 %v12070_v12, %v4536_v62  ;;  %v4539_v45 = vadd.f32 %v9076_v6, %v11916_v31 }
 0x2ac   : > { %v4792_v26 = vrot.slane %v12150_v55, 1  ;;  %v4320_v10 = vpop.f32.mrf.mxu0  ;;  %v5640_v54 = vrot.slane %v12161_v39, 1 }
 0x2ad   : > { %v12165_v1 = vsel %vm4701_vm6, %v4646_v52, 0.0  ;;  %v4538_v15 = vadd.f32 %v4320_v10, %v4137_v3  ;;  %v12169_v41 = vmax.f32 %v4594_v49, 0.0  ;;  %v4597_v31 = vadd.f32 %v12070_v12, %v4539_v45  ;;  %v14062_v49 = vld [vmem:[#allocation57_spill] sm:$0xff] }
 0x2ae   : > { %14056 = vst [vmem:[#allocation87_spill] sm:$0xff] %v12165_v1  ;;  %v5643_v4 = vrot.slane %v12165_v1, 1  ;;  %v9079_v46 = vpop.f32.mrf.mxu0  ;;  %v12176_v11 = vsel %vm537_vm2, %v4790_v19, %v4792_v26  ;;  %v3741_v19 = vadd.f32 %v11935_v17, %v3344_v60  ;;  %v4141_v45 = vadd.f32 %v14062_v49, %v3739_v7 }
 0x2af   : > { %v4596_v33 = vadd.f32 %v12070_v12, %v4538_v15  ;;  %v4541_v59 = vadd.f32 %v9079_v46, %v14058_v38  ;;  %14059 = vst [vmem:[#allocation88_spill] sm:$0xff] %v12176_v11  ;;  %v5641_v58 = vrot.slane %v12169_v41, 1  ;;  %v12182_v14 = vmax.f32 %v4597_v31, 0.0  ;;  %9143 = vmatmul.mubr.msk.f32.gmra.mxu1 %vm4826_vm4, %v12176_v11  ;;  %v14064_v15 = vld [vmem:[#allocation16_spill] sm:$0xff] }
 0x2b0   : > { %v4330_v35 = vpop.f32.mrf.mxu0  ;;  %v3346_v17 = vadd.f32 %v14065_v21, %v14064_v15 }
 0x2b1   : > { %v4647_v62 = vmax.f32 %v4596_v33, 0.0  ;;  %v4599_v18 = vadd.f32 %v12070_v12, %v4541_v59  ;;  %v4540_v6 = vadd.f32 %v4330_v35, %v4139_v8  ;;  %v5642_v52 = vsel %vm537_vm2, %v5640_v54, %v5641_v58  ;;  %v14066_v59 = vld [vmem:[#allocation61_spill] sm:$0xff] }
 0x2b2   : > { %v9082_v3 = vpop.f32.mrf.mxu0  ;;  %v5644_v26 = vsel %vm537_vm2, %v5641_v58, %v5643_v4  ;;  %9246 = vmatprep.mubr.msk.f32.mxu0 %vm4826_vm4, %v5642_v52  ;;  %v4795_v46 = vrot.slane %v12182_v14, 1  ;;  %v4143_v51 = vadd.f32 %v14066_v59, %v3741_v19  ;;  %v3743_v40 = vadd.f32 %v11942_v57, %v3346_v17  ;;  %v14070_v19 = vld [vmem:[#allocation17_spill] sm:$0xff]  ;;  %v14074_v59 = vld [vmem:[#allocation20_spill] sm:$0xff] }
 0x2b3   : > { %v12193_v10 = vsel %vm4690_vm5, %v4647_v62, 0.0  ;;  %v4598_v16 = vadd.f32 %v12070_v12, %v4540_v6  ;;  %v4543_v32 = vadd.f32 %v9082_v3, %v14063_v42  ;;  %v4650_v8 = vmax.f32 %v4599_v18, 0.0  ;;  %9247 = vmatmul.mubr.msk.f32.gmra.mxu0 %vm4826_vm4, %v5644_v26  ;;  %v14068_v18 = vld [vmem:[#allocation48_spill] sm:$0xff]  ;;  %v14069_v3 = vld [vmem:[#allocation18_spill] sm:$0xff] }
 0x2b4   : > { %v4340_v31 = vpop.f32.mrf.mxu0  ;;  %v4794_v4 = vrot.slane %v12193_v10, 1  ;;  %v3348_v52 = vadd.f32 %v14070_v19, %v14069_v3  ;;  %v14077_v19 = vld [vmem:[#allocation65_spill] sm:$0xff] }
 0x2b5   : > { %v4649_v7 = vmax.f32 %v4598_v16, 0.0  ;;  %v4601_v33 = vadd.f32 %v12070_v12, %v4543_v32  ;;  %v4542_v38 = vadd.f32 %v4340_v31, %v4141_v45  ;;  %v12221_v57 = vsel %vm4690_vm5, %v4650_v8, 0.0  ;;  %v14073_v31 = vld [vmem:[#allocation62_spill] sm:$0xff] }
 0x2b6   : > { %v9085_v60 = vpop.f32.mrf.mxu0  ;;  %v12207_v54 = vsel %vm537_vm2, %v4794_v4, %v4795_v46  ;;  %v3745_v15 = vadd.f32 %v11949_v27, %v3348_v52  ;;  %v4145_v4 = vadd.f32 %v14073_v31, %v3743_v40  ;;  %v14078_v31 = vld [vmem:[#allocation53_spill] sm:$0xff] }
 0x2b7   : > { %14067 = vst [vmem:[#allocation89_spill] sm:$0xff] %v12207_v54  ;;  %v12211_v58 = vsel %vm4701_vm6, %v4649_v7, 0.0  ;;  %v4652_v35 = vmax.f32 %v4601_v33, 0.0  ;;  %v4600_v62 = vadd.f32 %v12070_v12, %v4542_v38  ;;  %v4545_v6 = vadd.f32 %v9085_v60, %v14068_v18  ;;  %9145 = vmatprep.mubr.msk.f32.mxu1 %vm4826_vm4, %v12207_v54 }
 0x2b8   : > { %v4797_v26 = vrot.slane %v12211_v58, 1  ;;  %v4350_v49 = vpop.f32.mrf.mxu0  ;;  %v5645_v7 = vrot.slane %v12221_v57, 1  ;;  %v4147_v52 = vadd.f32 %v14077_v19, %v3745_v15 }
 0x2b9   : > { %v12226_v45 = vsel %vm4701_vm6, %v4652_v35, 0.0  ;;  %v12228_v16 = vmax.f32 %v4600_v62, 0.0  ;;  %v4603_v42 = vadd.f32 %v12070_v12, %v4545_v6  ;;  %v4544_v32 = vadd.f32 %v4350_v49, %v4143_v51  ;;  %v14075_v51 = vld [vmem:[#allocation19_spill] sm:$0xff]  ;;  %v14076_v35 = vld [vmem:[#allocation52_spill] sm:$0xff] }
 0x2ba   : > { %14071 = vst [vmem:[#allocation90_spill] sm:$0xff] %v12226_v45  ;;  %v5648_v21 = vrot.slane %v12226_v45, 1  ;;  %v9088_v17 = vpop.f32.mrf.mxu0  ;;  %v12234_v8 = vsel %vm537_vm2, %v4795_v46, %v4797_v26  ;;  %v3350_v27 = vadd.f32 %v14075_v51, %v14074_v59  ;;  %v14117_v45 = vld [vmem:[#allocation79_spill] sm:$0xff] }
 0x2bb   : > { %14072 = vst [vmem:[#allocation91_spill] sm:$0xff] %v12234_v8  ;;  %v5646_v33 = vrot.slane %v12228_v16, 1  ;;  %v4602_v38 = vadd.f32 %v12070_v12, %v4544_v32  ;;  %9146 = vmatmul.mubr.msk.f32.gmra.mxu1 %vm4826_vm4, %v12234_v8  ;;  %v12244_v60 = vmax.f32 %v4603_v42, 0.0  ;;  %v4547_v62 = vadd.f32 %v9088_v17, %v14076_v35 }
 0x2bc   : > { %v4360_v46 = vpop.f32.mrf.mxu0  ;;  %v3747_v32 = vadd.f32 %v11956_v63, %v3350_v27 }
 0x2bd   : > { %v4653_v18 = vmax.f32 %v4602_v38, 0.0  ;;  %v4546_v6 = vadd.f32 %v4360_v46, %v4145_v4  ;;  %v5647_v40 = vsel %vm537_vm2, %v5645_v7, %v5646_v33  ;;  %v5649_v3 = vsel %vm537_vm2, %v5646_v33, %v5648_v21  ;;  %v14079_v21 = vld [vmem:[#allocation22_spill] sm:$0xff]  ;;  %v14080_v7 = vld [vmem:[#allocation21_spill] sm:$0xff] }
 0x2be   : > { %v4605_v26 = vadd.f32 %v12070_v12, %v4547_v62  ;;  %v9091_v49 = vpop.f32.mrf.mxu0  ;;  %9249 = vmatprep.mubr.msk.f32.mxu0 %vm4826_vm4, %v5647_v40  ;;  %v3352_v15 = vadd.f32 %v14080_v7, %v14079_v21  ;;  %v4800_v59 = vrot.slane %v12244_v60, 1 }
 0x2bf   : > { %v12255_v42 = vsel %vm4690_vm5, %v4653_v18, 0.0  ;;  %v4604_v17 = vadd.f32 %v12070_v12, %v4546_v6  ;;  %v4549_v4 = vadd.f32 %v9091_v49, %v14078_v31  ;;  %9250 = vmatmul.mubr.msk.f32.gmra.mxu0 %vm4826_vm4, %v5649_v3  ;;  %v14082_v6 = vld [vmem:[#allocation66_spill] sm:$0xff]  ;;  %v14084_v31 = vld [vmem:[#allocation23_spill] sm:$0xff] }
 0x2c0   : > { %v4370_v33 = vpop.f32.mrf.mxu0  ;;  %v4799_v38 = vrot.slane %v12255_v42, 1  ;;  %v4656_v51 = vmax.f32 %v4605_v26, 0.0  ;;  %v3749_v62 = vadd.f32 %v11963_v9, %v3352_v15  ;;  %v4149_v40 = vadd.f32 %v14082_v6, %v3747_v32  ;;  %v14086_v15 = vld [vmem:[#allocation68_spill] sm:$0xff] }
 0x2c1   : > { %v4655_v63 = vmax.f32 %v4604_v17, 0.0  ;;  %v4607_v27 = vadd.f32 %v12070_v12, %v4549_v4  ;;  %v4548_v35 = vadd.f32 %v4370_v33, %v4147_v52  ;;  %v14083_v17 = vld [vmem:[#allocation24_spill] sm:$0xff] }
 0x2c2   : > { %v9094_v46 = vpop.f32.mrf.mxu0  ;;  %v12267_v18 = vsel %vm537_vm2, %v4799_v38, %v4800_v59  ;;  %v3354_v4 = vadd.f32 %v14084_v31, %v14083_v17  ;;  %v12283_v32 = vsel %vm4690_vm5, %v4656_v51, 0.0  ;;  %v4151_v33 = vadd.f32 %v14086_v15, %v3749_v62  ;;  %v14088_v51 = vld [vmem:[#allocation56_spill] sm:$0xff] }
 0x2c3   : > { %14081 = vst [vmem:[#allocation92_spill] sm:$0xff] %v12267_v18  ;;  %v12272_v3 = vsel %vm4701_vm6, %v4655_v63, 0.0  ;;  %v4658_v19 = vmax.f32 %v4607_v27, 0.0  ;;  %9148 = vmatprep.mubr.msk.f32.mxu1 %vm4826_vm4, %v12267_v18  ;;  %v4606_v52 = vadd.f32 %v12070_v12, %v4548_v35  ;;  %v4551_v9 = vadd.f32 %v9094_v46, %v11958_v47  ;;  %v14087_v35 = vld [vmem:[#allocation70_spill] sm:$0xff]  ;;  %v14093_v18 = vld [vmem:[#allocation71_spill] sm:$0xff] }
 0x2c4   : > { %v4802_v26 = vrot.slane %v12272_v3, 1  ;;  %v4380_v49 = vpop.f32.mrf.mxu0  ;;  %v3751_v46 = vadd.f32 %v14087_v35, %v3354_v4  ;;  %v5650_v62 = vrot.slane %v12283_v32, 1 }
 0x2c5   : > { %v12287_v21 = vsel %vm4701_vm6, %v4658_v19, 0.0  ;;  %v4550_v7 = vadd.f32 %v4380_v49, %v4149_v40  ;;  %v12291_v63 = vmax.f32 %v4606_v52, 0.0  ;;  %v4609_v47 = vadd.f32 %v12070_v12, %v4551_v9  ;;  %v14090_v19 = vld [vmem:[#allocation26_spill] sm:$0xff]  ;;  %v14091_v40 = vld [vmem:[#allocation25_spill] sm:$0xff] }
 0x2c6   : > { %14085 = vst [vmem:[#allocation93_spill] sm:$0xff] %v12287_v21  ;;  %v5653_v38 = vrot.slane %v12287_v21, 1  ;;  %v9097_v27 = vpop.f32.mrf.mxu0  ;;  %v12298_v31 = vsel %vm537_vm2, %v4800_v59, %v4802_v26  ;;  %v3356_v49 = vadd.f32 %v14091_v40, %v14090_v19  ;;  %v14092_v19 = vld [vmem:[#allocation69_spill] sm:$0xff] }
 0x2c7   : > { %v4608_v6 = vadd.f32 %v12070_v12, %v4550_v7  ;;  %v4553_v17 = vadd.f32 %v9097_v27, %v14088_v51  ;;  %14089 = vst [vmem:[#allocation94_spill] sm:$0xff] %v12298_v31  ;;  %v5651_v52 = vrot.slane %v12291_v63, 1  ;;  %v12304_v15 = vmax.f32 %v4609_v47, 0.0  ;;  %9149 = vmatmul.mubr.msk.f32.gmra.mxu1 %vm4826_vm4, %v12298_v31 }
 0x2c8   : > { %v4390_v9 = vpop.f32.mrf.mxu0  ;;  %v3753_v59 = vadd.f32 %v11980_v56, %v3356_v49  ;;  %v4153_v40 = vadd.f32 %v14092_v19, %v3751_v46 }
 0x2c9   : > { %v4659_v4 = vmax.f32 %v4608_v6, 0.0  ;;  %v4611_v7 = vadd.f32 %v12070_v12, %v4553_v17  ;;  %v4552_v27 = vadd.f32 %v4390_v9, %v4151_v33  ;;  %v5652_v35 = vsel %vm537_vm2, %v5650_v62, %v5651_v52  ;;  %v14094_v33 = vld [vmem:[#allocation28_spill] sm:$0xff]  ;;  %v14095_v17 = vld [vmem:[#allocation27_spill] sm:$0xff] }
 0x2ca   : > { %v9100_v26 = vpop.f32.mrf.mxu0  ;;  %v5654_v51 = vsel %vm537_vm2, %v5651_v52, %v5653_v38  ;;  %9252 = vmatprep.mubr.msk.f32.mxu0 %vm4826_vm4, %v5652_v35  ;;  %v3358_v56 = vadd.f32 %v14095_v17, %v14094_v33  ;;  %v4805_v46 = vrot.slane %v12304_v15, 1  ;;  %v14098_v17 = vld [vmem:[#allocation73_spill] sm:$0xff] }
 0x2cb   : > { %v12315_v47 = vsel %vm4690_vm5, %v4659_v4, 0.0  ;;  %v4610_v31 = vadd.f32 %v12070_v12, %v4552_v27  ;;  %v4555_v6 = vadd.f32 %v9100_v26, %v14093_v18  ;;  %v4662_v49 = vmax.f32 %v4611_v7, 0.0  ;;  %9253 = vmatmul.mubr.msk.f32.gmra.mxu0 %vm4826_vm4, %v5654_v51  ;;  %v14096_v27 = vld [vmem:[#allocation72_spill] sm:$0xff] }
 0x2cc   : > { %v4400_v62 = vpop.f32.mrf.mxu0  ;;  %v4804_v38 = vrot.slane %v12315_v47, 1  ;;  %v4155_v19 = vadd.f32 %v14096_v27, %v3753_v59  ;;  %v3755_v18 = vadd.f32 %v11987_v34, %v3358_v56  ;;  %v14100_v59 = vld [vmem:[#allocation29_spill] sm:$0xff] }
 0x2cd   : > { %v4661_v52 = vmax.f32 %v4610_v31, 0.0  ;;  %v4613_v9 = vadd.f32 %v12070_v12, %v4555_v6  ;;  %v4554_v4 = vadd.f32 %v4400_v62, %v4153_v40  ;;  %v14099_v40 = vld [vmem:[#allocation30_spill] sm:$0xff]  ;;  %v12343_v34 = vsel %vm4690_vm5, %v4662_v49, 0.0 }
 0x2ce   : > { %v9103_v26 = vpop.f32.mrf.mxu0  ;;  %v12329_v35 = vsel %vm537_vm2, %v4804_v38, %v4805_v46  ;;  %v3360_v6 = vadd.f32 %v14100_v59, %v14099_v40  ;;  %v14103_v40 = vld [vmem:[#allocation58_spill] sm:$0xff] }
 0x2cf   : > { %14097 = vst [vmem:[#allocation95_spill] sm:$0xff] %v12329_v35  ;;  %v12333_v7 = vsel %vm4701_vm6, %v4661_v52, 0.0  ;;  %v4664_v51 = vmax.f32 %v4613_v9, 0.0  ;;  %v4612_v33 = vadd.f32 %v12070_v12, %v4554_v4  ;;  %v4557_v31 = vadd.f32 %v9103_v26, %v14098_v17  ;;  %9151 = vmatprep.mubr.msk.f32.mxu1 %vm4826_vm4, %v12329_v35 }
 0x2d0   : > { %v4807_v56 = vrot.slane %v12333_v7, 1  ;;  %v4410_v62 = vpop.f32.mrf.mxu0  ;;  %v3757_v27 = vadd.f32 %v11994_v30, %v3360_v6  ;;  %v4157_v59 = vadd.f32 %v14103_v40, %v3755_v18  ;;  %v5655_v35 = vrot.slane %v12343_v34, 1  ;;  %v14106_v6 = vld [vmem:[#allocation34_spill] sm:$0xff] }
 0x2d1   : > { %v12348_v38 = vsel %vm4701_vm6, %v4664_v51, 0.0  ;;  %v12350_v52 = vmax.f32 %v4612_v33, 0.0  ;;  %v4615_v9 = vadd.f32 %v12070_v12, %v4557_v31  ;;  %v4556_v4 = vadd.f32 %v4410_v62, %v4155_v19  ;;  %v14104_v19 = vld [vmem:[#allocation32_spill] sm:$0xff]  ;;  %v14105_v31 = vld [vmem:[#allocation31_spill] sm:$0xff]  ;;  %v14107_v62 = vld [vmem:[#allocation33_spill] sm:$0xff] }
 0x2d2   : > { %14101 = vst [vmem:[#allocation96_spill] sm:$0xff] %v12348_v38  ;;  %v5658_v26 = vrot.slane %v12348_v38, 1  ;;  %v9106_v17 = vpop.f32.mrf.mxu0  ;;  %v12356_v49 = vsel %vm537_vm2, %v4805_v46, %v4807_v56  ;;  %v3362_v30 = vadd.f32 %v14105_v31, %v14104_v19  ;;  %v3364_v8 = vadd.f32 %v14107_v62, %v14106_v6  ;;  %v14108_v46 = vld [vmem:[#allocation63_spill] sm:$0xff] }
 0x2d3   : > { %14102 = vst [vmem:[#allocation97_spill] sm:$0xff] %v12356_v49  ;;  %v5656_v51 = vrot.slane %v12350_v52, 1  ;;  %v4614_v33 = vadd.f32 %v12070_v12, %v4556_v4  ;;  %9152 = vmatmul.mubr.msk.f32.gmra.mxu1 %vm4826_vm4, %v12356_v49  ;;  %v12368_v54 = vmax.f32 %v4615_v9, 0.0  ;;  %v4559_v56 = vadd.f32 %v9106_v17, %v14108_v46  ;;  %v14109_v38 = vld [vmem:[#allocation75_spill] sm:$0xff]  ;;  %v14110_v9 = vld [vmem:[#allocation80_spill] sm:$0xff] }
 0x2d4   : > { %v4420_v18 = vpop.f32.mrf.mxu0  ;;  %v4159_v21 = vadd.f32 %v14109_v38, %v3757_v27  ;;  %v3759_v49 = vadd.f32 %v12001_v28, %v3362_v30  ;;  %v3761_v6 = vadd.f32 %v14110_v9, %v3364_v8 }
 0x2d5   : > { %v4665_v40 = vmax.f32 %v4614_v33, 0.0  ;;  %v4558_v11 = vadd.f32 %v4420_v18, %v4157_v59  ;;  %v5657_v53 = vsel %vm537_vm2, %v5655_v35, %v5656_v51  ;;  %v5659_v4 = vsel %vm537_vm2, %v5656_v51, %v5658_v26  ;;  %v14111_v35 = vld [vmem:[#allocation76_spill] sm:$0xff]  ;;  %v14113_v18 = vld [vmem:[#allocation39_spill] sm:$0xff] }
 0x2d6   : > { %v4617_v19 = vadd.f32 %v12070_v12, %v4559_v56  ;;  %v9109_v31 = vpop.f32.mrf.mxu0  ;;  %9255 = vmatprep.mubr.msk.f32.mxu0 %vm4826_vm4, %v5657_v53  ;;  %v4810_v27 = vrot.slane %v12368_v54, 1  ;;  %v5207_v53 = vrot.slane %v12368_v54, 2  ;;  %v4163_v1 = vadd.f32 %v14117_v45, %v3761_v6  ;;  %v14119_v6 = vld [vmem:[#allocation81_spill] sm:$0xff] }
 0x2d7   : > { %v12380_v17 = vsel %vm4690_vm5, %v4665_v40, 0.0  ;;  %v4616_v59 = vadd.f32 %v12070_v12, %v4558_v11  ;;  %v4561_v33 = vadd.f32 %v9109_v31, %v14111_v35  ;;  %9256 = vmatmul.mubr.msk.f32.gmra.mxu0 %vm4826_vm4, %v5659_v4  ;;  %v14114_v40 = vld [vmem:[#allocation38_spill] sm:$0xff]  ;;  %v14115_v31 = vld [vmem:[#allocation77_spill] sm:$0xff] }
 0x2d8   : > { %v4430_v38 = vpop.f32.mrf.mxu0  ;;  %v4809_v28 = vrot.slane %v12380_v17, 1  ;;  %v5206_v26 = vrot.slane %v12380_v17, 2  ;;  %v4668_v8 = vmax.f32 %v4617_v19, 0.0  ;;  %v3366_v4 = vadd.f32 %v14114_v40, %v14113_v18 }
 0x2d9   : > { %v4667_v51 = vmax.f32 %v4616_v59, 0.0  ;;  %v4619_v30 = vadd.f32 %v12070_v12, %v4561_v33  ;;  %v4560_v62 = vadd.f32 %v4430_v38, %v4159_v21  ;;  %v4161_v9 = vadd.f32 %v14115_v31, %v3759_v49  ;;  %v14116_v38 = vld [vmem:[#allocation78_spill] sm:$0xff] }
 0x2da   : > { %v9112_v46 = vpop.f32.mrf.mxu0  ;;  %v12391_v11 = vsel %vm537_vm2, %v4809_v28, %v4810_v27  ;;  %v12394_v56 = vsel %vm1554_vm3, %v5206_v26, %v5207_v53  ;;  %v12408_v18 = vsel %vm4690_vm5, %v4668_v8, 0.0 }
 0x2db   : > { %14112 = vst [vmem:[#allocation98_spill] sm:$0xff] %v12391_v11  ;;  %v4740_v35 = vsel %vm4701_vm6, %v4667_v51, 0.0  ;;  %v4670_v19 = vmax.f32 %v4619_v30, 0.0  ;;  %9154 = vmatprep.mubr.msk.f32.mxu1 %vm4826_vm4, %v12391_v11  ;;  %v4618_v33 = vadd.f32 %v12070_v12, %v4560_v62  ;;  %v4563_v28 = vadd.f32 %v9112_v46, %v14116_v38 }
 0x2dc   : > { %v4812_v21 = vrot.slane %v4740_v35, 1  ;;  %v5209_v59 = vrot.slane %v4740_v35, 2  ;;  %v4440_v26 = vpop.f32.mrf.mxu0  ;;  %v3763_v30 = vadd.f32 %v12015_v20, %v3366_v4 }
 0x2dd   : > { %v12412_v49 = vsel %vm4701_vm6, %v4670_v19, 0.0  ;;  %v4562_v51 = vadd.f32 %v4440_v26, %v4161_v9  ;;  %v12416_v31 = vmax.f32 %v4618_v33, 0.0  ;;  %v4621_v62 = vadd.f32 %v12070_v12, %v4563_v28 }
 0x2de   : > { %14118 = vst [vmem:[#allocation99_spill] sm:$0xff] %v12412_v49  ;;  %v5663_v40 = vrot.slane %v12412_v49, 1  ;;  %v9115_v46 = vpop.f32.mrf.mxu0  ;;  %v12422_v8 = vsel %vm537_vm2, %v4810_v27, %v4812_v21  ;;  %v12425_v19 = vsel %vm1554_vm3, %v5207_v53, %v5209_v59  ;;  %v5660_v9 = vrot.slane %v12408_v18, 1 }
 0x2df   : > { %v4620_v45 = vadd.f32 %v12070_v12, %v4562_v51  ;;  %v4565_v35 = vadd.f32 %v9115_v46, %v14119_v6  ;;  %14120 = vst [vmem:[#allocation100_spill] sm:$0xff] %v12422_v8  ;;  %v5661_v20 = vrot.slane %v12416_v31, 1  ;;  %v12429_v4 = vmax.f32 %v4621_v62, 0.0  ;;  %9155 = vmatmul.mubr.msk.f32.gmra.mxu1 %vm4826_vm4, %v12422_v8  ;;  %v14121_v51 = vld [vmem:[#allocation82_spill] sm:$0xff]  ;;  %v14123_v8 = vld [vmem:[#allocation83_spill] sm:$0xff] }
 0x2e0   : > { %v4450_v33 = vpop.f32.mrf.mxu0  ;;  %v4165_v27 = vadd.f32 %v14121_v51, %v3763_v30 }
 0x2e1   : > { %v4671_v38 = vmax.f32 %v4620_v45, 0.0  ;;  %v4623_v28 = vadd.f32 %v12070_v12, %v4565_v35  ;;  %v4564_v26 = vadd.f32 %v4450_v33, %v4163_v1  ;;  %v5662_v53 = vsel %vm537_vm2, %v5660_v9, %v5661_v20 }
 0x2e2   : > { %v9118_v21 = vpop.f32.mrf.mxu0  ;;  %v5664_v59 = vsel %vm537_vm2, %v5661_v20, %v5663_v40  ;;  %9258 = vmatprep.mubr.msk.f32.mxu0 %vm4826_vm4, %v5662_v53  ;;  %v4815_v45 = vrot.slane %v12429_v4, 1  ;;  %v5212_v9 = vrot.slane %v12429_v4, 2 }
 0x2e3   : > { %v12439_v46 = vsel %vm4690_vm5, %v4671_v38, 0.0  ;;  %v4622_v62 = vadd.f32 %v12070_v12, %v4564_v26  ;;  %v4567_v6 = vadd.f32 %v9118_v21, %v12017_v48  ;;  %v4674_v1 = vmax.f32 %v4623_v28, 0.0  ;;  %9259 = vmatmul.mubr.msk.f32.gmra.mxu0 %vm4826_vm4, %v5664_v59  ;;  %v12450_v26 = vpop.f32.mrf.mxu1 }
 0x2e4   : > { %v4460_v30 = vpop.f32.mrf.mxu0  ;;  %v4814_v35 = vrot.slane %v12439_v46, 1  ;;  %v5211_v40 = vrot.slane %v12439_v46, 2 }
 0x2e5   : > { %v4673_v20 = vmax.f32 %v4622_v62, 0.0  ;;  %v4625_v33 = vadd.f32 %v12070_v12, %v4567_v6  ;;  %v4566_v38 = vadd.f32 %v4460_v30, %v4165_v27  ;;  %v12466_v27 = vsel %vm4690_vm5, %v4674_v1, 0.0 }
 0x2e6   : > { %v9121_v48 = vpop.f32.mrf.mxu0  ;;  %v12453_v51 = vsel %vm537_vm2, %v4814_v35, %v4815_v45  ;;  %v12456_v28 = vsel %vm1554_vm3, %v5211_v40, %v5212_v9  ;;  %v9053_v40 = vpop.f32.mrf.mxu1  ;;  %v5665_v49 = vrot.slane %v12466_v27, 1 }
 0x2e7   : > { %14122 = vst [vmem:[#allocation101_spill] sm:$0xff] %v12453_v51  ;;  %v4746_v21 = vsel %vm4701_vm6, %v4673_v20, 0.0  ;;  %v4676_v53 = vmax.f32 %v4625_v33, 0.0  ;;  %v4624_v59 = vadd.f32 %v12070_v12, %v4566_v38  ;;  %v4569_v62 = vadd.f32 %v9121_v48, %v14123_v8  ;;  %9157 = vmatprep.mubr.msk.f32.mxu1 %vm4826_vm4, %v12453_v51  ;;  %v14125_v8 = vld [vmem:[#allocation84_spill] sm:$0xff] }
 0x2e8   : > { %v4817_v6 = vrot.slane %v4746_v21, 1  ;;  %v5214_v30 = vrot.slane %v4746_v21, 2  ;;  %v4470_v35 = vpop.f32.mrf.mxu0  ;;  %v4118_v40 = vpop.f32.mrf.mxu1 }
 0x2e9   : > { %v12470_v11 = vsel %vm4701_vm6, %v4676_v53, 0.0  ;;  %v12472_v20 = vmax.f32 %v4624_v59, 0.0  ;;  %v4627_v33 = vadd.f32 %v12070_v12, %v4569_v62  ;;  %v4568_v38 = vadd.f32 %v4470_v35, %v14125_v8 }
 0x2ea   : > { %14124 = vst [vmem:[#allocation102_spill] sm:$0xff] %v12470_v11  ;;  %v5668_v48 = vrot.slane %v12470_v11, 1  ;;  %v9124_v51 = vpop.f32.mrf.mxu0  ;;  %v12478_v1 = vsel %vm537_vm2, %v4815_v45, %v4817_v6  ;;  %v12481_v21 = vsel %vm1554_vm3, %v5212_v9, %v5214_v30 }
 0x2eb   : > { %v5666_v53 = vrot.slane %v12472_v20, 1  ;;  %v4626_v59 = vadd.f32 %v12070_v12, %v4568_v38  ;;  %9158 = vmatmul.mubr.msk.f32.gmra.mxu1 %vm4826_vm4, %v12478_v1  ;;  %v12488_v62 = vmax.f32 %v4627_v33, 0.0  ;;  %v4571_v35 = vadd.f32 %v9124_v51, %v12040_v22 }
 0x2ec   : > { %v4480_v8 = vpop.f32.mrf.mxu0 }
 0x2ed   : > { %v4677_v45 = vmax.f32 %v4626_v59, 0.0  ;;  %v4570_v6 = vadd.f32 %v4480_v8, %v12046_v36  ;;  %v5667_v9 = vsel %vm537_vm2, %v5665_v49, %v5666_v53  ;;  %v5669_v30 = vsel %vm537_vm2, %v5666_v53, %v5668_v48 }
 0x2ee   : > { %v4629_v40 = vadd.f32 %v12070_v12, %v4571_v35  ;;  %v9127_v11 = vpop.f32.mrf.mxu0  ;;  %9261 = vmatprep.mubr.msk.f32.mxu0 %vm4826_vm4, %v5667_v9  ;;  %v4820_v51 = vrot.slane %v12488_v62, 1  ;;  %v5217_v53 = vrot.slane %v12488_v62, 2 }
 0x2ef   : > { %v12498_v38 = vsel %vm4690_vm5, %v4677_v45, 0.0  ;;  %v4628_v33 = vadd.f32 %v12070_v12, %v4570_v6  ;;  %v4573_v22 = vadd.f32 %v9127_v11, %v12050_v61  ;;  %9262 = vmatmul.mubr.msk.f32.gmra.mxu0 %vm4826_vm4, %v5669_v30 }
 0x2f0   : > { %v4490_v36 = vpop.f32.mrf.mxu0  ;;  %v4819_v49 = vrot.slane %v12498_v38, 1  ;;  %v5216_v48 = vrot.slane %v12498_v38, 2  ;;  %v4680_v59 = vmax.f32 %v4629_v40, 0.0 }
 0x2f1   : > { %v4679_v35 = vmax.f32 %v4628_v33, 0.0  ;;  %v4631_v8 = vadd.f32 %v12070_v12, %v4573_v22  ;;  %v4572_v45 = vadd.f32 %v4490_v36, %v12056_v44 }
 0x2f2   : > { %v9130_v6 = vpop.f32.mrf.mxu0  ;;  %v12510_v61 = vsel %vm537_vm2, %v4819_v49, %v4820_v51  ;;  %v12513_v11 = vsel %vm1554_vm3, %v5216_v48, %v5217_v53  ;;  %v12523_v49 = vsel %vm4690_vm5, %v4680_v59, 0.0 }
 0x2f3   : > { %14126 = vst [vmem:[#allocation35_spill] sm:$0xff] %v12510_v61  ;;  %v4752_v9 = vsel %vm4701_vm6, %v4679_v35, 0.0  ;;  %v4682_v30 = vmax.f32 %v4631_v8, 0.0  ;;  %9160 = vmatprep.mubr.msk.f32.mxu1 %vm4826_vm4, %v12510_v61  ;;  %v4630_v22 = vadd.f32 %v12070_v12, %v4572_v45  ;;  %v4575_v44 = vadd.f32 %v9130_v6, %v12058_v25 }
 0x2f4   : > { %v4822_v40 = vrot.slane %v4752_v9, 1  ;;  %v5219_v33 = vrot.slane %v4752_v9, 2  ;;  %v4500_v36 = vpop.f32.mrf.mxu0  ;;  %v4175_v25 = vadd.f32 %v12450_v26, %v12063_v43  ;;  %v14127_v26 = vmov 0.0  }
 0x2f5   : > { %v12527_v48 = vsel %vm4701_vm6, %v4682_v30, 0.0  ;;  %v4574_v35 = vadd.f32 %v4500_v36, %v12061_v29  ;;  %v12531_v61 = vmax.f32 %v4630_v22, 0.0  ;;  %v4633_v9 = vadd.f32 %v12070_v12, %v4575_v44 }
 0x2f6   : > { %v5673_v8 = vrot.slane %v12527_v48, 1  ;;  %v9133_v45 = vpop.f32.mrf.mxu0  ;;  %v12538_v59 = vsel %vm537_vm2, %v4820_v51, %v4822_v40  ;;  %v12541_v30 = vsel %vm1554_vm3, %v5217_v53, %v5219_v33  ;;  %v5670_v29 = vrot.slane %v12523_v49, 1 }
 0x2f7   : > { %v4632_v6 = vadd.f32 %v12070_v12, %v4574_v35  ;;  %v5671_v36 = vrot.slane %v12531_v61, 1  ;;  %v12545_v22 = vmax.f32 %v4633_v9, 0.0  ;;  %9161 = vmatmul.mubr.msk.f32.gmra.mxu1 %vm4826_vm4, %v12538_v59  ;;  %v7620_v9 = vld [vmem:[%s13409_s3 + $0x18] sm:$0xff] }
 0x2f8   : > { %v4510_v44 = vpop.f32.mrf.mxu0  ;;  %9165 = vmatprep.mubr.f32.mxu1 %v14127_v26 }
 0x2f9   : > { %v4683_v45 = vmax.f32 %v4632_v6, 0.0  ;;  %v4576_v43 = vadd.f32 %v4510_v44, %v4175_v25  ;;  %v5672_v51 = vsel %vm537_vm2, %v5670_v29, %v5671_v36  ;;  %v5674_v40 = vsel %vm537_vm2, %v5671_v36, %v5673_v8  ;;  %v14128_v44 = vld [vmem:[#allocation85_spill] sm:$0xff] }
 0x2fa   : > { %v9136_v53 = vpop.f32.mrf.mxu0  ;;  %9264 = vmatprep.mubr.msk.f32.mxu0 %vm4826_vm4, %v5672_v51  ;;  %v6276_v25 = vrot.slane %v12545_v22, 1  ;;  %v6448_v6 = vrot.slane %v12545_v22, 2 }
 0x2fb   : > { %v4634_v33 = vadd.f32 %v12070_v12, %v4576_v43  ;;  %v4756_v35 = vsel %vm4690_vm5, %v4683_v45, 0.0  ;;  %9166 = vmatmul.mubr.f32.vlgmr.msra.gmra.mxu1 %v14127_v26  ;;  %9265 = vmatmul.mubr.msk.f32.gmra.mxu0 %vm4826_vm4, %v5674_v40 }
 0x2fc   : > { %v6275_v8 = vrot.slane %v4756_v35, 1  ;;  %v6447_v29 = vrot.slane %v4756_v35, 2  ;;  %v4519_v12 = vpop.f32.mrf.mxu0  ;;  %9190 = vmatpush3.msra.mxu1 %v14128_v44  ;;  %9168 = vmatprep.mubr.msk.f32.mxu1 %vm4826_vm4, %v12131_v2  ;;  %v5886_v44 = vrot.slane %v12291_v63, 2 }
 0x2fd   : > { %v4685_v36 = vmax.f32 %v4634_v33, 0.0  ;;  %9295 = vmatprep.mubr.msk.f32.mxu0 %vm4826_vm4, %v12131_v2  ;;  %9215 = vmatprep.subr.mxu1 %v7620_v9  ;;  %v5881_v12 = vrot.slane %v12228_v16, 2 }
 0x2fe   : > { %v12569_v45 = vsel %vm1554_vm3, %v6447_v29, %v6448_v6  ;;  %v12572_v43 = vsel %vm537_vm2, %v6275_v8, %v6276_v25 }
 0x2ff   : > { %v4758_v51 = vsel %vm4701_vm6, %v4685_v36, 0.0  ;;  %9169 = vmatmul.mubr.msk.f32.gmra.mxu1 %vm4826_vm4, %v12115_v37  ;;  %9296 = vmatmul.mubr.msk.f32.vlgmr.msra.gmra.mxu0 %vm4826_vm4, %v12115_v37 }
 0x300   : > { %v6278_v40 = vrot.slane %v4758_v51, 1  ;;  %v6450_v53 = vrot.slane %v4758_v51, 2  ;;  %9171 = vmatprep.mubr.msk.f32.mxu1 %vm4826_vm4, %v12193_v10  ;;  %9298 = vmatprep.mubr.msk.f32.mxu0 %vm4826_vm4, %v12193_v10  ;;  %v14131_v51 = vld [vmem:[#allocation93_spill] sm:$0xff] }
 0x301   : > { %9346 = vmatpush3.msra.mxu0 %v12126_v50  ;;  %v5181_v50 = vrot.slane %v14127_v26, 2 }
 0x302   : > { %v12586_v33 = vsel %vm1554_vm3, %v6448_v6, %v6450_v53  ;;  %v12589_v8 = vsel %vm537_vm2, %v6276_v25, %v6278_v40  ;;  %9389 = vmatprep.subr.mxu0 %v14127_v26  ;;  %v5201_v25 = vrot.slane %v12315_v47, 2  ;;  %v5888_v40 = vrot.slane %v14131_v51, 2 }
 0x303   : > { %9172 = vmatmul.mubr.msk.f32.gmra.mxu1 %vm4826_vm4, %v12182_v14  ;;  %9299 = vmatmul.mubr.msk.f32.gmra.mxu0 %vm4826_vm4, %v12182_v14  ;;  %v5891_v53 = vrot.slane %v12350_v52, 2 }
 0x304   : > { %9174 = vmatprep.mubr.msk.f32.mxu1 %vm4826_vm4, %v12255_v42  ;;  %9301 = vmatprep.mubr.msk.f32.mxu0 %vm4826_vm4, %v12255_v42 }
 0x307   : > { %9175 = vmatmul.mubr.msk.f32.gmra.mxu1 %vm4826_vm4, %v12244_v60  ;;  %9302 = vmatmul.mubr.msk.f32.gmra.mxu0 %vm4826_vm4, %v12244_v60 }
 0x308   : > { %9177 = vmatprep.mubr.msk.f32.mxu1 %vm4826_vm4, %v12315_v47  ;;  %9304 = vmatprep.mubr.msk.f32.mxu0 %vm4826_vm4, %v12315_v47 }
 0x30b   : > { %9178 = vmatmul.mubr.msk.f32.gmra.mxu1 %vm4826_vm4, %v12304_v15  ;;  %9305 = vmatmul.mubr.msk.f32.gmra.mxu0 %vm4826_vm4, %v12304_v15 }
 0x30c   : > { %9180 = vmatprep.mubr.msk.f32.mxu1 %vm4826_vm4, %v12380_v17  ;;  %9307 = vmatprep.mubr.msk.f32.mxu0 %vm4826_vm4, %v12380_v17  ;;  %v5187_v17 = vrot.slane %v12115_v37, 2  ;;  %v5192_v37 = vrot.slane %v12182_v14, 2  ;;  %v5199_v14 = vrot.slane %v12272_v3, 2 }
 0x30f   : > { %9181 = vmatmul.mubr.msk.f32.gmra.mxu1 %vm4826_vm4, %v12368_v54  ;;  %9308 = vmatmul.mubr.msk.f32.gmra.mxu0 %vm4826_vm4, %v12368_v54  ;;  %v5186_v54 = vrot.slane %v12131_v2, 2  ;;  %v5191_v2 = vrot.slane %v12193_v10, 2  ;;  %v5196_v10 = vrot.slane %v12255_v42, 2  ;;  %v5202_v42 = vrot.slane %v12304_v15, 2  ;;  %v7688_v15 = vld [vmem:[%s13409_s3 + $0x38] sm:$0xff] }
 0x310   : > { %9183 = vmatprep.mubr.msk.f32.mxu1 %vm4826_vm4, %v12439_v46  ;;  %9310 = vmatprep.mubr.msk.f32.mxu0 %vm4826_vm4, %v12439_v46  ;;  %v7654_v46 = vld [vmem:[%s13409_s3 + $0x28] sm:$0xff] }
 0x311   : > { %v5203_v6 = vsel %vm1554_vm3, %v5201_v25, %v5202_v42  ;;  %v14139_v25 = vld [vmem:[#allocation92_spill] sm:$0xff] }
 0x313   : > { %9184 = vmatmul.mubr.msk.f32.gmra.mxu1 %vm4826_vm4, %v12429_v4  ;;  %9311 = vmatmul.mubr.msk.f32.gmra.mxu0 %vm4826_vm4, %v12429_v4  ;;  %v5189_v4 = vrot.slane %v12150_v55, 2  ;;  %v5194_v55 = vrot.slane %v12211_v58, 2 }
 0x314   : > { %9186 = vmatprep.mubr.msk.f32.mxu1 %vm4826_vm4, %v12498_v38  ;;  %9313 = vmatprep.mubr.msk.f32.mxu0 %vm4826_vm4, %v12498_v38 }
 0x315   : > { %v5190_v38 = vsel %vm1554_vm3, %v5187_v17, %v5189_v4  ;;  %v5195_v58 = vsel %vm1554_vm3, %v5192_v37, %v5194_v55  ;;  %v14134_v55 = vld [vmem:[#allocation102_spill] sm:$0xff] }
 0x317   : > { %9187 = vmatmul.mubr.msk.f32.gmra.mxu1 %vm4826_vm4, %v12488_v62  ;;  %9314 = vmatmul.mubr.msk.f32.gmra.mxu0 %vm4826_vm4, %v12488_v62  ;;  %v5188_v62 = vsel %vm1554_vm3, %v5186_v54, %v5187_v17  ;;  %v5889_v17 = vsel %vm1554_vm3, %v5886_v44, %v5888_v40 }
 0x318   : > { %9316 = vmatprep.mubr.msk.f32.mxu0 %vm4826_vm4, %v4756_v35  ;;  %9191 = vmatprep.mubr.msk.f32.mxu1 %vm4826_vm4, %v5181_v50  ;;  %v5197_v35 = vrot.slane %v12244_v60, 2  ;;  %v5204_v60 = vrot.slane %v12333_v7, 2  ;;  %v5871_v7 = vrot.slane %v12104_v5, 2 }
 0x31a   : > { %v5200_v3 = vsel %vm1554_vm3, %v5197_v35, %v5199_v14  ;;  %v5205_v47 = vsel %vm1554_vm3, %v5202_v42, %v5204_v60  ;;  %v14140_v42 = vld [vmem:[#allocation94_spill] sm:$0xff]  ;;  %v14141_v60 = vld [vmem:[#allocation95_spill] sm:$0xff] }
 0x31b   : > { %9192 = vmatmul.mubr.msk.f32.vlgmr.msra.gmra.mxu1 %vm4826_vm4, %v5181_v50  ;;  %9317 = vmatmul.mubr.msk.f32.gmra.mxu0 %vm4826_vm4, %v12545_v22  ;;  %v5193_v22 = vsel %vm1554_vm3, %v5191_v2, %v5192_v37  ;;  %v14132_v50 = vld [vmem:[#allocation96_spill] sm:$0xff] }
 0x31c   : > { %9216 = vmatpush3.msra.mxu1 %v7620_v9  ;;  %9194 = vmatprep.mubr.msk.f32.mxu1 %vm4826_vm4, %v5188_v62  ;;  %v5198_v9 = vsel %vm1554_vm3, %v5196_v10, %v5197_v35  ;;  %v5893_v54 = vrot.slane %v14132_v50, 2  ;;  %v5908_v35 = vrot.slane %v12527_v48, 2  ;;  %v14138_v48 = vld [vmem:[#allocation91_spill] sm:$0xff] }
 0x31d   : > { %9347 = vmatprep.mubr.msk.f32.mxu0 %vm4826_vm4, %v5188_v62  ;;  %9267 = vmatprep.subr.mxu1 %v7654_v46 }
 0x31e   : > { %v5894_v2 = vsel %vm1554_vm3, %v5891_v53, %v5893_v54 }
 0x31f   : > { %9195 = vmatmul.mubr.msk.f32.gmra.mxu1 %vm4826_vm4, %v5190_v38  ;;  %9348 = vmatmul.mubr.msk.f32.vlgmr.msra.gmra.mxu0 %vm4826_vm4, %v5190_v38  ;;  %v5903_v38 = vrot.slane %v14134_v55, 2 }
 0x320   : > { %9197 = vmatprep.mubr.msk.f32.mxu1 %vm4826_vm4, %v5193_v22  ;;  %9350 = vmatprep.mubr.msk.f32.mxu0 %vm4826_vm4, %v5193_v22 }
 0x323   : > { %9198 = vmatmul.mubr.msk.f32.gmra.mxu1 %vm4826_vm4, %v5195_v58  ;;  %9351 = vmatmul.mubr.msk.f32.gmra.mxu0 %vm4826_vm4, %v5195_v58  ;;  %v14135_v58 = vld [vmem:[#allocation86_spill] sm:$0xff] }
 0x324   : > { %9200 = vmatprep.mubr.msk.f32.mxu1 %vm4826_vm4, %v5198_v9  ;;  %9353 = vmatprep.mubr.msk.f32.mxu0 %vm4826_vm4, %v5198_v9  ;;  %v14136_v9 = vld [vmem:[#allocation88_spill] sm:$0xff] }
 0x327   : > { %9201 = vmatmul.mubr.msk.f32.gmra.mxu1 %vm4826_vm4, %v5200_v3  ;;  %9354 = vmatmul.mubr.msk.f32.gmra.mxu0 %vm4826_vm4, %v5200_v3  ;;  %v14142_v3 = vld [vmem:[#allocation97_spill] sm:$0xff] }
 0x328   : > { %9203 = vmatprep.mubr.msk.f32.mxu1 %vm4826_vm4, %v5203_v6  ;;  %9356 = vmatprep.mubr.msk.f32.mxu0 %vm4826_vm4, %v5203_v6  ;;  %v14143_v6 = vld [vmem:[#allocation98_spill] sm:$0xff] }
 0x32b   : > { %9204 = vmatmul.mubr.msk.f32.gmra.mxu1 %vm4826_vm4, %v5205_v47  ;;  %9357 = vmatmul.mubr.msk.f32.gmra.mxu0 %vm4826_vm4, %v5205_v47  ;;  %v12819_v47 = vpop.f32.mrf.mxu1 }
 0x32c   : > { %9206 = vmatprep.mubr.msk.f32.mxu1 %vm4826_vm4, %v12394_v56  ;;  %9359 = vmatprep.mubr.msk.f32.mxu0 %vm4826_vm4, %v12394_v56  ;;  %v5870_v56 = vrot.slane %v12098_v24, 2 }
 0x32f   : > { %9207 = vmatmul.mubr.msk.f32.gmra.mxu1 %vm4826_vm4, %v12425_v19  ;;  %9360 = vmatmul.mubr.msk.f32.gmra.mxu0 %vm4826_vm4, %v12425_v19  ;;  %v5873_v19 = vrot.slane %v12102_v13, 2  ;;  %v5880_v13 = vrot.slane %v12221_v57, 2 }
 0x330   : > { %9209 = vmatprep.mubr.msk.f32.mxu1 %vm4826_vm4, %v12456_v28  ;;  %9362 = vmatprep.mubr.msk.f32.mxu0 %vm4826_vm4, %v12456_v28  ;;  %v5876_v28 = vrot.slane %v12169_v41, 2 }
 0x331   : > { %v5874_v29 = vsel %vm1554_vm3, %v5871_v7, %v5873_v19  ;;  %v14146_v19 = vld [vmem:[#allocation35_spill] sm:$0xff] }
 0x333   : > { %9210 = vmatmul.mubr.msk.f32.gmra.mxu1 %vm4826_vm4, %v12481_v21  ;;  %9363 = vmatmul.mubr.msk.f32.gmra.mxu0 %vm4826_vm4, %v12481_v21  ;;  %v5872_v21 = vsel %vm1554_vm3, %v5870_v56, %v5871_v7  ;;  %v14145_v7 = vld [vmem:[#allocation101_spill] sm:$0xff]  ;;  %v12825_v56 = vpop.f32.mrf.mxu1 }
 0x334   : > { %9212 = vmatprep.mubr.msk.f32.mxu1 %vm4826_vm4, %v12513_v11  ;;  %9365 = vmatprep.mubr.msk.f32.mxu0 %vm4826_vm4, %v12513_v11  ;;  %v14129_v11 = vld [vmem:[#allocation87_spill] sm:$0xff] }
 0x337   : > { %9213 = vmatmul.mubr.msk.f32.gmra.mxu1 %vm4826_vm4, %v12541_v30  ;;  %9366 = vmatmul.mubr.msk.f32.gmra.mxu0 %vm4826_vm4, %v12541_v30  ;;  %v5878_v30 = vrot.slane %v14129_v11, 2 }
 0x338   : > { %9217 = vmatprep.mubr.msk.f32.mxu1 %vm4826_vm4, %v12098_v24  ;;  %9368 = vmatprep.mubr.msk.f32.mxu0 %vm4826_vm4, %v12569_v45  ;;  %v5885_v45 = vrot.slane %v12283_v32, 2 }
 0x33b   : > { %9218 = vmatmul.mubr.msk.f32.vlgmr.msra.gmra.mxu1 %vm4826_vm4, %v12104_v5  ;;  %9369 = vmatmul.mubr.msk.f32.gmra.mxu0 %vm4826_vm4, %v12586_v33  ;;  %v5875_v5 = vrot.slane %v12161_v39, 2  ;;  %v5887_v33 = vsel %vm1554_vm3, %v5885_v45, %v5886_v44 }
 0x33c   : > { %9268 = vmatpush3.msra.mxu1 %v7654_v46  ;;  %9220 = vmatprep.mubr.msk.f32.mxu1 %vm4826_vm4, %v12161_v39  ;;  %v5879_v39 = vsel %vm1554_vm3, %v5876_v28, %v5878_v30  ;;  %v14133_v46 = vld [vmem:[#allocation99_spill] sm:$0xff] }
 0x33d   : > { %9319 = vmatprep.subr.mxu1 %v7688_v15  ;;  %v5877_v24 = vsel %vm1554_vm3, %v5875_v5, %v5876_v28  ;;  %v5898_v62 = vrot.slane %v14133_v46, 2  ;;  %9397 = vmatprep.mubr.msk.f32.mxu0 %vm9556_vm7, %v14127_v26 }
 0x33f   : > { %9221 = vmatmul.mubr.msk.f32.gmra.mxu1 %vm4826_vm4, %v12169_v41  ;;  %v14130_v41 = vld [vmem:[#allocation90_spill] sm:$0xff] }
 0x340   : > { %9223 = vmatprep.mubr.msk.f32.mxu1 %vm4826_vm4, %v12221_v57  ;;  %v5883_v36 = vrot.slane %v14130_v41, 2 }
 0x342   : > { %v5884_v57 = vsel %vm1554_vm3, %v5881_v12, %v5883_v36 }
 0x343   : > { %9224 = vmatmul.mubr.msk.f32.gmra.mxu1 %vm4826_vm4, %v12228_v16  ;;  %v5882_v16 = vsel %vm1554_vm3, %v5880_v13, %v5881_v12 }
 0x344   : > { %9226 = vmatprep.mubr.msk.f32.mxu1 %vm4826_vm4, %v12283_v32  ;;  %v5896_v32 = vrot.slane %v12416_v31, 2 }
 0x346   : > { %v5899_v22 = vsel %vm1554_vm3, %v5896_v32, %v5898_v62 }
 0x347   : > { %9227 = vmatmul.mubr.msk.f32.gmra.mxu1 %vm4826_vm4, %v12291_v63  ;;  %v5890_v63 = vrot.slane %v12343_v34, 2 }
 0x348   : > { %9229 = vmatprep.mubr.msk.f32.mxu1 %vm4826_vm4, %v12343_v34  ;;  %v5901_v34 = vrot.slane %v12472_v20, 2 }
 0x349   : > { %v5892_v4 = vsel %vm1554_vm3, %v5890_v63, %v5891_v53 }
 0x34a   : > { %v5904_v14 = vsel %vm1554_vm3, %v5901_v34, %v5903_v38 }
 0x34b   : > { %9230 = vmatmul.mubr.msk.f32.gmra.mxu1 %vm4826_vm4, %v12350_v52  ;;  %v5895_v52 = vrot.slane %v12408_v18, 2 }
 0x34c   : > { %9232 = vmatprep.mubr.msk.f32.mxu1 %vm4826_vm4, %v12408_v18  ;;  %v5906_v18 = vrot.slane %v12531_v61, 2 }
 0x34d   : > { %v5897_v37 = vsel %vm1554_vm3, %v5895_v52, %v5896_v32 }
 0x34f   : > { %9233 = vmatmul.mubr.msk.f32.gmra.mxu1 %vm4826_vm4, %v12416_v31  ;;  %v5900_v31 = vrot.slane %v12466_v27, 2 }
 0x350   : > { %9235 = vmatprep.mubr.msk.f32.mxu1 %vm4826_vm4, %v12466_v27 }
 0x351   : > { %v5902_v10 = vsel %vm1554_vm3, %v5900_v31, %v5901_v34 }
 0x353   : > { %9236 = vmatmul.mubr.msk.f32.gmra.mxu1 %vm4826_vm4, %v12472_v20  ;;  %v5905_v20 = vrot.slane %v12523_v49, 2 }
 0x354   : > { %9238 = vmatprep.mubr.msk.f32.mxu1 %vm4826_vm4, %v12523_v49  ;;  %v14137_v49 = vld [vmem:[#allocation89_spill] sm:$0xff] }
 0x355   : > { %v5907_v27 = vsel %vm1554_vm3, %v5905_v20, %v5906_v18 }
 0x357   : > { %9239 = vmatmul.mubr.msk.f32.gmra.mxu1 %vm4826_vm4, %v12531_v61  ;;  %v5909_v61 = vsel %vm1554_vm3, %v5906_v18, %v5908_v35 }
 0x358   : > { %9269 = vmatprep.mubr.msk.f32.mxu1 %vm4826_vm4, %v5872_v21 }
 0x35b   : > { %9270 = vmatmul.mubr.msk.f32.vlgmr.msra.gmra.mxu1 %vm4826_vm4, %v5874_v29 }
 0x35c   : > { %9320 = vmatpush3.msra.mxu1 %v7688_v15  ;;  %9272 = vmatprep.mubr.msk.f32.mxu1 %vm4826_vm4, %v5877_v24  ;;  %v14144_v15 = vld [vmem:[#allocation100_spill] sm:$0xff] }
 0x35d   : > { %9371 = vmatprep.subr.mxu1 %v14127_v26 }
 0x35f   : > { %9273 = vmatmul.mubr.msk.f32.gmra.mxu1 %vm4826_vm4, %v5879_v39 }
 0x360   : > { %9275 = vmatprep.mubr.msk.f32.mxu1 %vm4826_vm4, %v5882_v16 }
 0x363   : > { %9276 = vmatmul.mubr.msk.f32.gmra.mxu1 %vm4826_vm4, %v5884_v57 }
 0x364   : > { %9278 = vmatprep.mubr.msk.f32.mxu1 %vm4826_vm4, %v5887_v33 }
 0x367   : > { %9279 = vmatmul.mubr.msk.f32.gmra.mxu1 %vm4826_vm4, %v5889_v17  ;;  %v12843_v13 = vpop.f32.mrf.mxu0 }
 0x368   : > { %9281 = vmatprep.mubr.msk.f32.mxu1 %vm4826_vm4, %v5892_v4 }
 0x36b   : > { %9282 = vmatmul.mubr.msk.f32.gmra.mxu1 %vm4826_vm4, %v5894_v2 }
 0x36c   : > { %9284 = vmatprep.mubr.msk.f32.mxu1 %vm4826_vm4, %v5897_v37 }
 0x36f   : > { %9285 = vmatmul.mubr.msk.f32.gmra.mxu1 %vm4826_vm4, %v5899_v22  ;;  %v12831_v28 = vpop.f32.mrf.mxu1 }
 0x370   : > { %9287 = vmatprep.mubr.msk.f32.mxu1 %vm4826_vm4, %v5902_v10 }
 0x371   : > { %v12837_v21 = vpop.f32.mrf.mxu1 }
 0x373   : > { %9288 = vmatmul.mubr.msk.f32.gmra.mxu1 %vm4826_vm4, %v5904_v14 }
 0x374   : > { %9290 = vmatprep.mubr.msk.f32.mxu1 %vm4826_vm4, %v5907_v27 }
 0x377   : > { %9291 = vmatmul.mubr.msk.f32.gmra.mxu1 %vm4826_vm4, %v5909_v61 }
 0x378   : > { %9321 = vmatprep.mubr.msk.f32.mxu1 %vm4826_vm4, %v14135_v58 }
 0x37b   : > { %9322 = vmatmul.mubr.msk.f32.vlgmr.msra.gmra.mxu1 %vm4826_vm4, %v14136_v9  ;;  %v12841_v5 = vpop.f32.mrf.mxu1 }
 0x37c   : > { %9324 = vmatprep.mubr.msk.f32.mxu1 %vm4826_vm4, %v14137_v49 }
 0x37d   : > { %v4945_v11 = vpop.f32.mrf.mxu1 }
 0x37f   : > { %9325 = vmatmul.mubr.msk.f32.gmra.mxu1 %vm4826_vm4, %v14138_v48 }
 0x380   : > { %9327 = vmatprep.mubr.msk.f32.mxu1 %vm4826_vm4, %v14139_v25 }
 0x383   : > { %9328 = vmatmul.mubr.msk.f32.gmra.mxu1 %vm4826_vm4, %v14140_v42 }
 0x384   : > { %9330 = vmatprep.mubr.msk.f32.mxu1 %vm4826_vm4, %v14141_v60 }
 0x387   : > { %9331 = vmatmul.mubr.msk.f32.gmra.mxu1 %vm4826_vm4, %v14142_v3 }
 0x388   : > { %9333 = vmatprep.mubr.msk.f32.mxu1 %vm4826_vm4, %v14143_v6 }
 0x38b   : > { %9334 = vmatmul.mubr.msk.f32.gmra.mxu1 %vm4826_vm4, %v14144_v15 }
 0x38c   : > { %9336 = vmatprep.mubr.msk.f32.mxu1 %vm4826_vm4, %v14145_v7 }
 0x38f   : > { %9337 = vmatmul.mubr.msk.f32.gmra.mxu1 %vm4826_vm4, %v12478_v1  ;;  %v9150_v1 = vpop.f32.mrf.mxu1 }
 0x390   : > { %9339 = vmatprep.mubr.msk.f32.mxu1 %vm4826_vm4, %v14146_v19 }
 0x391   : > { %v4955_v30 = vpop.f32.mrf.mxu1 }
 0x393   : > { %9340 = vmatmul.mubr.msk.f32.gmra.mxu1 %vm4826_vm4, %v12538_v59  ;;  %v9153_v29 = vpop.f32.mrf.mxu1  ;;  %v12845_v59 = vpop.f32.mrf.mxu0 }
 0x394   : > { %9342 = vmatprep.mubr.msk.f32.mxu1 %vm4826_vm4, %v12572_v43 }
 0x395   : > { %v4965_v12 = vpop.f32.mrf.mxu1  ;;  %v12847_v43 = vpop.f32.mrf.mxu0 }
 0x397   : > { %9343 = vmatmul.mubr.msk.f32.gmra.mxu1 %vm4826_vm4, %v12589_v8  ;;  %v12849_v44 = vpop.f32.mrf.mxu0 }
 0x398   : > { %9375 = vmatprep.mubr.msk.f32.mxu1 %vm9556_vm7, %v14127_v26 }
 0x399   : > { %v12851_v16 = vpop.f32.mrf.mxu0 }
 0x39b   : > { %v12853_v40 = vpop.f32.mrf.mxu0 }
 0x39d   : > { %v12855_v53 = vpop.f32.mrf.mxu0 }
 0x39f   : > { %v9156_v24 = vpop.f32.mrf.mxu1  ;;  %v12857_v50 = vpop.f32.mrf.mxu0 }
 0x3a1   : > { %v4975_v41 = vpop.f32.mrf.mxu1  ;;  %v12859_v17 = vpop.f32.mrf.mxu0 }
 0x3a3   : > { %v12861_v62 = vpop.f32.mrf.mxu0 }
 0x3a4   : > { %14147 = vst [vmem:[#allocation36_spill] sm:$0xff] %v12861_v62  ;;  %v13041_v62 = vadd.s32 80, %v12076_v23 }
 0x3a5   : > { %v12863_v37 = vpop.f32.mrf.mxu0 }
 0x3a6   : > { %14148 = vst [vmem:[#allocation37_spill] sm:$0xff] %v12863_v37  ;;  %v13038_v37 = vadd.s32 88, %v12076_v23 }
 0x3a7   : > { %v12865_v18 = vpop.f32.mrf.mxu0 }
 0x3a8   : > { %14149 = vst [vmem:[#allocation40_spill] sm:$0xff] %v12865_v18 }
 0x3ab   : > { %v9159_v36 = vpop.f32.mrf.mxu1 }
 0x3ad   : > { %v4985_v39 = vpop.f32.mrf.mxu1 }
 0x3af   : > { %v12867_v35 = vpop.f32.mrf.mxu0 }
 0x3b0   : > { %14150 = vst [vmem:[#allocation41_spill] sm:$0xff] %v12867_v35 }
 0x3b1   : > { %v12869_v9 = vpop.f32.mrf.mxu0 }
 0x3b2   : > { %14151 = vst [vmem:[#allocation44_spill] sm:$0xff] %v12869_v9  ;;  %v4688_v9 = vadd.s32 8, %v12076_v23 }
 0x3b7   : > { %v9162_v8 = vpop.f32.mrf.mxu1 }
 0x3b9   : > { %v4995_v45 = vpop.f32.mrf.mxu1 }
 0x3bb   : > { %v9167_v51 = vpop.f32.mrf.mxu1  ;;  %v12871_v25 = vpop.f32.mrf.mxu0 }
 0x3bc   : > { %14152 = vst [vmem:[#allocation45_spill] sm:$0xff] %v12871_v25  ;;  %v5108_v6 = vadd.f32 %v9167_v51, %v12819_v47 }
 0x3bd   : > { %v5102_v57 = vpop.f32.mrf.mxu1  ;;  %v12874_v7 = vpop.f32.mrf.mxu0 }
 0x3be   : > { %14153 = vst [vmem:[#allocation46_spill] sm:$0xff] %v12874_v7 }
 0x3bf   : > { %v9170_v33 = vpop.f32.mrf.mxu1 }
 0x3c1   : > { %v5112_v63 = vpop.f32.mrf.mxu1 }
 0x3c3   : > { %v9173_v54 = vpop.f32.mrf.mxu1 }
 0x3c5   : > { %v5122_v32 = vpop.f32.mrf.mxu1 }
 0x3c6   : > { %v5123_v4 = vadd.f32 %v5122_v32, %v4945_v11  ;;  %v5103_v11 = vadd.f32 %v5102_v57, %v12825_v56  ;;  %v5128_v56 = vadd.f32 %v9173_v54, %v12841_v5 }
 0x3c7   : > { %v9176_v52 = vpop.f32.mrf.mxu1 }
 0x3c8   : > { %v5138_v46 = vadd.f32 %v9176_v52, %v9150_v1 }
 0x3c9   : > { %v5132_v2 = vpop.f32.mrf.mxu1 }
 0x3ca   : > { %v5133_v34 = vadd.f32 %v5132_v2, %v4955_v30 }
 0x3cb   : > { %v9179_v31 = vpop.f32.mrf.mxu1 }
 0x3cc   : > { %v5148_v55 = vadd.f32 %v9179_v31, %v9153_v29  ;;  %v5118_v29 = vadd.f32 %v9170_v33, %v12831_v28 }
 0x3cd   : > { %v5142_v38 = vpop.f32.mrf.mxu1 }
 0x3ce   : > { %v5143_v22 = vadd.f32 %v5142_v38, %v4965_v12 }
 0x3cf   : > { %v9182_v10 = vpop.f32.mrf.mxu1 }
 0x3d0   : > { %v5158_v20 = vadd.f32 %v9182_v10, %v9156_v24  ;;  %v12882_v24 = vpop.f32.mrf.mxu0 }
 0x3d1   : > { %v5152_v14 = vpop.f32.mrf.mxu1 }
 0x3d2   : > { %v5153_v27 = vadd.f32 %v5152_v14, %v4975_v41  ;;  %v12893_v28 = vpop.f32.mrf.mxu0 }
 0x3d3   : > { %v9185_v61 = vpop.f32.mrf.mxu1 }
 0x3d4   : > { %v5168_v58 = vadd.f32 %v9185_v61, %v9159_v36  ;;  %v5113_v36 = vadd.f32 %v5112_v63, %v12837_v21  ;;  %v12900_v63 = vpop.f32.mrf.mxu0 }
 0x3d5   : > { %v5162_v49 = vpop.f32.mrf.mxu1  ;;  %14154 = vst [vmem:[#allocation49_spill] sm:$0xff] %v12900_v63  ;;  %v13028_v63 = vadd.s32 72, %v12076_v23 }
 0x3d6   : > { %v5163_v48 = vadd.f32 %v5162_v49, %v4985_v39  ;;  %v12906_v54 = vpop.f32.mrf.mxu0 }
 0x3d7   : > { %v9188_v42 = vpop.f32.mrf.mxu1  ;;  %14155 = vst [vmem:[#allocation50_spill] sm:$0xff] %v12906_v54 }
 0x3d8   : > { %v5178_v60 = vadd.f32 %v9188_v42, %v9162_v8  ;;  %v6759_v8 = vld [vmem:[%s13411_s5 + $0x8] sm:$0xff]  ;;  %v12912_v61 = vpop.f32.mrf.mxu0 }
 0x3d9   : > { %v5172_v3 = vpop.f32.mrf.mxu1  ;;  %9372 = vmatpush3.msra.mxu1 %v6759_v8  ;;  %14156 = vst [vmem:[#allocation51_spill] sm:$0xff] %v12912_v61 }
 0x3da   : > { %v5173_v15 = vadd.f32 %v5172_v3, %v4995_v45  ;;  %9373 = vmatprep.subr.mxu1 %v14127_v26 }
 0x3db   : > { %v9193_v19 = vpop.f32.mrf.mxu1 }
 0x3dc   : > { %v12877_v1 = vadd.f32 %v9193_v19, %v5108_v6 }
 0x3dd   : > { %v5321_v30 = vpop.f32.mrf.mxu1 }
 0x3de   : > { %v12880_v12 = vadd.f32 %v5321_v30, %v5103_v11 }
 0x3df   : > { %v9196_v41 = vpop.f32.mrf.mxu1 }
 0x3e0   : > { %v12885_v39 = vadd.f32 %v9196_v41, %v5118_v29 }
 0x3e1   : > { %v5331_v47 = vpop.f32.mrf.mxu1 }
 0x3e2   : > { %v12891_v45 = vadd.f32 %v5331_v47, %v5113_v36 }
 0x3e3   : > { %v9199_v51 = vpop.f32.mrf.mxu1 }
 0x3e4   : > { %v12896_v57 = vadd.f32 %v9199_v51, %v5128_v56 }
 0x3e5   : > { %v5341_v21 = vpop.f32.mrf.mxu1 }
 0x3e6   : > { %v12898_v33 = vadd.f32 %v5341_v21, %v5123_v4 }
 0x3e7   : > { %v9202_v32 = vpop.f32.mrf.mxu1 }
 0x3e8   : > { %v12902_v52 = vadd.f32 %v9202_v32, %v5138_v46  ;;  %v12918_v46 = vpop.f32.mrf.mxu0 }
 0x3e9   : > { %v5351_v2 = vpop.f32.mrf.mxu1  ;;  %14157 = vst [vmem:[#allocation54_spill] sm:$0xff] %v12918_v46 }
 0x3ea   : > { %v12904_v5 = vadd.f32 %v5351_v2, %v5133_v34 }
 0x3eb   : > { %v9205_v31 = vpop.f32.mrf.mxu1 }
 0x3ec   : > { %v12908_v38 = vadd.f32 %v9205_v31, %v5148_v55  ;;  %v6758_v55 = vld [vmem:[%s13411_s5] sm:$0xff] }
 0x3ed   : > { %v5361_v10 = vpop.f32.mrf.mxu1  ;;  %9374 = vmatpush3.msra.mxu1 %v6758_v55 }
 0x3ee   : > { %v12910_v14 = vadd.f32 %v5361_v10, %v5143_v22  ;;  %9378 = vmatprep.subr.mxu1 %v14127_v26 }
 0x3ef   : > { %v9208_v4 = vpop.f32.mrf.mxu1 }
 0x3f0   : > { %v12914_v49 = vadd.f32 %v9208_v4, %v5158_v20  ;;  %v12929_v20 = vpop.f32.mrf.mxu0 }
 0x3f1   : > { %v5371_v42 = vpop.f32.mrf.mxu1  ;;  %14158 = vst [vmem:[#allocation55_spill] sm:$0xff] %v12929_v20 }
 0x3f2   : > { %v12916_v3 = vadd.f32 %v5371_v42, %v5153_v27 }
 0x3f3   : > { %v9211_v34 = vpop.f32.mrf.mxu1 }
 0x3f4   : > { %v12920_v6 = vadd.f32 %v9211_v34, %v5168_v58 }
 0x3f5   : > { %v5381_v19 = vpop.f32.mrf.mxu1 }
 0x3f6   : > { %v12925_v22 = vadd.f32 %v5381_v19, %v5163_v48  ;;  %v12938_v48 = vpop.f32.mrf.mxu0 }
 0x3f7   : > { %v9214_v27 = vpop.f32.mrf.mxu1  ;;  %14161 = vst [vmem:[#allocation64_spill] sm:$0xff] %v12938_v48 }
 0x3f8   : > { %v12934_v58 = vadd.f32 %v9214_v27, %v5178_v60  ;;  %v12940_v36 = vpop.f32.mrf.mxu0 }
 0x3f9   : > { %v5391_v11 = vpop.f32.mrf.mxu1  ;;  %14162 = vst [vmem:[#allocation67_spill] sm:$0xff] %v12940_v36 }
 0x3fa   : > { %14159 = vst [vmem:[#allocation59_spill] sm:$0xff] %v12934_v58  ;;  %v12936_v30 = vadd.f32 %v5391_v11, %v5173_v15  ;;  %v12944_v56 = vpop.f32.mrf.mxu0  ;;  %v13057_v58 = vadd.s32 96, %v12076_v23 }
 0x3fb   : > { %v9219_v29 = vpop.f32.mrf.mxu1  ;;  %14163 = vst [vmem:[#allocation105_spill] sm:$0xff] %v12944_v56 }
 0x3fc   : > { %14160 = vst [vmem:[#allocation60_spill] sm:$0xff] %v12936_v30  ;;  %v12950_v60 = vpop.f32.mrf.mxu0 }
 0x3fd   : > { %v5532_v41 = vpop.f32.mrf.mxu1  ;;  %14164 = vst [vmem:[#allocation106_spill] sm:$0xff] %v12950_v60 }
 0x3fe   : > { %v12956_v2 = vpop.f32.mrf.mxu0 }
 0x3ff   : > { %v9222_v47 = vpop.f32.mrf.mxu1  ;;  %14165 = vst [vmem:[#allocation109_spill] sm:$0xff] %v12956_v2 }
 0x400   : > { %v12962_v4 = vpop.f32.mrf.mxu0 }
 0x401   : > { %v12942_v8 = vpop.f32.mrf.mxu1  ;;  %14166 = vst [vmem:[#allocation103_spill] sm:$0xff] %v12962_v4 }
 0x402   : > { %v12968_v19 = vpop.f32.mrf.mxu0 }
 0x403   : > { %v12946_v51 = vpop.f32.mrf.mxu1  ;;  %14167 = vst [vmem:[#allocation104_spill] sm:$0xff] %v12968_v19 }
 0x404   : > { %v12974_v11 = vpop.f32.mrf.mxu0  ;;  %v5616_v18 = vadd.f32 %v12946_v51, %v12896_v57  ;;  %v6683_v51 = vand.u32 1, %v13057_v58 }
 0x405   : > { %v12948_v21 = vpop.f32.mrf.mxu1  ;;  %14168 = vst [vmem:[#allocation107_spill] sm:$0xff] %v12974_v11 }
 0x406   : > { %v12980_v60 = vpop.f32.mrf.mxu0  ;;  %vm13289_vm6 = vcmp.eq.s32.totalorder %v6683_v51, 0 }
 0x407   : > { %v12952_v32 = vpop.f32.mrf.mxu1  ;;  %14171 = vst [vmem:[#allocation5_spill] sm:$0xff] %v12980_v60 }
 0x408   : > { %v12982_v36 = vpop.f32.mrf.mxu0 }
 0x409   : > { %v12954_v15 = vpop.f32.mrf.mxu1  ;;  %14172 = vst [vmem:[#allocation7_spill] sm:$0xff] %v12982_v36  ;;  %v13031_v36 = vadd.s32 64, %v12076_v23 }
 0x40a   : > { %v12988_v19 = vpop.f32.mrf.mxu0  ;;  %v5617_v57 = vadd.f32 %v12954_v15, %v12904_v5  ;;  %v5859_v15 = vadd.f32 %v12851_v16, %v5616_v18 }
 0x40b   : > { %v12958_v31 = vpop.f32.mrf.mxu1  ;;  %14173 = vst [vmem:[#allocation6_spill] sm:$0xff] %v12988_v19  ;;  %v13008_v19 = vadd.s32 24, %v12076_v23 }
 0x40c   : > { %v12994_v11 = vpop.f32.mrf.mxu0 }
 0x40d   : > { %v12960_v10 = vpop.f32.mrf.mxu1  ;;  %14176 = vst [vmem:[#allocation10_spill] sm:$0xff] %v12994_v11  ;;  %14182 = vst [vmem:[#allocation13_spill] sm:$0xff] %v13008_v19 }
 0x40e   : > { %v13000_v60 = vpop.f32.mrf.mxu0 }
 0x40f   : > { %v12964_v42 = vpop.f32.mrf.mxu1  ;;  %14179 = vst [vmem:[#allocation42_spill] sm:$0xff] %v13000_v60  ;;  %v13021_v60 = vadd.s32 56, %v12076_v23 }
 0x410   : > { %v5622_v5 = vadd.f32 %v12964_v42, %v12914_v49  ;;  %v14194_v42 = vld [vmem:[#allocation60_spill] sm:$0xff] }
 0x411   : > { %v12966_v34 = vpop.f32.mrf.mxu1 }
 0x413   : > { %v12970_v55 = vpop.f32.mrf.mxu1 }
 0x415   : > { %v12972_v27 = vpop.f32.mrf.mxu1 }
 0x416   : > { %v5623_v16 = vadd.f32 %v12972_v27, %v12925_v22  ;;  %v14197_v27 = vld [vmem:[#allocation37_spill] sm:$0xff] }
 0x417   : > { %v12976_v26 = vpop.f32.mrf.mxu1 }
 0x418   : > { %14169 = vst [vmem:[#allocation74_spill] sm:$0xff] %v12976_v26  ;;  %v6682_v26 = vand.u32 1, %v13038_v37 }
 0x419   : > { %v12978_v2 = vpop.f32.mrf.mxu1 }
 0x41a   : > { %14170 = vst [vmem:[#allocation108_spill] sm:$0xff] %v12978_v2  ;;  %v13047_v2 = vadd.s32 104, %v12076_v23  ;;  %vm13256_vm3 = vcmp.eq.s32.totalorder %v6682_v26, 0 }
 0x41b   : > { %v9271_v56 = vpop.f32.mrf.mxu1 }
 0x41d   : > { %v6010_v4 = vpop.f32.mrf.mxu1 }
 0x41f   : > { %v12984_v48 = vpop.f32.mrf.mxu1 }
 0x421   : > { %v12986_v20 = vpop.f32.mrf.mxu1 }
 0x423   : > { %v12990_v46 = vpop.f32.mrf.mxu1 }
 0x424   : > { %14174 = vst [vmem:[#allocation8_spill] sm:$0xff] %v12990_v46  ;;  %v13011_v46 = vadd.s32 40, %v12076_v23 }
 0x425   : > { %v12992_v61 = vpop.f32.mrf.mxu1 }
 0x426   : > { %14175 = vst [vmem:[#allocation9_spill] sm:$0xff] %v12992_v61  ;;  %v13013_v61 = vpop.f32.mrf.mxu0 }
 0x427   : > { %v12996_v7 = vpop.f32.mrf.mxu1  ;;  %14183 = vst [vmem:[#allocation57_spill] sm:$0xff] %v13013_v61 }
 0x428   : > { %14177 = vst [vmem:[#allocation12_spill] sm:$0xff] %v12996_v7  ;;  %v6672_v7 = vand.u32 1, %v4688_v9  ;;  %v5611_v9 = vadd.f32 %v5532_v41, %v12880_v12  ;;  %v5614_v12 = vadd.f32 %v9222_v47, %v12885_v39  ;;  %v5615_v39 = vadd.f32 %v12948_v21, %v12898_v33 }
 0x429   : > { %v12998_v25 = vpop.f32.mrf.mxu1  ;;  %v6684_v47 = vand.u32 1, %v13047_v2  ;;  %v13091_v21 = vadd.s32 112, %v12076_v23 }
 0x42a   : > { %14178 = vst [vmem:[#allocation11_spill] sm:$0xff] %v12998_v25  ;;  %v13018_v25 = vadd.s32 32, %v12076_v23  ;;  %vm13101_vm8 = vcmp.eq.s32.totalorder %v6672_v7, 0  ;;  %v5860_v7 = vadd.f32 %v12857_v50, %v5617_v57  ;;  %v14196_v50 = vld [vmem:[#allocation36_spill] sm:$0xff] }
 0x42b   : > { %v13002_v54 = vpop.f32.mrf.mxu1  ;;  %vm13283_vm5 = vcmp.eq.s32.totalorder %v6684_v47, 0  ;;  %v14263_v47 = vld [vmem:[#allocation107_spill] sm:$0xff] }
 0x42c   : > { %14180 = vst [vmem:[#allocation43_spill] sm:$0xff] %v13002_v54  ;;  %v13024_v54 = vadd.s32 48, %v12076_v23 }
 0x42d   : > { %v13005_v35 = vpop.f32.mrf.mxu1 }
 0x42e   : > { %14181 = vst [vmem:[#allocation14_spill] sm:$0xff] %v13005_v35  ;;  %v5612_v35 = vadd.f32 %v9219_v29, %v12877_v1  ;;  %v6680_v29 = vand.u32 1, %v13028_v63 }
 0x42f   : > { %v13015_v11 = vpop.f32.mrf.mxu1 }
 0x430   : > { %14184 = vst [vmem:[#allocation47_spill] sm:$0xff] %v13015_v11  ;;  %v6671_v11 = vand.u32 1, %v12076_v23  ;;  %v5855_v41 = vadd.f32 %v12843_v13, %v5612_v35  ;;  %v5854_v35 = vadd.f32 %v12845_v59, %v5611_v9  ;;  %v5620_v59 = vadd.f32 %v12958_v31, %v12908_v38 }
 0x431   : > { %v13033_v61 = vpop.f32.mrf.mxu1  ;;  %vm13232_vm1 = vcmp.eq.s32.totalorder %v6680_v29, 0 }
 0x432   : > { %14185 = vst [vmem:[#allocation16_spill] sm:$0xff] %v13033_v61  ;;  %v13049_v61 = vpop.f32.mrf.mxu0  ;;  %v6090_v13 = vadd.f32 %v9271_v56, %v5855_v41  ;;  %v6089_v33 = vadd.f32 %v6010_v4, %v5854_v35  ;;  %v5857_v56 = vadd.f32 %v12847_v43, %v5614_v12  ;;  %vm13118_vm9 = vcmp.eq.s32.totalorder %v6671_v11, 0  ;;  %v14193_v4 = vld [vmem:[#allocation74_spill] sm:$0xff]  ;;  %v14198_v12 = vld [vmem:[#allocation40_spill] sm:$0xff]  ;;  %v14200_v35 = vld [vmem:[#allocation49_spill] sm:$0xff] }
 0x433   : > { %14186 = vst [vmem:[#allocation15_spill] sm:$0xff] %v13049_v61  ;;  %v13051_v30 = vpop.f32.mrf.mxu1  ;;  %v13085_v61 = vadd.s32 120, %v12076_v23  ;;  %v5621_v23 = vadd.f32 %v12966_v34, %v12916_v3  ;;  %v5865_v11 = vadd.f32 %v14197_v27, %v5622_v5  ;;  %v14203_v5 = vld [vmem:[#allocation41_spill] sm:$0xff]  ;;  %v14237_v3 = vand.u32 1, %v13024_v54 }
 0x434   : > { %14187 = vst [vmem:[#allocation61_spill] sm:$0xff] %v13051_v30  ;;  %v5613_v30 = vadd.f32 %v12942_v8, %v12891_v45  ;;  %v13075_v1 = vpop.f32.mrf.mxu0  ;;  %v5618_v45 = vadd.f32 %v12952_v32, %v12902_v52  ;;  %v5619_v52 = vadd.f32 %v12960_v10, %v12910_v14  ;;  %v6092_v43 = vadd.f32 %v12984_v48, %v5857_v56  ;;  %v14192_v10 = vld [vmem:[#allocation59_spill] sm:$0xff]  ;;  %v14202_v56 = vld [vmem:[#allocation9_spill] sm:$0xff] }
 0x435   : > { %v13067_v19 = vpop.f32.mrf.mxu1  ;;  %v5858_v14 = vadd.f32 %v12853_v40, %v5615_v39  ;;  %v6259_v31 = vadd.f32 %v12882_v24, %v6090_v13  ;;  %v5863_v24 = vadd.f32 %v12859_v17, %v5620_v59  ;;  %v5626_v22 = vadd.f32 %v14193_v4, %v14192_v10  ;;  %v14199_v39 = vld [vmem:[#allocation7_spill] sm:$0xff]  ;;  %v14201_v59 = vld [vmem:[#allocation8_spill] sm:$0xff]  ;;  %v14205_v4 = vld [vmem:[#allocation13_spill] sm:$0xff] }
 0x436   : > { %v5856_v32 = vadd.f32 %v12849_v44, %v5613_v30  ;;  %v13110_v49 = vpop.f32.mrf.mxu0  ;;  %v5624_v44 = vadd.f32 %v12970_v55, %v12920_v6  ;;  %v5861_v18 = vadd.f32 %v12855_v53, %v5618_v45  ;;  %v6258_v6 = vadd.f32 %v12893_v28, %v6089_v33  ;;  %v14195_v53 = vld [vmem:[#allocation108_spill] sm:$0xff] }
 0x437   : > { %v13081_v8 = vpop.f32.mrf.mxu1  ;;  %v5625_v34 = vadd.f32 %v14195_v53, %v14194_v42  ;;  %v5862_v55 = vadd.f32 %v14196_v50, %v5619_v52  ;;  %v5864_v41 = vadd.f32 %v14198_v12, %v5621_v23  ;;  %v6261_v45 = vadd.f32 %v14200_v35, %v6092_v43  ;;  %v14214_v50 = vld [vmem:[#allocation12_spill] sm:$0xff] }
 0x438   : > { %v6091_v40 = vadd.f32 %v12986_v20, %v5856_v32  ;;  %v13134_v20 = vld [vmem:[%s13410_s4] ss:$0 sm:$0xff]  ;;  %v13139_v57 = vpop.f32.mrf.mxu0  ;;  %v6094_v33 = vadd.f32 %v14201_v59, %v5859_v15  ;;  %v6093_v52 = vadd.f32 %v14202_v56, %v5858_v14  ;;  %v5867_v32 = vadd.f32 %v14203_v5, %v5624_v44  ;;  %v14212_v14 = vld [vmem:[#allocation6_spill] sm:$0xff] }
 0x439   : > { %v13099_v9 = vpop.f32.mrf.mxu1  ;;  %v14206_v42 = vand.u32 1, %v14205_v4  ;;  %v14209_v43 = vand.u32 1, %v12081_v0  ;;  %v6096_v27 = vadd.f32 %v14214_v50, %v5861_v18  ;;  %v14217_v59 = vld [vmem:[#allocation46_spill] sm:$0xff]  ;;  %v14230_v50 = vld [vmem:[#allocation47_spill] sm:$0xff]  ;;  %vm13211_vm0 = vcmp.eq.s32.totalorder %v14237_v3, 0  ;;  %v14251_v3 = vld [vmem:[#allocation109_spill] sm:$0xff] }
 0x43a   : > { %v13168_v0 = vadd.f32 %v14217_v59, %v5625_v34  ;;  %v14220_v18 = vld [vmem:[#allocation14_spill] sm:$0xff] }
 0x43b   : > { %v9323_v30 = vpop.f32.mrf.mxu1  ;;  %vm13149_vm11 = vcmp.eq.s32.totalorder %v14206_v42, 0  ;;  %vm13155_vm12 = vcmp.eq.s32.totalorder %v14209_v43, 0  ;;  %v6097_v42 = vadd.f32 %v14220_v18, %v5862_v55 }
 0x43c   : > { %v6432_v48 = vadd.f32 %v9323_v30, %v6259_v31  ;;  %v14204_v31 = vld [vmem:[#allocation44_spill] sm:$0xff] }
 0x43d   : > { %v6352_v17 = vpop.f32.mrf.mxu1  ;;  %v13145_v30 = vadd.f32 %v14204_v31, %v5623_v16  ;;  %v14213_v16 = vld [vmem:[#allocation50_spill] sm:$0xff] }
 0x43e   : > { %v6604_v28 = vadd.f32 %v14199_v39, %v6432_v48  ;;  %v6431_v13 = vadd.f32 %v6352_v17, %v6258_v6  ;;  %v6260_v53 = vadd.f32 %v14213_v16, %v6091_v40  ;;  %v14215_v17 = vld [vmem:[#allocation11_spill] sm:$0xff]  ;;  %v14216_v39 = vld [vmem:[#allocation45_spill] sm:$0xff]  ;;  %v6685_v48 = vand.u32 1, %v13091_v21 }
 0x43f   : > { %v9326_v10 = vpop.f32.mrf.mxu1  ;;  %v6095_v12 = vadd.f32 %v14215_v17, %v5860_v7  ;;  %v13165_v35 = vadd.f32 %v14216_v39, %v5626_v22  ;;  %v14219_v40 = vld [vmem:[#allocation43_spill] sm:$0xff]  ;;  %v6100_v17 = vadd.f32 %v14230_v50, %v5865_v11  ;;  %v6686_v21 = vand.u32 1, %v13085_v61 }
 0x440   : > { %v6627_v15 = vadd.f32 %v13134_v20, %v6604_v28  ;;  %v6603_v44 = vadd.f32 %v14212_v14, %v6431_v13  ;;  %v6434_v6 = vadd.f32 %v9326_v10, %v6261_v45  ;;  %v14218_v28 = vld [vmem:[#allocation10_spill] sm:$0xff]  ;;  %v13172_v45 = vpop.f32.mrf.mxu0  ;;  %v6098_v10 = vadd.f32 %v14219_v40, %v5863_v24  ;;  %v14221_v7 = vld [vmem:[#allocation51_spill] sm:$0xff] }
 0x441   : > { %v6362_v56 = vpop.f32.mrf.mxu1  ;;  %v6263_v43 = vadd.f32 %v14221_v7, %v6094_v33  ;;  %v14222_v14 = vand.u32 1, %v13011_v46  ;;  %v14233_v7 = vld [vmem:[#allocation57_spill] sm:$0xff] }
 0x442   : > { %v6643_v5 = vmax.f32 %v6627_v15, 0.0  ;;  %v6626_v31 = vadd.f32 %v13134_v20, %v6603_v44  ;;  %v6606_v4 = vadd.f32 %v14218_v28, %v6434_v6  ;;  %v6433_v13 = vadd.f32 %v6362_v56, %v6260_v53  ;;  %v14225_v15 = vld [vmem:[#allocation54_spill] sm:$0xff]  ;;  %v14231_v56 = vld [vmem:[#allocation55_spill] sm:$0xff]  ;;  %v14232_v28 = vld [vmem:[#allocation64_spill] sm:$0xff] }
 0x443   : > { %v9329_v22 = vpop.f32.mrf.mxu1  ;;  %vm13179_vm13 = vcmp.eq.s32.totalorder %v14222_v14, 0  ;;  %v6262_v44 = vadd.f32 %v14225_v15, %v6093_v52  ;;  %v14226_v6 = vand.u32 1, %v13018_v25  ;;  %v14229_v53 = vld [vmem:[#allocation42_spill] sm:$0xff]  ;;  %v6265_v52 = vadd.f32 %v14231_v56, %v6096_v27  ;;  %v14240_v14 = vld [vmem:[#allocation67_spill] sm:$0xff] }
 0x444   : > { %v6704_v24 = vsel %vm13101_vm8, %v6643_v5, 0.0  ;;  %v6642_v55 = vmax.f32 %v6626_v31, 0.0  ;;  %v6629_v33 = vadd.f32 %v13134_v20, %v6606_v4  ;;  %v6605_v46 = vadd.f32 %v14229_v53, %v6433_v13  ;;  %v9364_v31 = vpop.f32.mrf.mxu0  ;;  %v14244_v56 = vld [vmem:[#allocation106_spill] sm:$0xff] }
 0x445   : > { %vm13186_vm14 = vcmp.eq.s32.totalorder %v14226_v6, 0  ;;  %v6436_v39 = vadd.f32 %v9329_v22, %v6263_v43  ;;  %v6372_v59 = vpop.f32.mrf.mxu1  ;;  %v6264_v25 = vadd.f32 %v14232_v28, %v6095_v12  ;;  %v6721_v4 = vsel %vm6719_vm10, %v6704_v24, 0.0  ;;  %v14241_v24 = vld [vmem:[#allocation15_spill] sm:$0xff] }
 0x446   : > { %v6703_v40 = vsel %vm13118_vm9, %v6642_v55, 0.0  ;;  %v6645_v18 = vmax.f32 %v6629_v33, 0.0  ;;  %v6628_v38 = vadd.f32 %v13134_v20, %v6605_v46  ;;  %v6435_v5 = vadd.f32 %v6372_v59, %v6262_v44  ;;  %v14242_v33 = vld [vmem:[#allocation105_spill] sm:$0xff]  ;;  %v14243_v46 = vld [vmem:[#allocation16_spill] sm:$0xff] }
 0x447   : > { %v6720_v13 = vsel %vm6719_vm10, %v6703_v40, 0.0  ;;  %v6608_v11 = vadd.f32 %v14233_v7, %v6436_v39  ;;  %v9332_v43 = vpop.f32.mrf.mxu1  ;;  %v14234_v22 = vand.u32 1, %v13021_v60  ;;  %v6267_v15 = vadd.f32 %v14240_v14, %v6098_v10 }
 0x448   : > { %v6722_v44 = vadd.f32 %v6721_v4, %v6720_v13  ;;  %v6644_v6 = vmax.f32 %v6628_v38, 0.0  ;;  %v6607_v55 = vadd.f32 %v14241_v24, %v6435_v5  ;;  %v6266_v53 = vadd.f32 %v14242_v33, %v6097_v42  ;;  %v6574_v5 = vpop.f32.mrf.mxu0  ;;  %v14245_v4 = vld [vmem:[#allocation61_spill] sm:$0xff] }
 0x449   : > { %vm13205_vm15 = vcmp.eq.s32.totalorder %v14234_v22, 0  ;;  %v6099_v60 = vadd.f32 %v14243_v46, %v5864_v41  ;;  %v6631_v50 = vadd.f32 %v13134_v20, %v6608_v11  ;;  %v6438_v39 = vadd.f32 %v9332_v43, %v6265_v52  ;;  %v6382_v59 = vpop.f32.mrf.mxu1 }
 0x44a   : > { %v6269_v54 = vadd.f32 %v14244_v56, %v6100_v17  ;;  %v6706_v28 = vsel %vm13149_vm11, %v6645_v18, 0.0  ;;  %v6705_v10 = vsel %vm13155_vm12, %v6644_v6, 0.0  ;;  %v6630_v40 = vadd.f32 %v13134_v20, %v6607_v55 }
 0x44b   : > { %v6437_v38 = vadd.f32 %v6382_v59, %v6264_v25  ;;  %v6102_v42 = vadd.f32 %v14245_v4, %v5867_v32  ;;  %v6723_v41 = vsel %vm6719_vm10, %v6705_v10, 0.0  ;;  %v6647_v13 = vmax.f32 %v6631_v50, 0.0  ;;  %v9335_v7 = vpop.f32.mrf.mxu1 }
 0x44c   : > { %v6610_v52 = vadd.f32 %v13075_v1, %v6438_v39  ;;  %v6724_v11 = vadd.f32 %v6723_v41, %v6722_v44  ;;  %v6646_v17 = vmax.f32 %v6630_v40, 0.0  ;;  %v6440_v18 = vadd.f32 %v9335_v7, %v6267_v15  ;;  %v9367_v44 = vpop.f32.mrf.mxu0  ;;  %v14257_v39 = vld [vmem:[#allocation103_spill] sm:$0xff] }
 0x44d   : > { %v6609_v23 = vadd.f32 %v13110_v49, %v6437_v38  ;;  %v14248_v25 = vand.u32 1, %v13031_v36  ;;  %v6101_v1 = vadd.f32 %v13067_v19, %v13145_v30  ;;  %v6725_v43 = vsel %vm6719_vm10, %v6706_v28, 0.0  ;;  %v6392_v22 = vpop.f32.mrf.mxu1 }
 0x44e   : > { %v6633_v49 = vadd.f32 %v13134_v20, %v6610_v52  ;;  %v6268_v63 = vadd.f32 %v14251_v3, %v6099_v60  ;;  %v6708_v29 = vsel %vm13179_vm13, %v6647_v13, 0.0  ;;  %v6707_v36 = vsel %vm13186_vm14, %v6646_v17, 0.0  ;;  %v6584_v40 = vpop.f32.mrf.mxu0 }
 0x44f   : > { %vm13238_vm2 = vcmp.eq.s32.totalorder %v14248_v25, 0  ;;  %v6726_v14 = vadd.f32 %v6725_v43, %v6724_v11  ;;  %v6632_v15 = vadd.f32 %v13134_v20, %v6609_v23  ;;  %v6727_v6 = vsel %vm6719_vm10, %v6707_v36, 0.0  ;;  %v9338_v55 = vpop.f32.mrf.mxu1 }
 0x450   : > { %v6649_v19 = vmax.f32 %v6633_v49, 0.0  ;;  %v6612_v30 = vadd.f32 %v13139_v57, %v6440_v18  ;;  %v6439_v24 = vadd.f32 %v6392_v22, %v6266_v53  ;;  %v6442_v46 = vadd.f32 %v9338_v55, %v6269_v54  ;;  %v9370_v43 = vpop.f32.mrf.mxu0 }
 0x451   : > { %v6728_v34 = vadd.f32 %v6727_v6, %v6726_v14  ;;  %v6648_v16 = vmax.f32 %v6632_v15, 0.0  ;;  %v14254_v60 = vand.u32 1, %v13041_v62  ;;  %v6271_v59 = vadd.f32 %v14257_v39, %v6102_v42  ;;  %v6402_v56 = vpop.f32.mrf.mxu1 }
 0x452   : > { %v6104_v57 = vadd.f32 %v13081_v8, %v13165_v35  ;;  %v6729_v37 = vsel %vm6719_vm10, %v6708_v29, 0.0  ;;  %v6635_v26 = vadd.f32 %v13134_v20, %v6612_v30  ;;  %v6611_v53 = vadd.f32 %v13172_v45, %v6439_v24  ;;  %v14264_v29 = vld [vmem:[#allocation5_spill] sm:$0xff]  ;;  %v6594_v55 = vpop.f32.mrf.mxu0 }
 0x453   : > { %vm13262_vm4 = vcmp.eq.s32.totalorder %v14254_v60, 0  ;;  %v6710_v54 = vsel %vm13205_vm15, %v6649_v19, 0.0  ;;  %v6709_v62 = vsel %vm13211_vm0, %v6648_v16, 0.0  ;;  %v6730_v28 = vadd.f32 %v6729_v37, %v6728_v34  ;;  %v9341_v42 = vpop.f32.mrf.mxu1 }
 0x454   : > { %v6614_v10 = vadd.f32 %v9364_v31, %v6442_v46  ;;  %v6731_v38 = vsel %vm6719_vm10, %v6709_v62, 0.0  ;;  %v6651_v4 = vmax.f32 %v6635_v26, 0.0  ;;  %v6634_v8 = vadd.f32 %v13134_v20, %v6611_v53 }
 0x455   : > { %v6441_v35 = vadd.f32 %v6402_v56, %v6268_v63  ;;  %v6103_v45 = vadd.f32 %v13099_v9, %v13168_v0  ;;  %v6732_v41 = vadd.f32 %v6731_v38, %v6730_v28  ;;  %v6444_v13 = vadd.f32 %v9341_v42, %v6271_v59  ;;  %v14262_v0 = vld [vmem:[#allocation104_spill] sm:$0xff]  ;;  %v6412_v17 = vpop.f32.mrf.mxu1 }
 0x456   : > { %v6637_v27 = vadd.f32 %v13134_v20, %v6614_v10  ;;  %v6733_v52 = vsel %vm6719_vm10, %v6710_v54, 0.0  ;;  %v6650_v7 = vmax.f32 %v6634_v8, 0.0  ;;  %v6270_v11 = vadd.f32 %v14262_v0, %v6101_v1 }
 0x457   : > { %v6613_v9 = vadd.f32 %v6574_v5, %v6441_v35  ;;  %v6734_v23 = vadd.f32 %v6733_v52, %v6732_v41  ;;  %v6616_v2 = vadd.f32 %v9367_v44, %v6444_v13  ;;  %v6273_v25 = vadd.f32 %v14263_v47, %v6104_v57  ;;  %v9344_v3 = vpop.f32.mrf.mxu1  ;;  %v6916_v47 = vld [vmem:[%s13415_s9 + $0x8] sm:$0xff] }
 0x458   : > { %v6653_v18 = vmax.f32 %v6637_v27, 0.0  ;;  %v6712_v58 = vsel %vm13232_vm1, %v6651_v4, 0.0  ;;  %v6711_v51 = vsel %vm13238_vm2, %v6650_v7, 0.0  ;;  %v6443_v22 = vadd.f32 %v6412_v17, %v6270_v11  ;;  %v6837_v11 = vld [vmem:[%s13413_s7 + $0x10] sm:$0xff]  ;;  %v6836_v17 = vld [vmem:[%s13413_s7 + $0x8] sm:$0xff] }
 0x459   : > { %v6636_v49 = vadd.f32 %v13134_v20, %v6613_v9  ;;  %v6735_v5 = vsel %vm6719_vm10, %v6711_v51, 0.0  ;;  %v6639_v1 = vadd.f32 %v13134_v20, %v6616_v2  ;;  %v6446_v63 = vadd.f32 %v9344_v3, %v6273_v25  ;;  %v6422_v6 = vpop.f32.mrf.mxu1  ;;  %v6838_v9 = vld [vmem:[%s13413_s7 + $0x18] sm:$0xff]  ;;  %v6917_v2 = vld [vmem:[%s13415_s9 + $0x10] sm:$0xff]  ;;  %v6915_v25 = vld [vmem:[%s13415_s9] sm:$0xff] }
 0x45a   : > { %v6272_v36 = vadd.f32 %v14264_v29, %v6103_v45  ;;  %v6736_v14 = vadd.f32 %v6735_v5, %v6734_v23  ;;  %v6615_v44 = vadd.f32 %v6584_v40, %v6443_v22  ;;  %v6737_v32 = vsel %vm6719_vm10, %v6712_v58, 0.0  ;;  %v6835_v23 = vld [vmem:[%s13413_s7] sm:$0xff] }
 0x45b   : > { %v6652_v15 = vmax.f32 %v6636_v49, 0.0  ;;  %v6714_v19 = vsel %vm13256_vm3, %v6653_v18, 0.0  ;;  %v6618_v30 = vadd.f32 %v9370_v43, %v6446_v63  ;;  %v6655_v46 = vmax.f32 %v6639_v1, 0.0  ;;  %v6918_v18 = vld [vmem:[%s13415_s9 + $0x18] sm:$0xff]  ;;  %v6760_v43 = vld [vmem:[%s13412_s6] sm:$0x1] }
 0x45c   : > { %v6445_v24 = vadd.f32 %v6422_v6, %v6272_v36  ;;  %v6738_v16 = vadd.f32 %v6737_v32, %v6736_v14  ;;  %v6638_v60 = vadd.f32 %v13134_v20, %v6615_v44  ;;  %v6741_v26 = vsel %vm6719_vm10, %v6714_v19, 0.0  ;;  %9390 = vmatpush3.msra.mxu0 %v6918_v18  ;;  %v6839_v3 = vld [vmem:[%s13414_s8] sm:$0x1] }
 0x45d   : > { %v6713_v34 = vsel %vm13262_vm4, %v6652_v15, 0.0  ;;  %v6641_v59 = vadd.f32 %v13134_v20, %v6618_v30  ;;  %vm6701_vm8 = vcmp.eq.s32.totalorder %v6685_v48, 0  ;;  %v6716_v50 = vsel %vm13283_vm5, %v6655_v46, 0.0  ;;  %v6919_v36 = vld [vmem:[%s13416_s10] sm:$0x1] }
 0x45e   : > { %v6739_v39 = vsel %vm6719_vm10, %v6713_v34, 0.0  ;;  %v6617_v57 = vadd.f32 %v6594_v55, %v6445_v24  ;;  %v6654_v33 = vmax.f32 %v6638_v60, 0.0  ;;  %vm6702_vm9 = vcmp.eq.s32.totalorder %v6686_v21, 0 }
 0x45f   : > { %v6740_v37 = vadd.f32 %v6739_v39, %v6738_v16  ;;  %v6657_v62 = vmax.f32 %v6641_v59, 0.0  ;;  %v6745_v40 = vsel %vm6719_vm10, %v6716_v50, 0.0  ;;  %v14265_v0 = vmov 0.0  }
 0x460   : > { %v6640_v53 = vadd.f32 %v13134_v20, %v6617_v57  ;;  %v6715_v56 = vsel %vm13289_vm6, %v6654_v33, 0.0  ;;  %9391 = vmatprep.subr.mxu0 %v14265_v0 }
 0x461   : > { %v6742_v54 = vadd.f32 %v6741_v26, %v6740_v37  ;;  %v6743_v28 = vsel %vm6719_vm10, %v6715_v56, 0.0  ;;  %v6718_v4 = vsel %vm6702_vm9, %v6657_v62, 0.0  ;;  %9392 = vmatpush3.msra.mxu0 %v6917_v2 }
 0x462   : > { %v6656_v61 = vmax.f32 %v6640_v53, 0.0  ;;  %v6749_v42 = vsel %vm6719_vm10, %v6718_v4, 0.0  ;;  %9393 = vmatprep.subr.mxu0 %v14265_v0 }
 0x463   : > { %v6744_v10 = vadd.f32 %v6743_v28, %v6742_v54  ;;  %9394 = vmatpush3.msra.mxu0 %v6916_v47 }
 0x464   : > { %v6717_v38 = vsel %vm6701_vm8, %v6656_v61, 0.0  ;;  %9395 = vmatprep.subr.mxu0 %v14265_v0 }
 0x465   : > { %v6746_v8 = vadd.f32 %v6745_v40, %v6744_v10  ;;  %v6747_v20 = vsel %vm6719_vm10, %v6717_v38, 0.0  ;;  %9396 = vmatpush3.msra.mxu0 %v6915_v25 }
 0x467   : > { %v6748_v35 = vadd.f32 %v6747_v20, %v6746_v8 }
 0x469   : > { %v6750_v45 = vadd.f32 %v6749_v42, %v6748_v35 }
 0x46b   : > { %v6751_v41 = vrot.slane %v6750_v45, 4 }
 0x46d   : > { %v6752_v27 = vadd.f32 %v6751_v41, %v6750_v45 }
 0x46f   : > { %v6753_v13 = vrot.slane %v6752_v27, 2 }
 0x471   : > { %v6754_v12 = vadd.f32 %v6753_v13, %v6752_v27 }
 0x473   : > { %v6755_v31 = vrot.slane %v6754_v12, 1 }
 0x475   : > { %v6756_v52 = vadd.f32 %v6755_v31, %v6754_v12 }
 0x477   : > { %v6757_v7 = vmul.f32 0.015625, %v6756_v52 }
 0x479   : > { %9376 = vmatmul.mubr.msk.f32.vlgmr.msra.gmra.mxu1 %vm6719_vm10, %v6757_v7  ;;  %vm6993_vm10 = vcmask 253952  }
 0x47a   : > { %9379 = vmatpush3.msra.mxu1 %v6838_v9  ;;  %9386 = vmatprep.mubr.msk.f32.mxu1 %vm9556_vm7, %v14265_v0  ;;  %vm6840_vm7 = vcmask 261120  }
 0x47b   : > { %9380 = vmatprep.subr.mxu1 %v14265_v0 }
 0x47c   : > { %9381 = vmatpush3.msra.mxu1 %v6837_v11 }
 0x47d   : > { %9382 = vmatprep.subr.mxu1 %v14265_v0 }
 0x47e   : > { %9383 = vmatpush3.msra.mxu1 %v6836_v17 }
 0x47f   : > { %9384 = vmatprep.subr.mxu1 %v14265_v0 }
 0x480   : > { %9385 = vmatpush3.msra.mxu1 %v6835_v23 }
 0x539   : > { %v6830_v58 = vpop.f32.mrf.mxu1 }
 0x53a   : > { %v6831_v51 = vadd.f32 %v6830_v58, %v6760_v43 }
 0x53b   : > { %v9377_v49 = vpop.f32.mrf.mxu1 }
 0x53c   : > { %v6834_v22 = vmax.f32 %v6831_v51, 0.0 }
 0x53e   : > { %9387 = vmatmul.mubr.msk.f32.vlgmr.msra.gmra.mxu1 %vm6840_vm7, %v6834_v22 }
 0x5fe   : > { %v6910_v5 = vpop.f32.mrf.mxu1 }
 0x5ff   : > { %v6911_v1 = vadd.f32 %v6910_v5, %v6839_v3 }
 0x600   : > { %v9388_v63 = vpop.f32.mrf.mxu1 }
 0x601   : > { %v6914_v29 = vmax.f32 %v6911_v1, 0.0 }
 0x603   : > { %9398 = vmatmul.mubr.msk.f32.vlgmr.msra.gmra.mxu0 %vm6840_vm7, %v6914_v29 }
 0x6c3   : > { %v6989_v14 = vpop.f32.mrf.mxu0 }
 0x6c4   : > { %v6990_v15 = vadd.f32 %v6989_v14, %v6919_v36 }
 0x6c5   : > { %v9399_v44 = vpop.f32.mrf.mxu0 }
 0x6c6   : > { %6994 = vst.msk [vmem:[%s378_s14] sm:$0x1] %vm6993_vm10, %v6990_v15 }
 0x6c7   : > { %9506 = shalt.err (!%p9503_p3)
}
 0x6c8   : > { %s9507_s13 = scalar_lea.hbm %s13371_s12, 16  ;;  %s9511_s16 = scalar_lea.hbm %s13417_s11, 32 }
 0x6c9   : > { %p9508_p4 = scmp.ne.s32.totalorder %s13371_s12, %s9507_s13  ;;  %p9512_p9 = scmp.lt.s32.totalorder %s13371_s12, %s13417_s11 }
 0x6ca   : > { %p9513_p10 = scmp.lt.s32.totalorder %s9511_s16, %s9507_s13 }
 0x6cb   : > { %p9509_p7 = pnand %p9508_p4, %p9656_p5 }
 0x6cc   : > { %p9514_p11 = por %p9513_p10, %p9512_p9 }
 0x6cd   : > { %p9510_p8 = pneg %p9509_p7 }
 0x6cf   : > { %p9515_p12 = pnand %p9514_p11, %p9510_p8 }
 0x6d1   : > { %9518 = shalt.err (!%p9515_p12)
}
 0x6d2   : > { %9401 = dma.vmem_to_hbm [thread:$0]  (%p9656_p5), %s7009_s15, 16, %s13371_s12, %s6996_s24  }
 0x6d3 PF: > { %p9407_p13 = scmp.ge.s32.totalorder %s9553_s20, 2  ;;  %s7020_s0 = sand.u32 1, %s9541_s17  }
 0x6d4   : > { %s7021_s29 = scalar_lea.sflag [#allocation3], %s7020_s0 }
 0x6d5   : > { %p9404_p0 = pnand %p9407_p13, %p9660_p6 }
 0x6d7   : > { %p9405_p1 = pneg %p9404_p0 }
 0x6d9   : > { %9536 = dma.done.wait (%p9405_p1), %s7021_s29, 16  }
 0x6da   : > { %9538 = vsyncadd (%p9405_p1), %s7021_s29, 4294967280  ;;  %p21_p2 = scmp.ge.s32.totalorder %s9643_s23, 4   ;;  %s14266_s17 = smov %s9545_s18 }
 0x6db   : > { %s14267_s18 = smov %s9549_s19  ;;  %s14268_s19 = smov %s9654_s26 }
 0x6dc   : > { %s14269_s20 = smov %s9643_s23  ;;  %23 = sbr.rel (!%p21_p2) target bundleno = 5 (0x5), region = 115 }
 0x6e1   :  { %7025 = vsyncpa [#allocation3], 1 }
 0x6e2   :  { %7027 = vsyncpa [#allocation3 + $0x1], 1 }

</bundles_post_ra>
